<compile_context>
chip_gen: v6e
topology: v6e:2x2x1
jax: 0.10.0
libtpu: 0.0.40
codegen_flags: <defaults>
</compile_context>

<pallas_src>
import functools

import jax
import jax.numpy as jnp
from jax.experimental import pallas as pl
from jax.experimental.pallas import tpu as pltpu


SEQ_LEN = 8          # params.sequence_length
GRU_HIDDEN = 32      # params.gru_hidden_size
GRU_LAYERS = 2       # params.gru_num_layers (kernel below is written for 2)
NUM_CLASSES = 10     # params.num_classes


# ----------------------------- fused Pallas kernel ---------------------------


def _gru_step(h, gi, whh3, bhn_b, H):
    """One GRU step, one direction.  Single fused (B,H)@(H,3H) hidden dot.

    h: (B, H) previous hidden (f32).  gi: (B, 3H) hoisted input pre-activation,
    already includes b_ih (all gates) and b_hh_r / b_hh_z.  whh3: (H, 3H) with
    gate columns [r | z | n].  bhn_b: (B, H) pre-broadcast b_hh_n.
    PyTorch gate math:  n = tanh(gi_n + r * (h@W_hn + b_hn)),  h' = (1-z)n + zh.
    """
    gh = jnp.dot(h, whh3, preferred_element_type=jnp.float32)         # (B, 3H)
    r = jax.nn.sigmoid(gi[:, 0:H] + gh[:, 0:H])                       # lane 0..H
    z = jax.nn.sigmoid(gi[:, H:2 * H] + gh[:, H:2 * H])               # lane H..2H
    n = jnp.tanh(gi[:, 2 * H:3 * H] + r * (gh[:, 2 * H:3 * H] + bhn_b))
    return (1.0 - z) * n + z * h


def _bigru(gi_f, gi_b, whh_ref, bhn_ref, sf, sb, *, T, B, H):
    """Fwd + bwd recurrences; hidden states are stored straight into the VMEM
    scratches sf / sb ((T*B, H), time-major rows).  The backward direction uses
    trace-time reversed indexing (static unroll) — no flips, no data movement.

    gi_f / gi_b: (T*B, 3H) hoisted gate pre-activations (row = t*B + b).
    whh_ref: (2, H, 3H); bhn_ref: (2, 1, H) (index 0 = fwd, 1 = bwd).
    """
    whh_f = whh_ref[0]                                   # loaded once per layer
    whh_b = whh_ref[1]
    bhn_f = jnp.broadcast_to(bhn_ref[0], (B, H))         # broadcast hoisted out
    bhn_b = jnp.broadcast_to(bhn_ref[1], (B, H))         # of the unrolled loop
    h_f = jnp.zeros((B, H), jnp.float32)
    h_b = jnp.zeros((B, H), jnp.float32)
    for s in range(T):                                   # static unroll, T = 8
        tf = s                                           # fwd walks forward
        tb = T - 1 - s                                   # bwd walks backward
        h_f = _gru_step(h_f, gi_f[tf * B:(tf + 1) * B, :], whh_f, bhn_f, H)
        h_b = _gru_step(h_b, gi_b[tb * B:(tb + 1) * B, :], whh_b, bhn_b, H)
        sf[tf * B:(tf + 1) * B, :] = h_f                 # direct full-width store
        sb[tb * B:(tb + 1) * B, :] = h_b
    # TODO(synk): optionally pad B to 8 rows (one f32 sublane tile) so these
    #             stores are unmasked; only worth it if vst masking shows up.


def _gocrnn_kernel(x_ref,
                   wih0f_ref, wih0b_ref, bi0f_ref, bi0b_ref, whh0_ref, bhn0_ref,
                   wih1f_ref, wih1b_ref, bi1f_ref, bi1b_ref, whh1_ref, bhn1_ref,
                   fcw_ref, fcb_ref,
                   out_ref,
                   s0f, s0b, s1f, s1b,
                   *, T, B, H):
    """Whole GOCRNN forward (2 bidirectional GRU layers + Linear + log_softmax).
    All intermediates stay in VMEM; one HBM read of inputs, one HBM write."""
    f32 = jnp.float32

    # ---- layer 0: hoisted input projection, ONE wide dot per direction -------
    # bf16 operands, f32 accumulation (MXU-native); biases already hold
    # b_ih(all gates) + b_hh_r + b_hh_z.
    x0 = x_ref[...]                                          # (T*B, Din) bf16
    gi0_f = jnp.dot(x0, wih0f_ref[...], preferred_element_type=f32) + bi0f_ref[...]
    gi0_b = jnp.dot(x0, wih0b_ref[...], preferred_element_type=f32) + bi0b_ref[...]
    _bigru(gi0_f, gi0_b, whh0_ref, bhn0_ref, s0f, s0b, T=T, B=B, H=H)

    # ---- layer 1: input is concat([h_fwd, h_bwd]) — lane-concat once, two
    # (T*B, 2H)@(2H, 3H) dots (instead of twelve half-matmuls).
    x1 = jnp.concatenate([s0f[...], s0b[...]], axis=-1).astype(jnp.bfloat16)
    gi1_f = jnp.dot(x1, wih1f_ref[...], preferred_element_type=f32) + bi1f_ref[...]
    gi1_b = jnp.dot(x1, wih1b_ref[...], preferred_element_type=f32) + bi1b_ref[...]
    _bigru(gi1_f, gi1_b, whh1_ref, bhn1_ref, s1f, s1b, T=T, B=B, H=H)

    # ---- epilogue: Linear + log_softmax on TIME-MAJOR rows (the (T,B,C) ->
    # (B,T,C) transpose of the tiny result happens in the JAX wrapper for free).
    x2 = jnp.concatenate([s1f[...], s1b[...]], axis=-1)      # (T*B, 2H) f32
    logits = jnp.dot(x2, fcw_ref[...], preferred_element_type=f32) + fcb_ref[...]
    m = jnp.max(logits, axis=-1, keepdims=True)
    sh = logits - m
    lse = jnp.log(jnp.sum(jnp.exp(sh), axis=-1, keepdims=True))
    out_ref[...] = (sh - lse).astype(out_ref.dtype)          # (T*B, C) time-major


# --------------------------- pallas_call wrapper ------------------------------


def _full_vmem_spec(shape):
    zeros = (0,) * len(shape)
    return pl.BlockSpec(shape, lambda i, _z=zeros: _z)


def gocrnn_forward(x, params):
    """Mirror of GOCRNN.forward.  x: (B, C, H, W) f32 -> (B, SEQ_LEN, NUM_CLASSES)."""
    assert GRU_LAYERS == 2
    B = x.shape[0]
    T, H, C = SEQ_LEN, GRU_HIDDEN, NUM_CLASSES

    # Module preprocessing (faithful, incl. the full extra-T padding when the
    # flattened size is already divisible by T — exactly what the torch code does).
    out = jnp.transpose(x, (0, 3, 2, 1))                     # (B, W, H, C)
    data_amount = out.shape[1] * out.shape[2] * out.shape[3]
    pad_length = T - data_amount % T
    dps = (data_amount + pad_length) // T
    out = out.reshape(B, -1)
    out = jnp.pad(out, ((0, 0), (0, pad_length)), mode="constant")
    out = out.reshape(B, T, dps)
    # Time-major rows (row = t*B + b); cast to bf16 once (MXU operand, f32 acc).
    x_tm = jnp.transpose(out, (1, 0, 2)).reshape(T * B, dps).astype(jnp.bfloat16)

    operands = (x_tm,
                params["wih0f"], params["wih0b"], params["bi0f"], params["bi0b"],
                params["whh0"], params["bhn0"],
                params["wih1f"], params["wih1b"], params["bi1f"], params["bi1b"],
                params["whh1"], params["bhn1"],
                params["fcw"], params["fcb"])

    kern = functools.partial(_gocrnn_kernel, T=T, B=B, H=H)
    lp = pl.pallas_call(
        kern,
        out_shape=jax.ShapeDtypeStruct((T * B, C), jnp.float32),
        grid_spec=pltpu.PrefetchScalarGridSpec(
            num_scalar_prefetch=0,
            grid=(1,),
            in_specs=[_full_vmem_spec(op.shape) for op in operands],
            out_specs=pl.BlockSpec((T * B, C), lambda i: (0, 0)),
            scratch_shapes=[pltpu.VMEM((T * B, H), jnp.float32)] * 4,
        ),
        compiler_params=pltpu.CompilerParams(
            dimension_semantics=("arbitrary",),
            vmem_limit_bytes=32 * 1024 * 1024),
    )(*operands)
    # Rows are time-major; this 640-byte transpose is free in XLA.
    return jnp.transpose(lp.reshape(T, B, C), (1, 0, 2))     # (B, T, C)


# ------------------------------- parameters -----------------------------------


def init_params(key, input_feat):
    """Deterministic synthetic parameters in PyTorch per-gate layout.

    wih{l}: (6, Din, H), whh{l}: (6, H, H), bih/bhh{l}: (6, H) with gate axis
    [fwd_r, fwd_z, fwd_n, bwd_r, bwd_z, bwd_n].  fc_w rows 0:H act on the fwd
    hidden, rows H:2H on the bwd hidden (torch's concat([h_fwd, h_bwd]) layout).
    """
    H, C = GRU_HIDDEN, NUM_CLASSES

    def dense(k, shape):
        return 0.1 * jax.random.normal(k, shape, jnp.float32)

    raw = {}
    k = key
    in_size = input_feat
    for li in range(GRU_LAYERS):
        k, k1, k2, k3, k4 = jax.random.split(k, 5)
        raw[f"wih{li}"] = dense(k1, (6, in_size, H))
        raw[f"whh{li}"] = dense(k2, (6, H, H))
        raw[f"bih{li}"] = dense(k3, (6, H))
        raw[f"bhh{li}"] = dense(k4, (6, H))
        in_size = 2 * H
    k, kw, kb = jax.random.split(k, 3)
    raw["fc_w"] = dense(kw, (2 * H, C))
    raw["fc_b"] = dense(kb, (1, C))
    return raw


def pack_params(raw):
    """Pack raw per-gate params into the fused kernel layout.

    Per layer / direction:  wih (Din, 3H) bf16 with gate columns [r|z|n],
    bi (1, 3H) = b_ih + [b_hh_r, b_hh_z, 0] (r/z hidden biases folded into the
    hoisted projection), whh (2, H, 3H) f32, bhn (2, 1, H) f32 (kept in-step).
    """
    H = GRU_HIDDEN
    p = {}
    for li in range(GRU_LAYERS):
        wih, whh = raw[f"wih{li}"], raw[f"whh{li}"]
        bih, bhh = raw[f"bih{li}"], raw[f"bhh{li}"]
        for d, tag in enumerate("fb"):
            g = 3 * d
            p[f"wih{li}{tag}"] = jnp.concatenate(
                [wih[g], wih[g + 1], wih[g + 2]], axis=1).astype(jnp.bfloat16)
            p[f"bi{li}{tag}"] = jnp.concatenate(
                [bih[g] + bhh[g], bih[g + 1] + bhh[g + 1], bih[g + 2]])[None, :]
        p[f"whh{li}"] = jnp.stack(
            [jnp.concatenate([whh[3 * d], whh[3 * d + 1], whh[3 * d + 2]], axis=1)
             for d in range(2)])
        p[f"bhn{li}"] = jnp.stack([bhh[2][None, :], bhh[5][None, :]])
    p["fcw"] = raw["fc_w"]
    p["fcb"] = raw["fc_b"]
    return p


# ------------------------------ pure-JAX reference ----------------------------


def gocrnn_reference(x, raw):
    """Pure-JAX mirror of GOCRNN.forward using the RAW per-gate params and the
    textbook PyTorch GRU equations (no packing / folding), so it independently
    validates every structural transform in the kernel.  Input-projection dots
    use the same bf16-operand / f32-accumulate policy as the kernel."""
    B = x.shape[0]
    T, H = SEQ_LEN, GRU_HIDDEN
    bf16, f32 = jnp.bfloat16, jnp.float32
    hi = jax.lax.Precision.HIGHEST

    out = jnp.transpose(x, (0, 3, 2, 1))
    data_amount = out.shape[1] * out.shape[2] * out.shape[3]
    pad_length = T - data_amount % T
    out = jnp.pad(out.reshape(B, -1), ((0, 0), (0, pad_length)))
    xs = out.reshape(B, T, -1)

    def cell(h, x_t, wih, whh, bih, bhh, base):
        def proj(v, w):
            return jnp.dot(v.astype(bf16), w.astype(bf16), preferred_element_type=f32)
        r = jax.nn.sigmoid(proj(x_t, wih[base + 0]) + bih[base + 0]
                           + jnp.dot(h, whh[base + 0], precision=hi) + bhh[base + 0])
        z = jax.nn.sigmoid(proj(x_t, wih[base + 1]) + bih[base + 1]
                           + jnp.dot(h, whh[base + 1], precision=hi) + bhh[base + 1])
        n = jnp.tanh(proj(x_t, wih[base + 2]) + bih[base + 2]
                     + r * (jnp.dot(h, whh[base + 2], precision=hi) + bhh[base + 2]))
        return (1.0 - z) * n + z * h

    def layer(seq, li):
        wih, whh = raw[f"wih{li}"], raw[f"whh{li}"]
        bih, bhh = raw[f"bih{li}"], raw[f"bhh{li}"]
        hf = jnp.zeros((B, H), f32)
        hb = jnp.zeros((B, H), f32)
        of = [None] * T
        ob = [None] * T
        for s in range(T):
            hf = cell(hf, seq[:, s], wih, whh, bih, bhh, 0)
            of[s] = hf
            hb = cell(hb, seq[:, T - 1 - s], wih, whh, bih, bhh, 3)
            ob[T - 1 - s] = hb
        return jnp.stack([jnp.concatenate([of[t], ob[t]], axis=-1)
                          for t in range(T)], axis=1)

    h = layer(xs, 0)
    h = layer(h, 1)
    logits = jnp.dot(h, raw["fc_w"], precision=hi) + raw["fc_b"]
    return jax.nn.log_softmax(logits, axis=-1)


# ----------------------------------- main --------------------------------------


if __name__ == "__main__":
    key = jax.random.PRNGKey(0)
    kx, kp = jax.random.split(key)

    # Small input consistent with the module's forward: NCHW.
    B, Cin, Himg, Wimg = 2, 4, 16, 16
    x = jax.random.normal(kx, (B, Cin, Himg, Wimg), jnp.float32)

    data_amount = Wimg * Himg * Cin                    # after permute: W*H*C
    pad_length = SEQ_LEN - data_amount % SEQ_LEN
    dps = (data_amount + pad_length) // SEQ_LEN        # GRU input feature size (129)

    raw = init_params(kp, dps)
    params = pack_params(raw)

    fwd = jax.jit(functools.partial(gocrnn_forward, params=params))
    out = jax.block_until_ready(fwd(x))

    assert out.shape == (B, SEQ_LEN, NUM_CLASSES), out.shape
    assert bool(jnp.all(jnp.isfinite(out)))
    row_sums = jnp.exp(out).sum(axis=-1)               # log_softmax rows sum to 1
    assert bool(jnp.allclose(row_sums, 1.0, atol=1e-3)), row_sums

    ref = gocrnn_reference(x, raw)                     # independent per-gate reference
    max_err = float(jnp.max(jnp.abs(out - ref)))
    assert bool(jnp.allclose(out, ref, atol=5e-3)), max_err

    print("KERNEL_OK")
</pallas_src>

<mosaic_0001>
module attributes {stable_mosaic.version = 11 : i64} {
  func.func @_gocrnn_kernel(%arg0: i32, %arg1: memref<16x129xbf16, #tpu.memory_space<vmem>>, %arg2: memref<129x96xbf16, #tpu.memory_space<vmem>>, %arg3: memref<129x96xbf16, #tpu.memory_space<vmem>>, %arg4: memref<1x96xf32, #tpu.memory_space<vmem>>, %arg5: memref<1x96xf32, #tpu.memory_space<vmem>>, %arg6: memref<2x32x96xf32, #tpu.memory_space<vmem>>, %arg7: memref<2x1x32xf32, #tpu.memory_space<vmem>>, %arg8: memref<64x96xbf16, #tpu.memory_space<vmem>>, %arg9: memref<64x96xbf16, #tpu.memory_space<vmem>>, %arg10: memref<1x96xf32, #tpu.memory_space<vmem>>, %arg11: memref<1x96xf32, #tpu.memory_space<vmem>>, %arg12: memref<2x32x96xf32, #tpu.memory_space<vmem>>, %arg13: memref<2x1x32xf32, #tpu.memory_space<vmem>>, %arg14: memref<64x10xf32, #tpu.memory_space<vmem>>, %arg15: memref<1x10xf32, #tpu.memory_space<vmem>>, %arg16: memref<16x10xf32, #tpu.memory_space<vmem>>, %arg17: memref<16x32xf32, #tpu.memory_space<vmem>>, %arg18: memref<16x32xf32, #tpu.memory_space<vmem>>, %arg19: memref<16x32xf32, #tpu.memory_space<vmem>>, %arg20: memref<16x32xf32, #tpu.memory_space<vmem>>) attributes {dimension_semantics = [#tpu.dimension_semantics<arbitrary>], iteration_bounds = array<i64: 1>, scalar_prefetch = 0 : i64, scratch_operands = 4 : i64, tpu.core_type = #tpu.core_type<tc>, window_params = [{pipeline_mode = #tpu.pipeline_mode<synchronous>, transform_indices = @transform_0, window_bounds = array<i64: 16, 129>}, {pipeline_mode = #tpu.pipeline_mode<synchronous>, transform_indices = @transform_1, window_bounds = array<i64: 129, 96>}, {pipeline_mode = #tpu.pipeline_mode<synchronous>, transform_indices = @transform_2, window_bounds = array<i64: 129, 96>}, {pipeline_mode = #tpu.pipeline_mode<synchronous>, transform_indices = @transform_3, window_bounds = array<i64: 1, 96>}, {pipeline_mode = #tpu.pipeline_mode<synchronous>, transform_indices = @transform_4, window_bounds = array<i64: 1, 96>}, {pipeline_mode = #tpu.pipeline_mode<synchronous>, transform_indices = @transform_5, window_bounds = array<i64: 2, 32, 96>}, {pipeline_mode = #tpu.pipeline_mode<synchronous>, transform_indices = @transform_6, window_bounds = array<i64: 2, 1, 32>}, {pipeline_mode = #tpu.pipeline_mode<synchronous>, transform_indices = @transform_7, window_bounds = array<i64: 64, 96>}, {pipeline_mode = #tpu.pipeline_mode<synchronous>, transform_indices = @transform_8, window_bounds = array<i64: 64, 96>}, {pipeline_mode = #tpu.pipeline_mode<synchronous>, transform_indices = @transform_9, window_bounds = array<i64: 1, 96>}, {pipeline_mode = #tpu.pipeline_mode<synchronous>, transform_indices = @transform_10, window_bounds = array<i64: 1, 96>}, {pipeline_mode = #tpu.pipeline_mode<synchronous>, transform_indices = @transform_11, window_bounds = array<i64: 2, 32, 96>}, {pipeline_mode = #tpu.pipeline_mode<synchronous>, transform_indices = @transform_12, window_bounds = array<i64: 2, 1, 32>}, {pipeline_mode = #tpu.pipeline_mode<synchronous>, transform_indices = @transform_13, window_bounds = array<i64: 64, 10>}, {pipeline_mode = #tpu.pipeline_mode<synchronous>, transform_indices = @transform_14, window_bounds = array<i64: 1, 10>}, {pipeline_mode = #tpu.pipeline_mode<synchronous>, transform_indices = @transform_15, window_bounds = array<i64: 16, 10>}]} {
    %c0 = arith.constant 0 : index
    %c0_0 = arith.constant 0 : index
    %0 = vector.load %arg1[%c0, %c0_0] : memref<16x129xbf16, #tpu.memory_space<vmem>>, vector<16x129xbf16>
    %c0_1 = arith.constant 0 : index
    %c0_2 = arith.constant 0 : index
    %1 = vector.load %arg2[%c0_1, %c0_2] : memref<129x96xbf16, #tpu.memory_space<vmem>>, vector<129x96xbf16>
    %cst = arith.constant dense<0.000000e+00> : vector<16x96xf32>
    %2 = tpu.matmul %0, %1, %cst {dimension_numbers = #tpu.dot_dimension_numbers<[1], [0], [0], [1], [0, 0, 1, 1], [], []>} : vector<16x129xbf16>, vector<129x96xbf16>, vector<16x96xf32> -> vector<16x96xf32>
    %c0_3 = arith.constant 0 : index
    %c0_4 = arith.constant 0 : index
    %3 = vector.load %arg4[%c0_3, %c0_4] : memref<1x96xf32, #tpu.memory_space<vmem>>, vector<1x96xf32>
    %4 = vector.broadcast %3 : vector<1x96xf32> to vector<16x96xf32>
    %5 = arith.addf %2, %4 : vector<16x96xf32>
    %c0_5 = arith.constant 0 : index
    %c0_6 = arith.constant 0 : index
    %6 = vector.load %arg3[%c0_5, %c0_6] : memref<129x96xbf16, #tpu.memory_space<vmem>>, vector<129x96xbf16>
    %cst_7 = arith.constant dense<0.000000e+00> : vector<16x96xf32>
    %7 = tpu.matmul %0, %6, %cst_7 {dimension_numbers = #tpu.dot_dimension_numbers<[1], [0], [0], [1], [0, 0, 1, 1], [], []>} : vector<16x129xbf16>, vector<129x96xbf16>, vector<16x96xf32> -> vector<16x96xf32>
    %c0_8 = arith.constant 0 : index
    %c0_9 = arith.constant 0 : index
    %8 = vector.load %arg5[%c0_8, %c0_9] : memref<1x96xf32, #tpu.memory_space<vmem>>, vector<1x96xf32>
    %9 = vector.broadcast %8 : vector<1x96xf32> to vector<16x96xf32>
    %10 = arith.addf %7, %9 : vector<16x96xf32>
    %c0_10 = arith.constant 0 : index
    %c0_11 = arith.constant 0 : index
    %c0_12 = arith.constant 0 : index
    %11 = vector.load %arg6[%c0_10, %c0_11, %c0_12] : memref<2x32x96xf32, #tpu.memory_space<vmem>>, vector<1x32x96xf32>
    %12 = vector.shape_cast %11 : vector<1x32x96xf32> to vector<32x96xf32>
    %c1 = arith.constant 1 : index
    %c0_13 = arith.constant 0 : index
    %c0_14 = arith.constant 0 : index
    %13 = vector.load %arg6[%c1, %c0_13, %c0_14] : memref<2x32x96xf32, #tpu.memory_space<vmem>>, vector<1x32x96xf32>
    %14 = vector.shape_cast %13 : vector<1x32x96xf32> to vector<32x96xf32>
    %c0_15 = arith.constant 0 : index
    %c0_16 = arith.constant 0 : index
    %c0_17 = arith.constant 0 : index
    %15 = vector.load %arg7[%c0_15, %c0_16, %c0_17] : memref<2x1x32xf32, #tpu.memory_space<vmem>>, vector<1x1x32xf32>
    %16 = vector.shape_cast %15 : vector<1x1x32xf32> to vector<1x32xf32>
    %17 = vector.shape_cast %16 : vector<1x32xf32> to vector<1x32xf32>
    %18 = vector.broadcast %17 : vector<1x32xf32> to vector<2x32xf32>
    %c1_18 = arith.constant 1 : index
    %c0_19 = arith.constant 0 : index
    %c0_20 = arith.constant 0 : index
    %19 = vector.load %arg7[%c1_18, %c0_19, %c0_20] : memref<2x1x32xf32, #tpu.memory_space<vmem>>, vector<1x1x32xf32>
    %20 = vector.shape_cast %19 : vector<1x1x32xf32> to vector<1x32xf32>
    %21 = vector.shape_cast %20 : vector<1x32xf32> to vector<1x32xf32>
    %22 = vector.broadcast %21 : vector<1x32xf32> to vector<2x32xf32>
    %cst_21 = arith.constant 0.000000e+00 : f32
    %23 = vector.broadcast %cst_21 : f32 to vector<2x32xf32>
    %cst_22 = arith.constant 0.000000e+00 : f32
    %24 = vector.broadcast %cst_22 : f32 to vector<2x32xf32>
    %25 = vector.extract_strided_slice %5 {offsets = [0, 0], sizes = [2, 96], strides = [1, 1]} : vector<16x96xf32> to vector<2x96xf32>
    %cst_23 = arith.constant dense<0.000000e+00> : vector<2x96xf32>
    %26 = tpu.matmul %23, %12, %cst_23 {dimension_numbers = #tpu.dot_dimension_numbers<[1], [0], [0], [1], [0, 0, 1, 1], [], []>} : vector<2x32xf32>, vector<32x96xf32>, vector<2x96xf32> -> vector<2x96xf32>
    %27 = vector.extract_strided_slice %25 {offsets = [0, 0], sizes = [2, 32], strides = [1, 1]} : vector<2x96xf32> to vector<2x32xf32>
    %28 = vector.extract_strided_slice %26 {offsets = [0, 0], sizes = [2, 32], strides = [1, 1]} : vector<2x96xf32> to vector<2x32xf32>
    %29 = arith.addf %27, %28 : vector<2x32xf32>
    %30 = arith.negf %29 : vector<2x32xf32>
    %31 = math.exp %30 : vector<2x32xf32>
    %cst_24 = arith.constant 1.000000e+00 : f32
    %32 = vector.broadcast %cst_24 : f32 to vector<2x32xf32>
    %33 = arith.addf %32, %31 : vector<2x32xf32>
    %34 = arith.divf %32, %33 : vector<2x32xf32>
    %35 = vector.extract_strided_slice %25 {offsets = [0, 32], sizes = [2, 32], strides = [1, 1]} : vector<2x96xf32> to vector<2x32xf32>
    %36 = vector.extract_strided_slice %26 {offsets = [0, 32], sizes = [2, 32], strides = [1, 1]} : vector<2x96xf32> to vector<2x32xf32>
    %37 = arith.addf %35, %36 : vector<2x32xf32>
    %38 = arith.negf %37 : vector<2x32xf32>
    %39 = math.exp %38 : vector<2x32xf32>
    %cst_25 = arith.constant 1.000000e+00 : f32
    %40 = vector.broadcast %cst_25 : f32 to vector<2x32xf32>
    %41 = arith.addf %40, %39 : vector<2x32xf32>
    %42 = arith.divf %40, %41 : vector<2x32xf32>
    %43 = vector.extract_strided_slice %25 {offsets = [0, 64], sizes = [2, 32], strides = [1, 1]} : vector<2x96xf32> to vector<2x32xf32>
    %44 = vector.extract_strided_slice %26 {offsets = [0, 64], sizes = [2, 32], strides = [1, 1]} : vector<2x96xf32> to vector<2x32xf32>
    %45 = arith.addf %44, %18 : vector<2x32xf32>
    %46 = arith.mulf %34, %45 : vector<2x32xf32>
    %47 = arith.addf %43, %46 : vector<2x32xf32>
    %48 = math.tanh %47 : vector<2x32xf32>
    %cst_26 = arith.constant 1.000000e+00 : f32
    %49 = vector.broadcast %cst_26 : f32 to vector<2x32xf32>
    %50 = arith.subf %49, %42 : vector<2x32xf32>
    %51 = arith.mulf %50, %48 : vector<2x32xf32>
    %52 = arith.mulf %42, %23 : vector<2x32xf32>
    %53 = arith.addf %51, %52 : vector<2x32xf32>
    %54 = vector.extract_strided_slice %10 {offsets = [14, 0], sizes = [2, 96], strides = [1, 1]} : vector<16x96xf32> to vector<2x96xf32>
    %cst_27 = arith.constant dense<0.000000e+00> : vector<2x96xf32>
    %55 = tpu.matmul %24, %14, %cst_27 {dimension_numbers = #tpu.dot_dimension_numbers<[1], [0], [0], [1], [0, 0, 1, 1], [], []>} : vector<2x32xf32>, vector<32x96xf32>, vector<2x96xf32> -> vector<2x96xf32>
    %56 = vector.extract_strided_slice %54 {offsets = [0, 0], sizes = [2, 32], strides = [1, 1]} : vector<2x96xf32> to vector<2x32xf32>
    %57 = vector.extract_strided_slice %55 {offsets = [0, 0], sizes = [2, 32], strides = [1, 1]} : vector<2x96xf32> to vector<2x32xf32>
    %58 = arith.addf %56, %57 : vector<2x32xf32>
    %59 = arith.negf %58 : vector<2x32xf32>
    %60 = math.exp %59 : vector<2x32xf32>
    %cst_28 = arith.constant 1.000000e+00 : f32
    %61 = vector.broadcast %cst_28 : f32 to vector<2x32xf32>
    %62 = arith.addf %61, %60 : vector<2x32xf32>
    %63 = arith.divf %61, %62 : vector<2x32xf32>
    %64 = vector.extract_strided_slice %54 {offsets = [0, 32], sizes = [2, 32], strides = [1, 1]} : vector<2x96xf32> to vector<2x32xf32>
    %65 = vector.extract_strided_slice %55 {offsets = [0, 32], sizes = [2, 32], strides = [1, 1]} : vector<2x96xf32> to vector<2x32xf32>
    %66 = arith.addf %64, %65 : vector<2x32xf32>
    %67 = arith.negf %66 : vector<2x32xf32>
    %68 = math.exp %67 : vector<2x32xf32>
    %cst_29 = arith.constant 1.000000e+00 : f32
    %69 = vector.broadcast %cst_29 : f32 to vector<2x32xf32>
    %70 = arith.addf %69, %68 : vector<2x32xf32>
    %71 = arith.divf %69, %70 : vector<2x32xf32>
    %72 = vector.extract_strided_slice %54 {offsets = [0, 64], sizes = [2, 32], strides = [1, 1]} : vector<2x96xf32> to vector<2x32xf32>
    %73 = vector.extract_strided_slice %55 {offsets = [0, 64], sizes = [2, 32], strides = [1, 1]} : vector<2x96xf32> to vector<2x32xf32>
    %74 = arith.addf %73, %22 : vector<2x32xf32>
    %75 = arith.mulf %63, %74 : vector<2x32xf32>
    %76 = arith.addf %72, %75 : vector<2x32xf32>
    %77 = math.tanh %76 : vector<2x32xf32>
    %cst_30 = arith.constant 1.000000e+00 : f32
    %78 = vector.broadcast %cst_30 : f32 to vector<2x32xf32>
    %79 = arith.subf %78, %71 : vector<2x32xf32>
    %80 = arith.mulf %79, %77 : vector<2x32xf32>
    %81 = arith.mulf %71, %24 : vector<2x32xf32>
    %82 = arith.addf %80, %81 : vector<2x32xf32>
    %c0_31 = arith.constant 0 : index
    %c0_32 = arith.constant 0 : index
    %83 = vector.load %arg17[%c0_31, %c0_32] : memref<16x32xf32, #tpu.memory_space<vmem>>, vector<2x32xf32>
    tpu.vector_store %arg17[%c0_31, %c0_32], %53 {strides = array<i32>} : memref<16x32xf32, #tpu.memory_space<vmem>>, vector<2x32xf32>,
    %c14 = arith.constant 14 : index
    %c0_33 = arith.constant 0 : index
    %84 = vector.load %arg18[%c14, %c0_33] : memref<16x32xf32, #tpu.memory_space<vmem>>, vector<2x32xf32>
    tpu.vector_store %arg18[%c14, %c0_33], %82 {strides = array<i32>} : memref<16x32xf32, #tpu.memory_space<vmem>>, vector<2x32xf32>,
    %85 = vector.extract_strided_slice %5 {offsets = [2, 0], sizes = [2, 96], strides = [1, 1]} : vector<16x96xf32> to vector<2x96xf32>
    %cst_34 = arith.constant dense<0.000000e+00> : vector<2x96xf32>
    %86 = tpu.matmul %53, %12, %cst_34 {dimension_numbers = #tpu.dot_dimension_numbers<[1], [0], [0], [1], [0, 0, 1, 1], [], []>} : vector<2x32xf32>, vector<32x96xf32>, vector<2x96xf32> -> vector<2x96xf32>
    %87 = vector.extract_strided_slice %85 {offsets = [0, 0], sizes = [2, 32], strides = [1, 1]} : vector<2x96xf32> to vector<2x32xf32>
    %88 = vector.extract_strided_slice %86 {offsets = [0, 0], sizes = [2, 32], strides = [1, 1]} : vector<2x96xf32> to vector<2x32xf32>
    %89 = arith.addf %87, %88 : vector<2x32xf32>
    %90 = arith.negf %89 : vector<2x32xf32>
    %91 = math.exp %90 : vector<2x32xf32>
    %cst_35 = arith.constant 1.000000e+00 : f32
    %92 = vector.broadcast %cst_35 : f32 to vector<2x32xf32>
    %93 = arith.addf %92, %91 : vector<2x32xf32>
    %94 = arith.divf %92, %93 : vector<2x32xf32>
    %95 = vector.extract_strided_slice %85 {offsets = [0, 32], sizes = [2, 32], strides = [1, 1]} : vector<2x96xf32> to vector<2x32xf32>
    %96 = vector.extract_strided_slice %86 {offsets = [0, 32], sizes = [2, 32], strides = [1, 1]} : vector<2x96xf32> to vector<2x32xf32>
    %97 = arith.addf %95, %96 : vector<2x32xf32>
    %98 = arith.negf %97 : vector<2x32xf32>
    %99 = math.exp %98 : vector<2x32xf32>
    %cst_36 = arith.constant 1.000000e+00 : f32
    %100 = vector.broadcast %cst_36 : f32 to vector<2x32xf32>
    %101 = arith.addf %100, %99 : vector<2x32xf32>
    %102 = arith.divf %100, %101 : vector<2x32xf32>
    %103 = vector.extract_strided_slice %85 {offsets = [0, 64], sizes = [2, 32], strides = [1, 1]} : vector<2x96xf32> to vector<2x32xf32>
    %104 = vector.extract_strided_slice %86 {offsets = [0, 64], sizes = [2, 32], strides = [1, 1]} : vector<2x96xf32> to vector<2x32xf32>
    %105 = arith.addf %104, %18 : vector<2x32xf32>
    %106 = arith.mulf %94, %105 : vector<2x32xf32>
    %107 = arith.addf %103, %106 : vector<2x32xf32>
    %108 = math.tanh %107 : vector<2x32xf32>
    %cst_37 = arith.constant 1.000000e+00 : f32
    %109 = vector.broadcast %cst_37 : f32 to vector<2x32xf32>
    %110 = arith.subf %109, %102 : vector<2x32xf32>
    %111 = arith.mulf %110, %108 : vector<2x32xf32>
    %112 = arith.mulf %102, %53 : vector<2x32xf32>
    %113 = arith.addf %111, %112 : vector<2x32xf32>
    %114 = vector.extract_strided_slice %10 {offsets = [12, 0], sizes = [2, 96], strides = [1, 1]} : vector<16x96xf32> to vector<2x96xf32>
    %cst_38 = arith.constant dense<0.000000e+00> : vector<2x96xf32>
    %115 = tpu.matmul %82, %14, %cst_38 {dimension_numbers = #tpu.dot_dimension_numbers<[1], [0], [0], [1], [0, 0, 1, 1], [], []>} : vector<2x32xf32>, vector<32x96xf32>, vector<2x96xf32> -> vector<2x96xf32>
    %116 = vector.extract_strided_slice %114 {offsets = [0, 0], sizes = [2, 32], strides = [1, 1]} : vector<2x96xf32> to vector<2x32xf32>
    %117 = vector.extract_strided_slice %115 {offsets = [0, 0], sizes = [2, 32], strides = [1, 1]} : vector<2x96xf32> to vector<2x32xf32>
    %118 = arith.addf %116, %117 : vector<2x32xf32>
    %119 = arith.negf %118 : vector<2x32xf32>
    %120 = math.exp %119 : vector<2x32xf32>
    %cst_39 = arith.constant 1.000000e+00 : f32
    %121 = vector.broadcast %cst_39 : f32 to vector<2x32xf32>
    %122 = arith.addf %121, %120 : vector<2x32xf32>
    %123 = arith.divf %121, %122 : vector<2x32xf32>
    %124 = vector.extract_strided_slice %114 {offsets = [0, 32], sizes = [2, 32], strides = [1, 1]} : vector<2x96xf32> to vector<2x32xf32>
    %125 = vector.extract_strided_slice %115 {offsets = [0, 32], sizes = [2, 32], strides = [1, 1]} : vector<2x96xf32> to vector<2x32xf32>
    %126 = arith.addf %124, %125 : vector<2x32xf32>
    %127 = arith.negf %126 : vector<2x32xf32>
    %128 = math.exp %127 : vector<2x32xf32>
    %cst_40 = arith.constant 1.000000e+00 : f32
    %129 = vector.broadcast %cst_40 : f32 to vector<2x32xf32>
    %130 = arith.addf %129, %128 : vector<2x32xf32>
    %131 = arith.divf %129, %130 : vector<2x32xf32>
    %132 = vector.extract_strided_slice %114 {offsets = [0, 64], sizes = [2, 32], strides = [1, 1]} : vector<2x96xf32> to vector<2x32xf32>
    %133 = vector.extract_strided_slice %115 {offsets = [0, 64], sizes = [2, 32], strides = [1, 1]} : vector<2x96xf32> to vector<2x32xf32>
    %134 = arith.addf %133, %22 : vector<2x32xf32>
    %135 = arith.mulf %123, %134 : vector<2x32xf32>
    %136 = arith.addf %132, %135 : vector<2x32xf32>
    %137 = math.tanh %136 : vector<2x32xf32>
    %cst_41 = arith.constant 1.000000e+00 : f32
    %138 = vector.broadcast %cst_41 : f32 to vector<2x32xf32>
    %139 = arith.subf %138, %131 : vector<2x32xf32>
    %140 = arith.mulf %139, %137 : vector<2x32xf32>
    %141 = arith.mulf %131, %82 : vector<2x32xf32>
    %142 = arith.addf %140, %141 : vector<2x32xf32>
    %c2 = arith.constant 2 : index
    %c0_42 = arith.constant 0 : index
    %143 = vector.load %arg17[%c2, %c0_42] : memref<16x32xf32, #tpu.memory_space<vmem>>, vector<2x32xf32>
    tpu.vector_store %arg17[%c2, %c0_42], %113 {strides = array<i32>} : memref<16x32xf32, #tpu.memory_space<vmem>>, vector<2x32xf32>,
    %c12 = arith.constant 12 : index
    %c0_43 = arith.constant 0 : index
    %144 = vector.load %arg18[%c12, %c0_43] : memref<16x32xf32, #tpu.memory_space<vmem>>, vector<2x32xf32>
    tpu.vector_store %arg18[%c12, %c0_43], %142 {strides = array<i32>} : memref<16x32xf32, #tpu.memory_space<vmem>>, vector<2x32xf32>,
    %145 = vector.extract_strided_slice %5 {offsets = [4, 0], sizes = [2, 96], strides = [1, 1]} : vector<16x96xf32> to vector<2x96xf32>
    %cst_44 = arith.constant dense<0.000000e+00> : vector<2x96xf32>
    %146 = tpu.matmul %113, %12, %cst_44 {dimension_numbers = #tpu.dot_dimension_numbers<[1], [0], [0], [1], [0, 0, 1, 1], [], []>} : vector<2x32xf32>, vector<32x96xf32>, vector<2x96xf32> -> vector<2x96xf32>
    %147 = vector.extract_strided_slice %145 {offsets = [0, 0], sizes = [2, 32], strides = [1, 1]} : vector<2x96xf32> to vector<2x32xf32>
    %148 = vector.extract_strided_slice %146 {offsets = [0, 0], sizes = [2, 32], strides = [1, 1]} : vector<2x96xf32> to vector<2x32xf32>
    %149 = arith.addf %147, %148 : vector<2x32xf32>
    %150 = arith.negf %149 : vector<2x32xf32>
    %151 = math.exp %150 : vector<2x32xf32>
    %cst_45 = arith.constant 1.000000e+00 : f32
    %152 = vector.broadcast %cst_45 : f32 to vector<2x32xf32>
    %153 = arith.addf %152, %151 : vector<2x32xf32>
    %154 = arith.divf %152, %153 : vector<2x32xf32>
    %155 = vector.extract_strided_slice %145 {offsets = [0, 32], sizes = [2, 32], strides = [1, 1]} : vector<2x96xf32> to vector<2x32xf32>
    %156 = vector.extract_strided_slice %146 {offsets = [0, 32], sizes = [2, 32], strides = [1, 1]} : vector<2x96xf32> to vector<2x32xf32>
    %157 = arith.addf %155, %156 : vector<2x32xf32>
    %158 = arith.negf %157 : vector<2x32xf32>
    %159 = math.exp %158 : vector<2x32xf32>
    %cst_46 = arith.constant 1.000000e+00 : f32
    %160 = vector.broadcast %cst_46 : f32 to vector<2x32xf32>
    %161 = arith.addf %160, %159 : vector<2x32xf32>
    %162 = arith.divf %160, %161 : vector<2x32xf32>
    %163 = vector.extract_strided_slice %145 {offsets = [0, 64], sizes = [2, 32], strides = [1, 1]} : vector<2x96xf32> to vector<2x32xf32>
    %164 = vector.extract_strided_slice %146 {offsets = [0, 64], sizes = [2, 32], strides = [1, 1]} : vector<2x96xf32> to vector<2x32xf32>
    %165 = arith.addf %164, %18 : vector<2x32xf32>
    %166 = arith.mulf %154, %165 : vector<2x32xf32>
    %167 = arith.addf %163, %166 : vector<2x32xf32>
    %168 = math.tanh %167 : vector<2x32xf32>
    %cst_47 = arith.constant 1.000000e+00 : f32
    %169 = vector.broadcast %cst_47 : f32 to vector<2x32xf32>
    %170 = arith.subf %169, %162 : vector<2x32xf32>
    %171 = arith.mulf %170, %168 : vector<2x32xf32>
    %172 = arith.mulf %162, %113 : vector<2x32xf32>
    %173 = arith.addf %171, %172 : vector<2x32xf32>
    %174 = vector.extract_strided_slice %10 {offsets = [10, 0], sizes = [2, 96], strides = [1, 1]} : vector<16x96xf32> to vector<2x96xf32>
    %cst_48 = arith.constant dense<0.000000e+00> : vector<2x96xf32>
    %175 = tpu.matmul %142, %14, %cst_48 {dimension_numbers = #tpu.dot_dimension_numbers<[1], [0], [0], [1], [0, 0, 1, 1], [], []>} : vector<2x32xf32>, vector<32x96xf32>, vector<2x96xf32> -> vector<2x96xf32>
    %176 = vector.extract_strided_slice %174 {offsets = [0, 0], sizes = [2, 32], strides = [1, 1]} : vector<2x96xf32> to vector<2x32xf32>
    %177 = vector.extract_strided_slice %175 {offsets = [0, 0], sizes = [2, 32], strides = [1, 1]} : vector<2x96xf32> to vector<2x32xf32>
    %178 = arith.addf %176, %177 : vector<2x32xf32>
    %179 = arith.negf %178 : vector<2x32xf32>
    %180 = math.exp %179 : vector<2x32xf32>
    %cst_49 = arith.constant 1.000000e+00 : f32
    %181 = vector.broadcast %cst_49 : f32 to vector<2x32xf32>
    %182 = arith.addf %181, %180 : vector<2x32xf32>
    %183 = arith.divf %181, %182 : vector<2x32xf32>
    %184 = vector.extract_strided_slice %174 {offsets = [0, 32], sizes = [2, 32], strides = [1, 1]} : vector<2x96xf32> to vector<2x32xf32>
    %185 = vector.extract_strided_slice %175 {offsets = [0, 32], sizes = [2, 32], strides = [1, 1]} : vector<2x96xf32> to vector<2x32xf32>
    %186 = arith.addf %184, %185 : vector<2x32xf32>
    %187 = arith.negf %186 : vector<2x32xf32>
    %188 = math.exp %187 : vector<2x32xf32>
    %cst_50 = arith.constant 1.000000e+00 : f32
    %189 = vector.broadcast %cst_50 : f32 to vector<2x32xf32>
    %190 = arith.addf %189, %188 : vector<2x32xf32>
    %191 = arith.divf %189, %190 : vector<2x32xf32>
    %192 = vector.extract_strided_slice %174 {offsets = [0, 64], sizes = [2, 32], strides = [1, 1]} : vector<2x96xf32> to vector<2x32xf32>
    %193 = vector.extract_strided_slice %175 {offsets = [0, 64], sizes = [2, 32], strides = [1, 1]} : vector<2x96xf32> to vector<2x32xf32>
    %194 = arith.addf %193, %22 : vector<2x32xf32>
    %195 = arith.mulf %183, %194 : vector<2x32xf32>
    %196 = arith.addf %192, %195 : vector<2x32xf32>
    %197 = math.tanh %196 : vector<2x32xf32>
    %cst_51 = arith.constant 1.000000e+00 : f32
    %198 = vector.broadcast %cst_51 : f32 to vector<2x32xf32>
    %199 = arith.subf %198, %191 : vector<2x32xf32>
    %200 = arith.mulf %199, %197 : vector<2x32xf32>
    %201 = arith.mulf %191, %142 : vector<2x32xf32>
    %202 = arith.addf %200, %201 : vector<2x32xf32>
    %c4 = arith.constant 4 : index
    %c0_52 = arith.constant 0 : index
    %203 = vector.load %arg17[%c4, %c0_52] : memref<16x32xf32, #tpu.memory_space<vmem>>, vector<2x32xf32>
    tpu.vector_store %arg17[%c4, %c0_52], %173 {strides = array<i32>} : memref<16x32xf32, #tpu.memory_space<vmem>>, vector<2x32xf32>,
    %c10 = arith.constant 10 : index
    %c0_53 = arith.constant 0 : index
    %204 = vector.load %arg18[%c10, %c0_53] : memref<16x32xf32, #tpu.memory_space<vmem>>, vector<2x32xf32>
    tpu.vector_store %arg18[%c10, %c0_53], %202 {strides = array<i32>} : memref<16x32xf32, #tpu.memory_space<vmem>>, vector<2x32xf32>,
    %205 = vector.extract_strided_slice %5 {offsets = [6, 0], sizes = [2, 96], strides = [1, 1]} : vector<16x96xf32> to vector<2x96xf32>
    %cst_54 = arith.constant dense<0.000000e+00> : vector<2x96xf32>
    %206 = tpu.matmul %173, %12, %cst_54 {dimension_numbers = #tpu.dot_dimension_numbers<[1], [0], [0], [1], [0, 0, 1, 1], [], []>} : vector<2x32xf32>, vector<32x96xf32>, vector<2x96xf32> -> vector<2x96xf32>
    %207 = vector.extract_strided_slice %205 {offsets = [0, 0], sizes = [2, 32], strides = [1, 1]} : vector<2x96xf32> to vector<2x32xf32>
    %208 = vector.extract_strided_slice %206 {offsets = [0, 0], sizes = [2, 32], strides = [1, 1]} : vector<2x96xf32> to vector<2x32xf32>
    %209 = arith.addf %207, %208 : vector<2x32xf32>
    %210 = arith.negf %209 : vector<2x32xf32>
    %211 = math.exp %210 : vector<2x32xf32>
    %cst_55 = arith.constant 1.000000e+00 : f32
    %212 = vector.broadcast %cst_55 : f32 to vector<2x32xf32>
    %213 = arith.addf %212, %211 : vector<2x32xf32>
    %214 = arith.divf %212, %213 : vector<2x32xf32>
    %215 = vector.extract_strided_slice %205 {offsets = [0, 32], sizes = [2, 32], strides = [1, 1]} : vector<2x96xf32> to vector<2x32xf32>
    %216 = vector.extract_strided_slice %206 {offsets = [0, 32], sizes = [2, 32], strides = [1, 1]} : vector<2x96xf32> to vector<2x32xf32>
    %217 = arith.addf %215, %216 : vector<2x32xf32>
    %218 = arith.negf %217 : vector<2x32xf32>
    %219 = math.exp %218 : vector<2x32xf32>
    %cst_56 = arith.constant 1.000000e+00 : f32
    %220 = vector.broadcast %cst_56 : f32 to vector<2x32xf32>
    %221 = arith.addf %220, %219 : vector<2x32xf32>
    %222 = arith.divf %220, %221 : vector<2x32xf32>
    %223 = vector.extract_strided_slice %205 {offsets = [0, 64], sizes = [2, 32], strides = [1, 1]} : vector<2x96xf32> to vector<2x32xf32>
    %224 = vector.extract_strided_slice %206 {offsets = [0, 64], sizes = [2, 32], strides = [1, 1]} : vector<2x96xf32> to vector<2x32xf32>
    %225 = arith.addf %224, %18 : vector<2x32xf32>
    %226 = arith.mulf %214, %225 : vector<2x32xf32>
    %227 = arith.addf %223, %226 : vector<2x32xf32>
    %228 = math.tanh %227 : vector<2x32xf32>
    %cst_57 = arith.constant 1.000000e+00 : f32
    %229 = vector.broadcast %cst_57 : f32 to vector<2x32xf32>
    %230 = arith.subf %229, %222 : vector<2x32xf32>
    %231 = arith.mulf %230, %228 : vector<2x32xf32>
    %232 = arith.mulf %222, %173 : vector<2x32xf32>
    %233 = arith.addf %231, %232 : vector<2x32xf32>
    %234 = vector.extract_strided_slice %10 {offsets = [8, 0], sizes = [2, 96], strides = [1, 1]} : vector<16x96xf32> to vector<2x96xf32>
    %cst_58 = arith.constant dense<0.000000e+00> : vector<2x96xf32>
    %235 = tpu.matmul %202, %14, %cst_58 {dimension_numbers = #tpu.dot_dimension_numbers<[1], [0], [0], [1], [0, 0, 1, 1], [], []>} : vector<2x32xf32>, vector<32x96xf32>, vector<2x96xf32> -> vector<2x96xf32>
    %236 = vector.extract_strided_slice %234 {offsets = [0, 0], sizes = [2, 32], strides = [1, 1]} : vector<2x96xf32> to vector<2x32xf32>
    %237 = vector.extract_strided_slice %235 {offsets = [0, 0], sizes = [2, 32], strides = [1, 1]} : vector<2x96xf32> to vector<2x32xf32>
    %238 = arith.addf %236, %237 : vector<2x32xf32>
    %239 = arith.negf %238 : vector<2x32xf32>
    %240 = math.exp %239 : vector<2x32xf32>
    %cst_59 = arith.constant 1.000000e+00 : f32
    %241 = vector.broadcast %cst_59 : f32 to vector<2x32xf32>
    %242 = arith.addf %241, %240 : vector<2x32xf32>
    %243 = arith.divf %241, %242 : vector<2x32xf32>
    %244 = vector.extract_strided_slice %234 {offsets = [0, 32], sizes = [2, 32], strides = [1, 1]} : vector<2x96xf32> to vector<2x32xf32>
    %245 = vector.extract_strided_slice %235 {offsets = [0, 32], sizes = [2, 32], strides = [1, 1]} : vector<2x96xf32> to vector<2x32xf32>
    %246 = arith.addf %244, %245 : vector<2x32xf32>
    %247 = arith.negf %246 : vector<2x32xf32>
    %248 = math.exp %247 : vector<2x32xf32>
    %cst_60 = arith.constant 1.000000e+00 : f32
    %249 = vector.broadcast %cst_60 : f32 to vector<2x32xf32>
    %250 = arith.addf %249, %248 : vector<2x32xf32>
    %251 = arith.divf %249, %250 : vector<2x32xf32>
    %252 = vector.extract_strided_slice %234 {offsets = [0, 64], sizes = [2, 32], strides = [1, 1]} : vector<2x96xf32> to vector<2x32xf32>
    %253 = vector.extract_strided_slice %235 {offsets = [0, 64], sizes = [2, 32], strides = [1, 1]} : vector<2x96xf32> to vector<2x32xf32>
    %254 = arith.addf %253, %22 : vector<2x32xf32>
    %255 = arith.mulf %243, %254 : vector<2x32xf32>
    %256 = arith.addf %252, %255 : vector<2x32xf32>
    %257 = math.tanh %256 : vector<2x32xf32>
    %cst_61 = arith.constant 1.000000e+00 : f32
    %258 = vector.broadcast %cst_61 : f32 to vector<2x32xf32>
    %259 = arith.subf %258, %251 : vector<2x32xf32>
    %260 = arith.mulf %259, %257 : vector<2x32xf32>
    %261 = arith.mulf %251, %202 : vector<2x32xf32>
    %262 = arith.addf %260, %261 : vector<2x32xf32>
    %c6 = arith.constant 6 : index
    %c0_62 = arith.constant 0 : index
    %263 = vector.load %arg17[%c6, %c0_62] : memref<16x32xf32, #tpu.memory_space<vmem>>, vector<2x32xf32>
    tpu.vector_store %arg17[%c6, %c0_62], %233 {strides = array<i32>} : memref<16x32xf32, #tpu.memory_space<vmem>>, vector<2x32xf32>,
    %c8 = arith.constant 8 : index
    %c0_63 = arith.constant 0 : index
    %264 = vector.load %arg18[%c8, %c0_63] : memref<16x32xf32, #tpu.memory_space<vmem>>, vector<2x32xf32>
    tpu.vector_store %arg18[%c8, %c0_63], %262 {strides = array<i32>} : memref<16x32xf32, #tpu.memory_space<vmem>>, vector<2x32xf32>,
    %265 = vector.extract_strided_slice %5 {offsets = [8, 0], sizes = [2, 96], strides = [1, 1]} : vector<16x96xf32> to vector<2x96xf32>
    %cst_64 = arith.constant dense<0.000000e+00> : vector<2x96xf32>
    %266 = tpu.matmul %233, %12, %cst_64 {dimension_numbers = #tpu.dot_dimension_numbers<[1], [0], [0], [1], [0, 0, 1, 1], [], []>} : vector<2x32xf32>, vector<32x96xf32>, vector<2x96xf32> -> vector<2x96xf32>
    %267 = vector.extract_strided_slice %265 {offsets = [0, 0], sizes = [2, 32], strides = [1, 1]} : vector<2x96xf32> to vector<2x32xf32>
    %268 = vector.extract_strided_slice %266 {offsets = [0, 0], sizes = [2, 32], strides = [1, 1]} : vector<2x96xf32> to vector<2x32xf32>
    %269 = arith.addf %267, %268 : vector<2x32xf32>
    %270 = arith.negf %269 : vector<2x32xf32>
    %271 = math.exp %270 : vector<2x32xf32>
    %cst_65 = arith.constant 1.000000e+00 : f32
    %272 = vector.broadcast %cst_65 : f32 to vector<2x32xf32>
    %273 = arith.addf %272, %271 : vector<2x32xf32>
    %274 = arith.divf %272, %273 : vector<2x32xf32>
    %275 = vector.extract_strided_slice %265 {offsets = [0, 32], sizes = [2, 32], strides = [1, 1]} : vector<2x96xf32> to vector<2x32xf32>
    %276 = vector.extract_strided_slice %266 {offsets = [0, 32], sizes = [2, 32], strides = [1, 1]} : vector<2x96xf32> to vector<2x32xf32>
    %277 = arith.addf %275, %276 : vector<2x32xf32>
    %278 = arith.negf %277 : vector<2x32xf32>
    %279 = math.exp %278 : vector<2x32xf32>
    %cst_66 = arith.constant 1.000000e+00 : f32
    %280 = vector.broadcast %cst_66 : f32 to vector<2x32xf32>
    %281 = arith.addf %280, %279 : vector<2x32xf32>
    %282 = arith.divf %280, %281 : vector<2x32xf32>
    %283 = vector.extract_strided_slice %265 {offsets = [0, 64], sizes = [2, 32], strides = [1, 1]} : vector<2x96xf32> to vector<2x32xf32>
    %284 = vector.extract_strided_slice %266 {offsets = [0, 64], sizes = [2, 32], strides = [1, 1]} : vector<2x96xf32> to vector<2x32xf32>
    %285 = arith.addf %284, %18 : vector<2x32xf32>
    %286 = arith.mulf %274, %285 : vector<2x32xf32>
    %287 = arith.addf %283, %286 : vector<2x32xf32>
    %288 = math.tanh %287 : vector<2x32xf32>
    %cst_67 = arith.constant 1.000000e+00 : f32
    %289 = vector.broadcast %cst_67 : f32 to vector<2x32xf32>
    %290 = arith.subf %289, %282 : vector<2x32xf32>
    %291 = arith.mulf %290, %288 : vector<2x32xf32>
    %292 = arith.mulf %282, %233 : vector<2x32xf32>
    %293 = arith.addf %291, %292 : vector<2x32xf32>
    %294 = vector.extract_strided_slice %10 {offsets = [6, 0], sizes = [2, 96], strides = [1, 1]} : vector<16x96xf32> to vector<2x96xf32>
    %cst_68 = arith.constant dense<0.000000e+00> : vector<2x96xf32>
    %295 = tpu.matmul %262, %14, %cst_68 {dimension_numbers = #tpu.dot_dimension_numbers<[1], [0], [0], [1], [0, 0, 1, 1], [], []>} : vector<2x32xf32>, vector<32x96xf32>, vector<2x96xf32> -> vector<2x96xf32>
    %296 = vector.extract_strided_slice %294 {offsets = [0, 0], sizes = [2, 32], strides = [1, 1]} : vector<2x96xf32> to vector<2x32xf32>
    %297 = vector.extract_strided_slice %295 {offsets = [0, 0], sizes = [2, 32], strides = [1, 1]} : vector<2x96xf32> to vector<2x32xf32>
    %298 = arith.addf %296, %297 : vector<2x32xf32>
    %299 = arith.negf %298 : vector<2x32xf32>
    %300 = math.exp %299 : vector<2x32xf32>
    %cst_69 = arith.constant 1.000000e+00 : f32
    %301 = vector.broadcast %cst_69 : f32 to vector<2x32xf32>
    %302 = arith.addf %301, %300 : vector<2x32xf32>
    %303 = arith.divf %301, %302 : vector<2x32xf32>
    %304 = vector.extract_strided_slice %294 {offsets = [0, 32], sizes = [2, 32], strides = [1, 1]} : vector<2x96xf32> to vector<2x32xf32>
    %305 = vector.extract_strided_slice %295 {offsets = [0, 32], sizes = [2, 32], strides = [1, 1]} : vector<2x96xf32> to vector<2x32xf32>
    %306 = arith.addf %304, %305 : vector<2x32xf32>
    %307 = arith.negf %306 : vector<2x32xf32>
    %308 = math.exp %307 : vector<2x32xf32>
    %cst_70 = arith.constant 1.000000e+00 : f32
    %309 = vector.broadcast %cst_70 : f32 to vector<2x32xf32>
    %310 = arith.addf %309, %308 : vector<2x32xf32>
    %311 = arith.divf %309, %310 : vector<2x32xf32>
    %312 = vector.extract_strided_slice %294 {offsets = [0, 64], sizes = [2, 32], strides = [1, 1]} : vector<2x96xf32> to vector<2x32xf32>
    %313 = vector.extract_strided_slice %295 {offsets = [0, 64], sizes = [2, 32], strides = [1, 1]} : vector<2x96xf32> to vector<2x32xf32>
    %314 = arith.addf %313, %22 : vector<2x32xf32>
    %315 = arith.mulf %303, %314 : vector<2x32xf32>
    %316 = arith.addf %312, %315 : vector<2x32xf32>
    %317 = math.tanh %316 : vector<2x32xf32>
    %cst_71 = arith.constant 1.000000e+00 : f32
    %318 = vector.broadcast %cst_71 : f32 to vector<2x32xf32>
    %319 = arith.subf %318, %311 : vector<2x32xf32>
    %320 = arith.mulf %319, %317 : vector<2x32xf32>
    %321 = arith.mulf %311, %262 : vector<2x32xf32>
    %322 = arith.addf %320, %321 : vector<2x32xf32>
    %c8_72 = arith.constant 8 : index
    %c0_73 = arith.constant 0 : index
    %323 = vector.load %arg17[%c8_72, %c0_73] : memref<16x32xf32, #tpu.memory_space<vmem>>, vector<2x32xf32>
    tpu.vector_store %arg17[%c8_72, %c0_73], %293 {strides = array<i32>} : memref<16x32xf32, #tpu.memory_space<vmem>>, vector<2x32xf32>,
    %c6_74 = arith.constant 6 : index
    %c0_75 = arith.constant 0 : index
    %324 = vector.load %arg18[%c6_74, %c0_75] : memref<16x32xf32, #tpu.memory_space<vmem>>, vector<2x32xf32>
    tpu.vector_store %arg18[%c6_74, %c0_75], %322 {strides = array<i32>} : memref<16x32xf32, #tpu.memory_space<vmem>>, vector<2x32xf32>,
    %325 = vector.extract_strided_slice %5 {offsets = [10, 0], sizes = [2, 96], strides = [1, 1]} : vector<16x96xf32> to vector<2x96xf32>
    %cst_76 = arith.constant dense<0.000000e+00> : vector<2x96xf32>
    %326 = tpu.matmul %293, %12, %cst_76 {dimension_numbers = #tpu.dot_dimension_numbers<[1], [0], [0], [1], [0, 0, 1, 1], [], []>} : vector<2x32xf32>, vector<32x96xf32>, vector<2x96xf32> -> vector<2x96xf32>
    %327 = vector.extract_strided_slice %325 {offsets = [0, 0], sizes = [2, 32], strides = [1, 1]} : vector<2x96xf32> to vector<2x32xf32>
    %328 = vector.extract_strided_slice %326 {offsets = [0, 0], sizes = [2, 32], strides = [1, 1]} : vector<2x96xf32> to vector<2x32xf32>
    %329 = arith.addf %327, %328 : vector<2x32xf32>
    %330 = arith.negf %329 : vector<2x32xf32>
    %331 = math.exp %330 : vector<2x32xf32>
    %cst_77 = arith.constant 1.000000e+00 : f32
    %332 = vector.broadcast %cst_77 : f32 to vector<2x32xf32>
    %333 = arith.addf %332, %331 : vector<2x32xf32>
    %334 = arith.divf %332, %333 : vector<2x32xf32>
    %335 = vector.extract_strided_slice %325 {offsets = [0, 32], sizes = [2, 32], strides = [1, 1]} : vector<2x96xf32> to vector<2x32xf32>
    %336 = vector.extract_strided_slice %326 {offsets = [0, 32], sizes = [2, 32], strides = [1, 1]} : vector<2x96xf32> to vector<2x32xf32>
    %337 = arith.addf %335, %336 : vector<2x32xf32>
    %338 = arith.negf %337 : vector<2x32xf32>
    %339 = math.exp %338 : vector<2x32xf32>
    %cst_78 = arith.constant 1.000000e+00 : f32
    %340 = vector.broadcast %cst_78 : f32 to vector<2x32xf32>
    %341 = arith.addf %340, %339 : vector<2x32xf32>
    %342 = arith.divf %340, %341 : vector<2x32xf32>
    %343 = vector.extract_strided_slice %325 {offsets = [0, 64], sizes = [2, 32], strides = [1, 1]} : vector<2x96xf32> to vector<2x32xf32>
    %344 = vector.extract_strided_slice %326 {offsets = [0, 64], sizes = [2, 32], strides = [1, 1]} : vector<2x96xf32> to vector<2x32xf32>
    %345 = arith.addf %344, %18 : vector<2x32xf32>
    %346 = arith.mulf %334, %345 : vector<2x32xf32>
    %347 = arith.addf %343, %346 : vector<2x32xf32>
    %348 = math.tanh %347 : vector<2x32xf32>
    %cst_79 = arith.constant 1.000000e+00 : f32
    %349 = vector.broadcast %cst_79 : f32 to vector<2x32xf32>
    %350 = arith.subf %349, %342 : vector<2x32xf32>
    %351 = arith.mulf %350, %348 : vector<2x32xf32>
    %352 = arith.mulf %342, %293 : vector<2x32xf32>
    %353 = arith.addf %351, %352 : vector<2x32xf32>
    %354 = vector.extract_strided_slice %10 {offsets = [4, 0], sizes = [2, 96], strides = [1, 1]} : vector<16x96xf32> to vector<2x96xf32>
    %cst_80 = arith.constant dense<0.000000e+00> : vector<2x96xf32>
    %355 = tpu.matmul %322, %14, %cst_80 {dimension_numbers = #tpu.dot_dimension_numbers<[1], [0], [0], [1], [0, 0, 1, 1], [], []>} : vector<2x32xf32>, vector<32x96xf32>, vector<2x96xf32> -> vector<2x96xf32>
    %356 = vector.extract_strided_slice %354 {offsets = [0, 0], sizes = [2, 32], strides = [1, 1]} : vector<2x96xf32> to vector<2x32xf32>
    %357 = vector.extract_strided_slice %355 {offsets = [0, 0], sizes = [2, 32], strides = [1, 1]} : vector<2x96xf32> to vector<2x32xf32>
    %358 = arith.addf %356, %357 : vector<2x32xf32>
    %359 = arith.negf %358 : vector<2x32xf32>
    %360 = math.exp %359 : vector<2x32xf32>
    %cst_81 = arith.constant 1.000000e+00 : f32
    %361 = vector.broadcast %cst_81 : f32 to vector<2x32xf32>
    %362 = arith.addf %361, %360 : vector<2x32xf32>
    %363 = arith.divf %361, %362 : vector<2x32xf32>
    %364 = vector.extract_strided_slice %354 {offsets = [0, 32], sizes = [2, 32], strides = [1, 1]} : vector<2x96xf32> to vector<2x32xf32>
    %365 = vector.extract_strided_slice %355 {offsets = [0, 32], sizes = [2, 32], strides = [1, 1]} : vector<2x96xf32> to vector<2x32xf32>
    %366 = arith.addf %364, %365 : vector<2x32xf32>
    %367 = arith.negf %366 : vector<2x32xf32>
    %368 = math.exp %367 : vector<2x32xf32>
    %cst_82 = arith.constant 1.000000e+00 : f32
    %369 = vector.broadcast %cst_82 : f32 to vector<2x32xf32>
    %370 = arith.addf %369, %368 : vector<2x32xf32>
    %371 = arith.divf %369, %370 : vector<2x32xf32>
    %372 = vector.extract_strided_slice %354 {offsets = [0, 64], sizes = [2, 32], strides = [1, 1]} : vector<2x96xf32> to vector<2x32xf32>
    %373 = vector.extract_strided_slice %355 {offsets = [0, 64], sizes = [2, 32], strides = [1, 1]} : vector<2x96xf32> to vector<2x32xf32>
    %374 = arith.addf %373, %22 : vector<2x32xf32>
    %375 = arith.mulf %363, %374 : vector<2x32xf32>
    %376 = arith.addf %372, %375 : vector<2x32xf32>
    %377 = math.tanh %376 : vector<2x32xf32>
    %cst_83 = arith.constant 1.000000e+00 : f32
    %378 = vector.broadcast %cst_83 : f32 to vector<2x32xf32>
    %379 = arith.subf %378, %371 : vector<2x32xf32>
    %380 = arith.mulf %379, %377 : vector<2x32xf32>
    %381 = arith.mulf %371, %322 : vector<2x32xf32>
    %382 = arith.addf %380, %381 : vector<2x32xf32>
    %c10_84 = arith.constant 10 : index
    %c0_85 = arith.constant 0 : index
    %383 = vector.load %arg17[%c10_84, %c0_85] : memref<16x32xf32, #tpu.memory_space<vmem>>, vector<2x32xf32>
    tpu.vector_store %arg17[%c10_84, %c0_85], %353 {strides = array<i32>} : memref<16x32xf32, #tpu.memory_space<vmem>>, vector<2x32xf32>,
    %c4_86 = arith.constant 4 : index
    %c0_87 = arith.constant 0 : index
    %384 = vector.load %arg18[%c4_86, %c0_87] : memref<16x32xf32, #tpu.memory_space<vmem>>, vector<2x32xf32>
    tpu.vector_store %arg18[%c4_86, %c0_87], %382 {strides = array<i32>} : memref<16x32xf32, #tpu.memory_space<vmem>>, vector<2x32xf32>,
    %385 = vector.extract_strided_slice %5 {offsets = [12, 0], sizes = [2, 96], strides = [1, 1]} : vector<16x96xf32> to vector<2x96xf32>
    %cst_88 = arith.constant dense<0.000000e+00> : vector<2x96xf32>
    %386 = tpu.matmul %353, %12, %cst_88 {dimension_numbers = #tpu.dot_dimension_numbers<[1], [0], [0], [1], [0, 0, 1, 1], [], []>} : vector<2x32xf32>, vector<32x96xf32>, vector<2x96xf32> -> vector<2x96xf32>
    %387 = vector.extract_strided_slice %385 {offsets = [0, 0], sizes = [2, 32], strides = [1, 1]} : vector<2x96xf32> to vector<2x32xf32>
    %388 = vector.extract_strided_slice %386 {offsets = [0, 0], sizes = [2, 32], strides = [1, 1]} : vector<2x96xf32> to vector<2x32xf32>
    %389 = arith.addf %387, %388 : vector<2x32xf32>
    %390 = arith.negf %389 : vector<2x32xf32>
    %391 = math.exp %390 : vector<2x32xf32>
    %cst_89 = arith.constant 1.000000e+00 : f32
    %392 = vector.broadcast %cst_89 : f32 to vector<2x32xf32>
    %393 = arith.addf %392, %391 : vector<2x32xf32>
    %394 = arith.divf %392, %393 : vector<2x32xf32>
    %395 = vector.extract_strided_slice %385 {offsets = [0, 32], sizes = [2, 32], strides = [1, 1]} : vector<2x96xf32> to vector<2x32xf32>
    %396 = vector.extract_strided_slice %386 {offsets = [0, 32], sizes = [2, 32], strides = [1, 1]} : vector<2x96xf32> to vector<2x32xf32>
    %397 = arith.addf %395, %396 : vector<2x32xf32>
    %398 = arith.negf %397 : vector<2x32xf32>
    %399 = math.exp %398 : vector<2x32xf32>
    %cst_90 = arith.constant 1.000000e+00 : f32
    %400 = vector.broadcast %cst_90 : f32 to vector<2x32xf32>
    %401 = arith.addf %400, %399 : vector<2x32xf32>
    %402 = arith.divf %400, %401 : vector<2x32xf32>
    %403 = vector.extract_strided_slice %385 {offsets = [0, 64], sizes = [2, 32], strides = [1, 1]} : vector<2x96xf32> to vector<2x32xf32>
    %404 = vector.extract_strided_slice %386 {offsets = [0, 64], sizes = [2, 32], strides = [1, 1]} : vector<2x96xf32> to vector<2x32xf32>
    %405 = arith.addf %404, %18 : vector<2x32xf32>
    %406 = arith.mulf %394, %405 : vector<2x32xf32>
    %407 = arith.addf %403, %406 : vector<2x32xf32>
    %408 = math.tanh %407 : vector<2x32xf32>
    %cst_91 = arith.constant 1.000000e+00 : f32
    %409 = vector.broadcast %cst_91 : f32 to vector<2x32xf32>
    %410 = arith.subf %409, %402 : vector<2x32xf32>
    %411 = arith.mulf %410, %408 : vector<2x32xf32>
    %412 = arith.mulf %402, %353 : vector<2x32xf32>
    %413 = arith.addf %411, %412 : vector<2x32xf32>
    %414 = vector.extract_strided_slice %10 {offsets = [2, 0], sizes = [2, 96], strides = [1, 1]} : vector<16x96xf32> to vector<2x96xf32>
    %cst_92 = arith.constant dense<0.000000e+00> : vector<2x96xf32>
    %415 = tpu.matmul %382, %14, %cst_92 {dimension_numbers = #tpu.dot_dimension_numbers<[1], [0], [0], [1], [0, 0, 1, 1], [], []>} : vector<2x32xf32>, vector<32x96xf32>, vector<2x96xf32> -> vector<2x96xf32>
    %416 = vector.extract_strided_slice %414 {offsets = [0, 0], sizes = [2, 32], strides = [1, 1]} : vector<2x96xf32> to vector<2x32xf32>
    %417 = vector.extract_strided_slice %415 {offsets = [0, 0], sizes = [2, 32], strides = [1, 1]} : vector<2x96xf32> to vector<2x32xf32>
    %418 = arith.addf %416, %417 : vector<2x32xf32>
    %419 = arith.negf %418 : vector<2x32xf32>
    %420 = math.exp %419 : vector<2x32xf32>
    %cst_93 = arith.constant 1.000000e+00 : f32
    %421 = vector.broadcast %cst_93 : f32 to vector<2x32xf32>
    %422 = arith.addf %421, %420 : vector<2x32xf32>
    %423 = arith.divf %421, %422 : vector<2x32xf32>
    %424 = vector.extract_strided_slice %414 {offsets = [0, 32], sizes = [2, 32], strides = [1, 1]} : vector<2x96xf32> to vector<2x32xf32>
    %425 = vector.extract_strided_slice %415 {offsets = [0, 32], sizes = [2, 32], strides = [1, 1]} : vector<2x96xf32> to vector<2x32xf32>
    %426 = arith.addf %424, %425 : vector<2x32xf32>
    %427 = arith.negf %426 : vector<2x32xf32>
    %428 = math.exp %427 : vector<2x32xf32>
    %cst_94 = arith.constant 1.000000e+00 : f32
    %429 = vector.broadcast %cst_94 : f32 to vector<2x32xf32>
    %430 = arith.addf %429, %428 : vector<2x32xf32>
    %431 = arith.divf %429, %430 : vector<2x32xf32>
    %432 = vector.extract_strided_slice %414 {offsets = [0, 64], sizes = [2, 32], strides = [1, 1]} : vector<2x96xf32> to vector<2x32xf32>
    %433 = vector.extract_strided_slice %415 {offsets = [0, 64], sizes = [2, 32], strides = [1, 1]} : vector<2x96xf32> to vector<2x32xf32>
    %434 = arith.addf %433, %22 : vector<2x32xf32>
    %435 = arith.mulf %423, %434 : vector<2x32xf32>
    %436 = arith.addf %432, %435 : vector<2x32xf32>
    %437 = math.tanh %436 : vector<2x32xf32>
    %cst_95 = arith.constant 1.000000e+00 : f32
    %438 = vector.broadcast %cst_95 : f32 to vector<2x32xf32>
    %439 = arith.subf %438, %431 : vector<2x32xf32>
    %440 = arith.mulf %439, %437 : vector<2x32xf32>
    %441 = arith.mulf %431, %382 : vector<2x32xf32>
    %442 = arith.addf %440, %441 : vector<2x32xf32>
    %c12_96 = arith.constant 12 : index
    %c0_97 = arith.constant 0 : index
    %443 = vector.load %arg17[%c12_96, %c0_97] : memref<16x32xf32, #tpu.memory_space<vmem>>, vector<2x32xf32>
    tpu.vector_store %arg17[%c12_96, %c0_97], %413 {strides = array<i32>} : memref<16x32xf32, #tpu.memory_space<vmem>>, vector<2x32xf32>,
    %c2_98 = arith.constant 2 : index
    %c0_99 = arith.constant 0 : index
    %444 = vector.load %arg18[%c2_98, %c0_99] : memref<16x32xf32, #tpu.memory_space<vmem>>, vector<2x32xf32>
    tpu.vector_store %arg18[%c2_98, %c0_99], %442 {strides = array<i32>} : memref<16x32xf32, #tpu.memory_space<vmem>>, vector<2x32xf32>,
    %445 = vector.extract_strided_slice %5 {offsets = [14, 0], sizes = [2, 96], strides = [1, 1]} : vector<16x96xf32> to vector<2x96xf32>
    %cst_100 = arith.constant dense<0.000000e+00> : vector<2x96xf32>
    %446 = tpu.matmul %413, %12, %cst_100 {dimension_numbers = #tpu.dot_dimension_numbers<[1], [0], [0], [1], [0, 0, 1, 1], [], []>} : vector<2x32xf32>, vector<32x96xf32>, vector<2x96xf32> -> vector<2x96xf32>
    %447 = vector.extract_strided_slice %445 {offsets = [0, 0], sizes = [2, 32], strides = [1, 1]} : vector<2x96xf32> to vector<2x32xf32>
    %448 = vector.extract_strided_slice %446 {offsets = [0, 0], sizes = [2, 32], strides = [1, 1]} : vector<2x96xf32> to vector<2x32xf32>
    %449 = arith.addf %447, %448 : vector<2x32xf32>
    %450 = arith.negf %449 : vector<2x32xf32>
    %451 = math.exp %450 : vector<2x32xf32>
    %cst_101 = arith.constant 1.000000e+00 : f32
    %452 = vector.broadcast %cst_101 : f32 to vector<2x32xf32>
    %453 = arith.addf %452, %451 : vector<2x32xf32>
    %454 = arith.divf %452, %453 : vector<2x32xf32>
    %455 = vector.extract_strided_slice %445 {offsets = [0, 32], sizes = [2, 32], strides = [1, 1]} : vector<2x96xf32> to vector<2x32xf32>
    %456 = vector.extract_strided_slice %446 {offsets = [0, 32], sizes = [2, 32], strides = [1, 1]} : vector<2x96xf32> to vector<2x32xf32>
    %457 = arith.addf %455, %456 : vector<2x32xf32>
    %458 = arith.negf %457 : vector<2x32xf32>
    %459 = math.exp %458 : vector<2x32xf32>
    %cst_102 = arith.constant 1.000000e+00 : f32
    %460 = vector.broadcast %cst_102 : f32 to vector<2x32xf32>
    %461 = arith.addf %460, %459 : vector<2x32xf32>
    %462 = arith.divf %460, %461 : vector<2x32xf32>
    %463 = vector.extract_strided_slice %445 {offsets = [0, 64], sizes = [2, 32], strides = [1, 1]} : vector<2x96xf32> to vector<2x32xf32>
    %464 = vector.extract_strided_slice %446 {offsets = [0, 64], sizes = [2, 32], strides = [1, 1]} : vector<2x96xf32> to vector<2x32xf32>
    %465 = arith.addf %464, %18 : vector<2x32xf32>
    %466 = arith.mulf %454, %465 : vector<2x32xf32>
    %467 = arith.addf %463, %466 : vector<2x32xf32>
    %468 = math.tanh %467 : vector<2x32xf32>
    %cst_103 = arith.constant 1.000000e+00 : f32
    %469 = vector.broadcast %cst_103 : f32 to vector<2x32xf32>
    %470 = arith.subf %469, %462 : vector<2x32xf32>
    %471 = arith.mulf %470, %468 : vector<2x32xf32>
    %472 = arith.mulf %462, %413 : vector<2x32xf32>
    %473 = arith.addf %471, %472 : vector<2x32xf32>
    %474 = vector.extract_strided_slice %10 {offsets = [0, 0], sizes = [2, 96], strides = [1, 1]} : vector<16x96xf32> to vector<2x96xf32>
    %cst_104 = arith.constant dense<0.000000e+00> : vector<2x96xf32>
    %475 = tpu.matmul %442, %14, %cst_104 {dimension_numbers = #tpu.dot_dimension_numbers<[1], [0], [0], [1], [0, 0, 1, 1], [], []>} : vector<2x32xf32>, vector<32x96xf32>, vector<2x96xf32> -> vector<2x96xf32>
    %476 = vector.extract_strided_slice %474 {offsets = [0, 0], sizes = [2, 32], strides = [1, 1]} : vector<2x96xf32> to vector<2x32xf32>
    %477 = vector.extract_strided_slice %475 {offsets = [0, 0], sizes = [2, 32], strides = [1, 1]} : vector<2x96xf32> to vector<2x32xf32>
    %478 = arith.addf %476, %477 : vector<2x32xf32>
    %479 = arith.negf %478 : vector<2x32xf32>
    %480 = math.exp %479 : vector<2x32xf32>
    %cst_105 = arith.constant 1.000000e+00 : f32
    %481 = vector.broadcast %cst_105 : f32 to vector<2x32xf32>
    %482 = arith.addf %481, %480 : vector<2x32xf32>
    %483 = arith.divf %481, %482 : vector<2x32xf32>
    %484 = vector.extract_strided_slice %474 {offsets = [0, 32], sizes = [2, 32], strides = [1, 1]} : vector<2x96xf32> to vector<2x32xf32>
    %485 = vector.extract_strided_slice %475 {offsets = [0, 32], sizes = [2, 32], strides = [1, 1]} : vector<2x96xf32> to vector<2x32xf32>
    %486 = arith.addf %484, %485 : vector<2x32xf32>
    %487 = arith.negf %486 : vector<2x32xf32>
    %488 = math.exp %487 : vector<2x32xf32>
    %cst_106 = arith.constant 1.000000e+00 : f32
    %489 = vector.broadcast %cst_106 : f32 to vector<2x32xf32>
    %490 = arith.addf %489, %488 : vector<2x32xf32>
    %491 = arith.divf %489, %490 : vector<2x32xf32>
    %492 = vector.extract_strided_slice %474 {offsets = [0, 64], sizes = [2, 32], strides = [1, 1]} : vector<2x96xf32> to vector<2x32xf32>
    %493 = vector.extract_strided_slice %475 {offsets = [0, 64], sizes = [2, 32], strides = [1, 1]} : vector<2x96xf32> to vector<2x32xf32>
    %494 = arith.addf %493, %22 : vector<2x32xf32>
    %495 = arith.mulf %483, %494 : vector<2x32xf32>
    %496 = arith.addf %492, %495 : vector<2x32xf32>
    %497 = math.tanh %496 : vector<2x32xf32>
    %cst_107 = arith.constant 1.000000e+00 : f32
    %498 = vector.broadcast %cst_107 : f32 to vector<2x32xf32>
    %499 = arith.subf %498, %491 : vector<2x32xf32>
    %500 = arith.mulf %499, %497 : vector<2x32xf32>
    %501 = arith.mulf %491, %442 : vector<2x32xf32>
    %502 = arith.addf %500, %501 : vector<2x32xf32>
    %c14_108 = arith.constant 14 : index
    %c0_109 = arith.constant 0 : index
    %503 = vector.load %arg17[%c14_108, %c0_109] : memref<16x32xf32, #tpu.memory_space<vmem>>, vector<2x32xf32>
    tpu.vector_store %arg17[%c14_108, %c0_109], %473 {strides = array<i32>} : memref<16x32xf32, #tpu.memory_space<vmem>>, vector<2x32xf32>,
    %c0_110 = arith.constant 0 : index
    %c0_111 = arith.constant 0 : index
    %504 = vector.load %arg18[%c0_110, %c0_111] : memref<16x32xf32, #tpu.memory_space<vmem>>, vector<2x32xf32>
    tpu.vector_store %arg18[%c0_110, %c0_111], %502 {strides = array<i32>} : memref<16x32xf32, #tpu.memory_space<vmem>>, vector<2x32xf32>,
    %c0_112 = arith.constant 0 : index
    %c0_113 = arith.constant 0 : index
    %505 = vector.load %arg17[%c0_112, %c0_113] : memref<16x32xf32, #tpu.memory_space<vmem>>, vector<16x32xf32>
    %c0_114 = arith.constant 0 : index
    %c0_115 = arith.constant 0 : index
    %506 = vector.load %arg18[%c0_114, %c0_115] : memref<16x32xf32, #tpu.memory_space<vmem>>, vector<16x32xf32>
    %507 = tpu.concatenate %505, %506 in 1 : vector<16x32xf32>, vector<16x32xf32> -> vector<16x64xf32>
    %508 = arith.truncf %507 : vector<16x64xf32> to vector<16x64xbf16>
    %c0_116 = arith.constant 0 : index
    %c0_117 = arith.constant 0 : index
    %509 = vector.load %arg8[%c0_116, %c0_117] : memref<64x96xbf16, #tpu.memory_space<vmem>>, vector<64x96xbf16>
    %cst_118 = arith.constant dense<0.000000e+00> : vector<16x96xf32>
    %510 = tpu.matmul %508, %509, %cst_118 {dimension_numbers = #tpu.dot_dimension_numbers<[1], [0], [0], [1], [0, 0, 1, 1], [], []>} : vector<16x64xbf16>, vector<64x96xbf16>, vector<16x96xf32> -> vector<16x96xf32>
    %c0_119 = arith.constant 0 : index
    %c0_120 = arith.constant 0 : index
    %511 = vector.load %arg10[%c0_119, %c0_120] : memref<1x96xf32, #tpu.memory_space<vmem>>, vector<1x96xf32>
    %512 = vector.broadcast %511 : vector<1x96xf32> to vector<16x96xf32>
    %513 = arith.addf %510, %512 : vector<16x96xf32>
    %c0_121 = arith.constant 0 : index
    %c0_122 = arith.constant 0 : index
    %514 = vector.load %arg9[%c0_121, %c0_122] : memref<64x96xbf16, #tpu.memory_space<vmem>>, vector<64x96xbf16>
    %cst_123 = arith.constant dense<0.000000e+00> : vector<16x96xf32>
    %515 = tpu.matmul %508, %514, %cst_123 {dimension_numbers = #tpu.dot_dimension_numbers<[1], [0], [0], [1], [0, 0, 1, 1], [], []>} : vector<16x64xbf16>, vector<64x96xbf16>, vector<16x96xf32> -> vector<16x96xf32>
    %c0_124 = arith.constant 0 : index
    %c0_125 = arith.constant 0 : index
    %516 = vector.load %arg11[%c0_124, %c0_125] : memref<1x96xf32, #tpu.memory_space<vmem>>, vector<1x96xf32>
    %517 = vector.broadcast %516 : vector<1x96xf32> to vector<16x96xf32>
    %518 = arith.addf %515, %517 : vector<16x96xf32>
    %c0_126 = arith.constant 0 : index
    %c0_127 = arith.constant 0 : index
    %c0_128 = arith.constant 0 : index
    %519 = vector.load %arg12[%c0_126, %c0_127, %c0_128] : memref<2x32x96xf32, #tpu.memory_space<vmem>>, vector<1x32x96xf32>
    %520 = vector.shape_cast %519 : vector<1x32x96xf32> to vector<32x96xf32>
    %c1_129 = arith.constant 1 : index
    %c0_130 = arith.constant 0 : index
    %c0_131 = arith.constant 0 : index
    %521 = vector.load %arg12[%c1_129, %c0_130, %c0_131] : memref<2x32x96xf32, #tpu.memory_space<vmem>>, vector<1x32x96xf32>
    %522 = vector.shape_cast %521 : vector<1x32x96xf32> to vector<32x96xf32>
    %c0_132 = arith.constant 0 : index
    %c0_133 = arith.constant 0 : index
    %c0_134 = arith.constant 0 : index
    %523 = vector.load %arg13[%c0_132, %c0_133, %c0_134] : memref<2x1x32xf32, #tpu.memory_space<vmem>>, vector<1x1x32xf32>
    %524 = vector.shape_cast %523 : vector<1x1x32xf32> to vector<1x32xf32>
    %525 = vector.shape_cast %524 : vector<1x32xf32> to vector<1x32xf32>
    %526 = vector.broadcast %525 : vector<1x32xf32> to vector<2x32xf32>
    %c1_135 = arith.constant 1 : index
    %c0_136 = arith.constant 0 : index
    %c0_137 = arith.constant 0 : index
    %527 = vector.load %arg13[%c1_135, %c0_136, %c0_137] : memref<2x1x32xf32, #tpu.memory_space<vmem>>, vector<1x1x32xf32>
    %528 = vector.shape_cast %527 : vector<1x1x32xf32> to vector<1x32xf32>
    %529 = vector.shape_cast %528 : vector<1x32xf32> to vector<1x32xf32>
    %530 = vector.broadcast %529 : vector<1x32xf32> to vector<2x32xf32>
    %cst_138 = arith.constant 0.000000e+00 : f32
    %531 = vector.broadcast %cst_138 : f32 to vector<2x32xf32>
    %cst_139 = arith.constant 0.000000e+00 : f32
    %532 = vector.broadcast %cst_139 : f32 to vector<2x32xf32>
    %533 = vector.extract_strided_slice %513 {offsets = [0, 0], sizes = [2, 96], strides = [1, 1]} : vector<16x96xf32> to vector<2x96xf32>
    %cst_140 = arith.constant dense<0.000000e+00> : vector<2x96xf32>
    %534 = tpu.matmul %531, %520, %cst_140 {dimension_numbers = #tpu.dot_dimension_numbers<[1], [0], [0], [1], [0, 0, 1, 1], [], []>} : vector<2x32xf32>, vector<32x96xf32>, vector<2x96xf32> -> vector<2x96xf32>
    %535 = vector.extract_strided_slice %533 {offsets = [0, 0], sizes = [2, 32], strides = [1, 1]} : vector<2x96xf32> to vector<2x32xf32>
    %536 = vector.extract_strided_slice %534 {offsets = [0, 0], sizes = [2, 32], strides = [1, 1]} : vector<2x96xf32> to vector<2x32xf32>
    %537 = arith.addf %535, %536 : vector<2x32xf32>
    %538 = arith.negf %537 : vector<2x32xf32>
    %539 = math.exp %538 : vector<2x32xf32>
    %cst_141 = arith.constant 1.000000e+00 : f32
    %540 = vector.broadcast %cst_141 : f32 to vector<2x32xf32>
    %541 = arith.addf %540, %539 : vector<2x32xf32>
    %542 = arith.divf %540, %541 : vector<2x32xf32>
    %543 = vector.extract_strided_slice %533 {offsets = [0, 32], sizes = [2, 32], strides = [1, 1]} : vector<2x96xf32> to vector<2x32xf32>
    %544 = vector.extract_strided_slice %534 {offsets = [0, 32], sizes = [2, 32], strides = [1, 1]} : vector<2x96xf32> to vector<2x32xf32>
    %545 = arith.addf %543, %544 : vector<2x32xf32>
    %546 = arith.negf %545 : vector<2x32xf32>
    %547 = math.exp %546 : vector<2x32xf32>
    %cst_142 = arith.constant 1.000000e+00 : f32
    %548 = vector.broadcast %cst_142 : f32 to vector<2x32xf32>
    %549 = arith.addf %548, %547 : vector<2x32xf32>
    %550 = arith.divf %548, %549 : vector<2x32xf32>
    %551 = vector.extract_strided_slice %533 {offsets = [0, 64], sizes = [2, 32], strides = [1, 1]} : vector<2x96xf32> to vector<2x32xf32>
    %552 = vector.extract_strided_slice %534 {offsets = [0, 64], sizes = [2, 32], strides = [1, 1]} : vector<2x96xf32> to vector<2x32xf32>
    %553 = arith.addf %552, %526 : vector<2x32xf32>
    %554 = arith.mulf %542, %553 : vector<2x32xf32>
    %555 = arith.addf %551, %554 : vector<2x32xf32>
    %556 = math.tanh %555 : vector<2x32xf32>
    %cst_143 = arith.constant 1.000000e+00 : f32
    %557 = vector.broadcast %cst_143 : f32 to vector<2x32xf32>
    %558 = arith.subf %557, %550 : vector<2x32xf32>
    %559 = arith.mulf %558, %556 : vector<2x32xf32>
    %560 = arith.mulf %550, %531 : vector<2x32xf32>
    %561 = arith.addf %559, %560 : vector<2x32xf32>
    %562 = vector.extract_strided_slice %518 {offsets = [14, 0], sizes = [2, 96], strides = [1, 1]} : vector<16x96xf32> to vector<2x96xf32>
    %cst_144 = arith.constant dense<0.000000e+00> : vector<2x96xf32>
    %563 = tpu.matmul %532, %522, %cst_144 {dimension_numbers = #tpu.dot_dimension_numbers<[1], [0], [0], [1], [0, 0, 1, 1], [], []>} : vector<2x32xf32>, vector<32x96xf32>, vector<2x96xf32> -> vector<2x96xf32>
    %564 = vector.extract_strided_slice %562 {offsets = [0, 0], sizes = [2, 32], strides = [1, 1]} : vector<2x96xf32> to vector<2x32xf32>
    %565 = vector.extract_strided_slice %563 {offsets = [0, 0], sizes = [2, 32], strides = [1, 1]} : vector<2x96xf32> to vector<2x32xf32>
    %566 = arith.addf %564, %565 : vector<2x32xf32>
    %567 = arith.negf %566 : vector<2x32xf32>
    %568 = math.exp %567 : vector<2x32xf32>
    %cst_145 = arith.constant 1.000000e+00 : f32
    %569 = vector.broadcast %cst_145 : f32 to vector<2x32xf32>
    %570 = arith.addf %569, %568 : vector<2x32xf32>
    %571 = arith.divf %569, %570 : vector<2x32xf32>
    %572 = vector.extract_strided_slice %562 {offsets = [0, 32], sizes = [2, 32], strides = [1, 1]} : vector<2x96xf32> to vector<2x32xf32>
    %573 = vector.extract_strided_slice %563 {offsets = [0, 32], sizes = [2, 32], strides = [1, 1]} : vector<2x96xf32> to vector<2x32xf32>
    %574 = arith.addf %572, %573 : vector<2x32xf32>
    %575 = arith.negf %574 : vector<2x32xf32>
    %576 = math.exp %575 : vector<2x32xf32>
    %cst_146 = arith.constant 1.000000e+00 : f32
    %577 = vector.broadcast %cst_146 : f32 to vector<2x32xf32>
    %578 = arith.addf %577, %576 : vector<2x32xf32>
    %579 = arith.divf %577, %578 : vector<2x32xf32>
    %580 = vector.extract_strided_slice %562 {offsets = [0, 64], sizes = [2, 32], strides = [1, 1]} : vector<2x96xf32> to vector<2x32xf32>
    %581 = vector.extract_strided_slice %563 {offsets = [0, 64], sizes = [2, 32], strides = [1, 1]} : vector<2x96xf32> to vector<2x32xf32>
    %582 = arith.addf %581, %530 : vector<2x32xf32>
    %583 = arith.mulf %571, %582 : vector<2x32xf32>
    %584 = arith.addf %580, %583 : vector<2x32xf32>
    %585 = math.tanh %584 : vector<2x32xf32>
    %cst_147 = arith.constant 1.000000e+00 : f32
    %586 = vector.broadcast %cst_147 : f32 to vector<2x32xf32>
    %587 = arith.subf %586, %579 : vector<2x32xf32>
    %588 = arith.mulf %587, %585 : vector<2x32xf32>
    %589 = arith.mulf %579, %532 : vector<2x32xf32>
    %590 = arith.addf %588, %589 : vector<2x32xf32>
    %c0_148 = arith.constant 0 : index
    %c0_149 = arith.constant 0 : index
    %591 = vector.load %arg19[%c0_148, %c0_149] : memref<16x32xf32, #tpu.memory_space<vmem>>, vector<2x32xf32>
    tpu.vector_store %arg19[%c0_148, %c0_149], %561 {strides = array<i32>} : memref<16x32xf32, #tpu.memory_space<vmem>>, vector<2x32xf32>,
    %c14_150 = arith.constant 14 : index
    %c0_151 = arith.constant 0 : index
    %592 = vector.load %arg20[%c14_150, %c0_151] : memref<16x32xf32, #tpu.memory_space<vmem>>, vector<2x32xf32>
    tpu.vector_store %arg20[%c14_150, %c0_151], %590 {strides = array<i32>} : memref<16x32xf32, #tpu.memory_space<vmem>>, vector<2x32xf32>,
    %593 = vector.extract_strided_slice %513 {offsets = [2, 0], sizes = [2, 96], strides = [1, 1]} : vector<16x96xf32> to vector<2x96xf32>
    %cst_152 = arith.constant dense<0.000000e+00> : vector<2x96xf32>
    %594 = tpu.matmul %561, %520, %cst_152 {dimension_numbers = #tpu.dot_dimension_numbers<[1], [0], [0], [1], [0, 0, 1, 1], [], []>} : vector<2x32xf32>, vector<32x96xf32>, vector<2x96xf32> -> vector<2x96xf32>
    %595 = vector.extract_strided_slice %593 {offsets = [0, 0], sizes = [2, 32], strides = [1, 1]} : vector<2x96xf32> to vector<2x32xf32>
    %596 = vector.extract_strided_slice %594 {offsets = [0, 0], sizes = [2, 32], strides = [1, 1]} : vector<2x96xf32> to vector<2x32xf32>
    %597 = arith.addf %595, %596 : vector<2x32xf32>
    %598 = arith.negf %597 : vector<2x32xf32>
    %599 = math.exp %598 : vector<2x32xf32>
    %cst_153 = arith.constant 1.000000e+00 : f32
    %600 = vector.broadcast %cst_153 : f32 to vector<2x32xf32>
    %601 = arith.addf %600, %599 : vector<2x32xf32>
    %602 = arith.divf %600, %601 : vector<2x32xf32>
    %603 = vector.extract_strided_slice %593 {offsets = [0, 32], sizes = [2, 32], strides = [1, 1]} : vector<2x96xf32> to vector<2x32xf32>
    %604 = vector.extract_strided_slice %594 {offsets = [0, 32], sizes = [2, 32], strides = [1, 1]} : vector<2x96xf32> to vector<2x32xf32>
    %605 = arith.addf %603, %604 : vector<2x32xf32>
    %606 = arith.negf %605 : vector<2x32xf32>
    %607 = math.exp %606 : vector<2x32xf32>
    %cst_154 = arith.constant 1.000000e+00 : f32
    %608 = vector.broadcast %cst_154 : f32 to vector<2x32xf32>
    %609 = arith.addf %608, %607 : vector<2x32xf32>
    %610 = arith.divf %608, %609 : vector<2x32xf32>
    %611 = vector.extract_strided_slice %593 {offsets = [0, 64], sizes = [2, 32], strides = [1, 1]} : vector<2x96xf32> to vector<2x32xf32>
    %612 = vector.extract_strided_slice %594 {offsets = [0, 64], sizes = [2, 32], strides = [1, 1]} : vector<2x96xf32> to vector<2x32xf32>
    %613 = arith.addf %612, %526 : vector<2x32xf32>
    %614 = arith.mulf %602, %613 : vector<2x32xf32>
    %615 = arith.addf %611, %614 : vector<2x32xf32>
    %616 = math.tanh %615 : vector<2x32xf32>
    %cst_155 = arith.constant 1.000000e+00 : f32
    %617 = vector.broadcast %cst_155 : f32 to vector<2x32xf32>
    %618 = arith.subf %617, %610 : vector<2x32xf32>
    %619 = arith.mulf %618, %616 : vector<2x32xf32>
    %620 = arith.mulf %610, %561 : vector<2x32xf32>
    %621 = arith.addf %619, %620 : vector<2x32xf32>
    %622 = vector.extract_strided_slice %518 {offsets = [12, 0], sizes = [2, 96], strides = [1, 1]} : vector<16x96xf32> to vector<2x96xf32>
    %cst_156 = arith.constant dense<0.000000e+00> : vector<2x96xf32>
    %623 = tpu.matmul %590, %522, %cst_156 {dimension_numbers = #tpu.dot_dimension_numbers<[1], [0], [0], [1], [0, 0, 1, 1], [], []>} : vector<2x32xf32>, vector<32x96xf32>, vector<2x96xf32> -> vector<2x96xf32>
    %624 = vector.extract_strided_slice %622 {offsets = [0, 0], sizes = [2, 32], strides = [1, 1]} : vector<2x96xf32> to vector<2x32xf32>
    %625 = vector.extract_strided_slice %623 {offsets = [0, 0], sizes = [2, 32], strides = [1, 1]} : vector<2x96xf32> to vector<2x32xf32>
    %626 = arith.addf %624, %625 : vector<2x32xf32>
    %627 = arith.negf %626 : vector<2x32xf32>
    %628 = math.exp %627 : vector<2x32xf32>
    %cst_157 = arith.constant 1.000000e+00 : f32
    %629 = vector.broadcast %cst_157 : f32 to vector<2x32xf32>
    %630 = arith.addf %629, %628 : vector<2x32xf32>
    %631 = arith.divf %629, %630 : vector<2x32xf32>
    %632 = vector.extract_strided_slice %622 {offsets = [0, 32], sizes = [2, 32], strides = [1, 1]} : vector<2x96xf32> to vector<2x32xf32>
    %633 = vector.extract_strided_slice %623 {offsets = [0, 32], sizes = [2, 32], strides = [1, 1]} : vector<2x96xf32> to vector<2x32xf32>
    %634 = arith.addf %632, %633 : vector<2x32xf32>
    %635 = arith.negf %634 : vector<2x32xf32>
    %636 = math.exp %635 : vector<2x32xf32>
    %cst_158 = arith.constant 1.000000e+00 : f32
    %637 = vector.broadcast %cst_158 : f32 to vector<2x32xf32>
    %638 = arith.addf %637, %636 : vector<2x32xf32>
    %639 = arith.divf %637, %638 : vector<2x32xf32>
    %640 = vector.extract_strided_slice %622 {offsets = [0, 64], sizes = [2, 32], strides = [1, 1]} : vector<2x96xf32> to vector<2x32xf32>
    %641 = vector.extract_strided_slice %623 {offsets = [0, 64], sizes = [2, 32], strides = [1, 1]} : vector<2x96xf32> to vector<2x32xf32>
    %642 = arith.addf %641, %530 : vector<2x32xf32>
    %643 = arith.mulf %631, %642 : vector<2x32xf32>
    %644 = arith.addf %640, %643 : vector<2x32xf32>
    %645 = math.tanh %644 : vector<2x32xf32>
    %cst_159 = arith.constant 1.000000e+00 : f32
    %646 = vector.broadcast %cst_159 : f32 to vector<2x32xf32>
    %647 = arith.subf %646, %639 : vector<2x32xf32>
    %648 = arith.mulf %647, %645 : vector<2x32xf32>
    %649 = arith.mulf %639, %590 : vector<2x32xf32>
    %650 = arith.addf %648, %649 : vector<2x32xf32>
    %c2_160 = arith.constant 2 : index
    %c0_161 = arith.constant 0 : index
    %651 = vector.load %arg19[%c2_160, %c0_161] : memref<16x32xf32, #tpu.memory_space<vmem>>, vector<2x32xf32>
    tpu.vector_store %arg19[%c2_160, %c0_161], %621 {strides = array<i32>} : memref<16x32xf32, #tpu.memory_space<vmem>>, vector<2x32xf32>,
    %c12_162 = arith.constant 12 : index
    %c0_163 = arith.constant 0 : index
    %652 = vector.load %arg20[%c12_162, %c0_163] : memref<16x32xf32, #tpu.memory_space<vmem>>, vector<2x32xf32>
    tpu.vector_store %arg20[%c12_162, %c0_163], %650 {strides = array<i32>} : memref<16x32xf32, #tpu.memory_space<vmem>>, vector<2x32xf32>,
    %653 = vector.extract_strided_slice %513 {offsets = [4, 0], sizes = [2, 96], strides = [1, 1]} : vector<16x96xf32> to vector<2x96xf32>
    %cst_164 = arith.constant dense<0.000000e+00> : vector<2x96xf32>
    %654 = tpu.matmul %621, %520, %cst_164 {dimension_numbers = #tpu.dot_dimension_numbers<[1], [0], [0], [1], [0, 0, 1, 1], [], []>} : vector<2x32xf32>, vector<32x96xf32>, vector<2x96xf32> -> vector<2x96xf32>
    %655 = vector.extract_strided_slice %653 {offsets = [0, 0], sizes = [2, 32], strides = [1, 1]} : vector<2x96xf32> to vector<2x32xf32>
    %656 = vector.extract_strided_slice %654 {offsets = [0, 0], sizes = [2, 32], strides = [1, 1]} : vector<2x96xf32> to vector<2x32xf32>
    %657 = arith.addf %655, %656 : vector<2x32xf32>
    %658 = arith.negf %657 : vector<2x32xf32>
    %659 = math.exp %658 : vector<2x32xf32>
    %cst_165 = arith.constant 1.000000e+00 : f32
    %660 = vector.broadcast %cst_165 : f32 to vector<2x32xf32>
    %661 = arith.addf %660, %659 : vector<2x32xf32>
    %662 = arith.divf %660, %661 : vector<2x32xf32>
    %663 = vector.extract_strided_slice %653 {offsets = [0, 32], sizes = [2, 32], strides = [1, 1]} : vector<2x96xf32> to vector<2x32xf32>
    %664 = vector.extract_strided_slice %654 {offsets = [0, 32], sizes = [2, 32], strides = [1, 1]} : vector<2x96xf32> to vector<2x32xf32>
    %665 = arith.addf %663, %664 : vector<2x32xf32>
    %666 = arith.negf %665 : vector<2x32xf32>
    %667 = math.exp %666 : vector<2x32xf32>
    %cst_166 = arith.constant 1.000000e+00 : f32
    %668 = vector.broadcast %cst_166 : f32 to vector<2x32xf32>
    %669 = arith.addf %668, %667 : vector<2x32xf32>
    %670 = arith.divf %668, %669 : vector<2x32xf32>
    %671 = vector.extract_strided_slice %653 {offsets = [0, 64], sizes = [2, 32], strides = [1, 1]} : vector<2x96xf32> to vector<2x32xf32>
    %672 = vector.extract_strided_slice %654 {offsets = [0, 64], sizes = [2, 32], strides = [1, 1]} : vector<2x96xf32> to vector<2x32xf32>
    %673 = arith.addf %672, %526 : vector<2x32xf32>
    %674 = arith.mulf %662, %673 : vector<2x32xf32>
    %675 = arith.addf %671, %674 : vector<2x32xf32>
    %676 = math.tanh %675 : vector<2x32xf32>
    %cst_167 = arith.constant 1.000000e+00 : f32
    %677 = vector.broadcast %cst_167 : f32 to vector<2x32xf32>
    %678 = arith.subf %677, %670 : vector<2x32xf32>
    %679 = arith.mulf %678, %676 : vector<2x32xf32>
    %680 = arith.mulf %670, %621 : vector<2x32xf32>
    %681 = arith.addf %679, %680 : vector<2x32xf32>
    %682 = vector.extract_strided_slice %518 {offsets = [10, 0], sizes = [2, 96], strides = [1, 1]} : vector<16x96xf32> to vector<2x96xf32>
    %cst_168 = arith.constant dense<0.000000e+00> : vector<2x96xf32>
    %683 = tpu.matmul %650, %522, %cst_168 {dimension_numbers = #tpu.dot_dimension_numbers<[1], [0], [0], [1], [0, 0, 1, 1], [], []>} : vector<2x32xf32>, vector<32x96xf32>, vector<2x96xf32> -> vector<2x96xf32>
    %684 = vector.extract_strided_slice %682 {offsets = [0, 0], sizes = [2, 32], strides = [1, 1]} : vector<2x96xf32> to vector<2x32xf32>
    %685 = vector.extract_strided_slice %683 {offsets = [0, 0], sizes = [2, 32], strides = [1, 1]} : vector<2x96xf32> to vector<2x32xf32>
    %686 = arith.addf %684, %685 : vector<2x32xf32>
    %687 = arith.negf %686 : vector<2x32xf32>
    %688 = math.exp %687 : vector<2x32xf32>
    %cst_169 = arith.constant 1.000000e+00 : f32
    %689 = vector.broadcast %cst_169 : f32 to vector<2x32xf32>
    %690 = arith.addf %689, %688 : vector<2x32xf32>
    %691 = arith.divf %689, %690 : vector<2x32xf32>
    %692 = vector.extract_strided_slice %682 {offsets = [0, 32], sizes = [2, 32], strides = [1, 1]} : vector<2x96xf32> to vector<2x32xf32>
    %693 = vector.extract_strided_slice %683 {offsets = [0, 32], sizes = [2, 32], strides = [1, 1]} : vector<2x96xf32> to vector<2x32xf32>
    %694 = arith.addf %692, %693 : vector<2x32xf32>
    %695 = arith.negf %694 : vector<2x32xf32>
    %696 = math.exp %695 : vector<2x32xf32>
    %cst_170 = arith.constant 1.000000e+00 : f32
    %697 = vector.broadcast %cst_170 : f32 to vector<2x32xf32>
    %698 = arith.addf %697, %696 : vector<2x32xf32>
    %699 = arith.divf %697, %698 : vector<2x32xf32>
    %700 = vector.extract_strided_slice %682 {offsets = [0, 64], sizes = [2, 32], strides = [1, 1]} : vector<2x96xf32> to vector<2x32xf32>
    %701 = vector.extract_strided_slice %683 {offsets = [0, 64], sizes = [2, 32], strides = [1, 1]} : vector<2x96xf32> to vector<2x32xf32>
    %702 = arith.addf %701, %530 : vector<2x32xf32>
    %703 = arith.mulf %691, %702 : vector<2x32xf32>
    %704 = arith.addf %700, %703 : vector<2x32xf32>
    %705 = math.tanh %704 : vector<2x32xf32>
    %cst_171 = arith.constant 1.000000e+00 : f32
    %706 = vector.broadcast %cst_171 : f32 to vector<2x32xf32>
    %707 = arith.subf %706, %699 : vector<2x32xf32>
    %708 = arith.mulf %707, %705 : vector<2x32xf32>
    %709 = arith.mulf %699, %650 : vector<2x32xf32>
    %710 = arith.addf %708, %709 : vector<2x32xf32>
    %c4_172 = arith.constant 4 : index
    %c0_173 = arith.constant 0 : index
    %711 = vector.load %arg19[%c4_172, %c0_173] : memref<16x32xf32, #tpu.memory_space<vmem>>, vector<2x32xf32>
    tpu.vector_store %arg19[%c4_172, %c0_173], %681 {strides = array<i32>} : memref<16x32xf32, #tpu.memory_space<vmem>>, vector<2x32xf32>,
    %c10_174 = arith.constant 10 : index
    %c0_175 = arith.constant 0 : index
    %712 = vector.load %arg20[%c10_174, %c0_175] : memref<16x32xf32, #tpu.memory_space<vmem>>, vector<2x32xf32>
    tpu.vector_store %arg20[%c10_174, %c0_175], %710 {strides = array<i32>} : memref<16x32xf32, #tpu.memory_space<vmem>>, vector<2x32xf32>,
    %713 = vector.extract_strided_slice %513 {offsets = [6, 0], sizes = [2, 96], strides = [1, 1]} : vector<16x96xf32> to vector<2x96xf32>
    %cst_176 = arith.constant dense<0.000000e+00> : vector<2x96xf32>
    %714 = tpu.matmul %681, %520, %cst_176 {dimension_numbers = #tpu.dot_dimension_numbers<[1], [0], [0], [1], [0, 0, 1, 1], [], []>} : vector<2x32xf32>, vector<32x96xf32>, vector<2x96xf32> -> vector<2x96xf32>
    %715 = vector.extract_strided_slice %713 {offsets = [0, 0], sizes = [2, 32], strides = [1, 1]} : vector<2x96xf32> to vector<2x32xf32>
    %716 = vector.extract_strided_slice %714 {offsets = [0, 0], sizes = [2, 32], strides = [1, 1]} : vector<2x96xf32> to vector<2x32xf32>
    %717 = arith.addf %715, %716 : vector<2x32xf32>
    %718 = arith.negf %717 : vector<2x32xf32>
    %719 = math.exp %718 : vector<2x32xf32>
    %cst_177 = arith.constant 1.000000e+00 : f32
    %720 = vector.broadcast %cst_177 : f32 to vector<2x32xf32>
    %721 = arith.addf %720, %719 : vector<2x32xf32>
    %722 = arith.divf %720, %721 : vector<2x32xf32>
    %723 = vector.extract_strided_slice %713 {offsets = [0, 32], sizes = [2, 32], strides = [1, 1]} : vector<2x96xf32> to vector<2x32xf32>
    %724 = vector.extract_strided_slice %714 {offsets = [0, 32], sizes = [2, 32], strides = [1, 1]} : vector<2x96xf32> to vector<2x32xf32>
    %725 = arith.addf %723, %724 : vector<2x32xf32>
    %726 = arith.negf %725 : vector<2x32xf32>
    %727 = math.exp %726 : vector<2x32xf32>
    %cst_178 = arith.constant 1.000000e+00 : f32
    %728 = vector.broadcast %cst_178 : f32 to vector<2x32xf32>
    %729 = arith.addf %728, %727 : vector<2x32xf32>
    %730 = arith.divf %728, %729 : vector<2x32xf32>
    %731 = vector.extract_strided_slice %713 {offsets = [0, 64], sizes = [2, 32], strides = [1, 1]} : vector<2x96xf32> to vector<2x32xf32>
    %732 = vector.extract_strided_slice %714 {offsets = [0, 64], sizes = [2, 32], strides = [1, 1]} : vector<2x96xf32> to vector<2x32xf32>
    %733 = arith.addf %732, %526 : vector<2x32xf32>
    %734 = arith.mulf %722, %733 : vector<2x32xf32>
    %735 = arith.addf %731, %734 : vector<2x32xf32>
    %736 = math.tanh %735 : vector<2x32xf32>
    %cst_179 = arith.constant 1.000000e+00 : f32
    %737 = vector.broadcast %cst_179 : f32 to vector<2x32xf32>
    %738 = arith.subf %737, %730 : vector<2x32xf32>
    %739 = arith.mulf %738, %736 : vector<2x32xf32>
    %740 = arith.mulf %730, %681 : vector<2x32xf32>
    %741 = arith.addf %739, %740 : vector<2x32xf32>
    %742 = vector.extract_strided_slice %518 {offsets = [8, 0], sizes = [2, 96], strides = [1, 1]} : vector<16x96xf32> to vector<2x96xf32>
    %cst_180 = arith.constant dense<0.000000e+00> : vector<2x96xf32>
    %743 = tpu.matmul %710, %522, %cst_180 {dimension_numbers = #tpu.dot_dimension_numbers<[1], [0], [0], [1], [0, 0, 1, 1], [], []>} : vector<2x32xf32>, vector<32x96xf32>, vector<2x96xf32> -> vector<2x96xf32>
    %744 = vector.extract_strided_slice %742 {offsets = [0, 0], sizes = [2, 32], strides = [1, 1]} : vector<2x96xf32> to vector<2x32xf32>
    %745 = vector.extract_strided_slice %743 {offsets = [0, 0], sizes = [2, 32], strides = [1, 1]} : vector<2x96xf32> to vector<2x32xf32>
    %746 = arith.addf %744, %745 : vector<2x32xf32>
    %747 = arith.negf %746 : vector<2x32xf32>
    %748 = math.exp %747 : vector<2x32xf32>
    %cst_181 = arith.constant 1.000000e+00 : f32
    %749 = vector.broadcast %cst_181 : f32 to vector<2x32xf32>
    %750 = arith.addf %749, %748 : vector<2x32xf32>
    %751 = arith.divf %749, %750 : vector<2x32xf32>
    %752 = vector.extract_strided_slice %742 {offsets = [0, 32], sizes = [2, 32], strides = [1, 1]} : vector<2x96xf32> to vector<2x32xf32>
    %753 = vector.extract_strided_slice %743 {offsets = [0, 32], sizes = [2, 32], strides = [1, 1]} : vector<2x96xf32> to vector<2x32xf32>
    %754 = arith.addf %752, %753 : vector<2x32xf32>
    %755 = arith.negf %754 : vector<2x32xf32>
    %756 = math.exp %755 : vector<2x32xf32>
    %cst_182 = arith.constant 1.000000e+00 : f32
    %757 = vector.broadcast %cst_182 : f32 to vector<2x32xf32>
    %758 = arith.addf %757, %756 : vector<2x32xf32>
    %759 = arith.divf %757, %758 : vector<2x32xf32>
    %760 = vector.extract_strided_slice %742 {offsets = [0, 64], sizes = [2, 32], strides = [1, 1]} : vector<2x96xf32> to vector<2x32xf32>
    %761 = vector.extract_strided_slice %743 {offsets = [0, 64], sizes = [2, 32], strides = [1, 1]} : vector<2x96xf32> to vector<2x32xf32>
    %762 = arith.addf %761, %530 : vector<2x32xf32>
    %763 = arith.mulf %751, %762 : vector<2x32xf32>
    %764 = arith.addf %760, %763 : vector<2x32xf32>
    %765 = math.tanh %764 : vector<2x32xf32>
    %cst_183 = arith.constant 1.000000e+00 : f32
    %766 = vector.broadcast %cst_183 : f32 to vector<2x32xf32>
    %767 = arith.subf %766, %759 : vector<2x32xf32>
    %768 = arith.mulf %767, %765 : vector<2x32xf32>
    %769 = arith.mulf %759, %710 : vector<2x32xf32>
    %770 = arith.addf %768, %769 : vector<2x32xf32>
    %c6_184 = arith.constant 6 : index
    %c0_185 = arith.constant 0 : index
    %771 = vector.load %arg19[%c6_184, %c0_185] : memref<16x32xf32, #tpu.memory_space<vmem>>, vector<2x32xf32>
    tpu.vector_store %arg19[%c6_184, %c0_185], %741 {strides = array<i32>} : memref<16x32xf32, #tpu.memory_space<vmem>>, vector<2x32xf32>,
    %c8_186 = arith.constant 8 : index
    %c0_187 = arith.constant 0 : index
    %772 = vector.load %arg20[%c8_186, %c0_187] : memref<16x32xf32, #tpu.memory_space<vmem>>, vector<2x32xf32>
    tpu.vector_store %arg20[%c8_186, %c0_187], %770 {strides = array<i32>} : memref<16x32xf32, #tpu.memory_space<vmem>>, vector<2x32xf32>,
    %773 = vector.extract_strided_slice %513 {offsets = [8, 0], sizes = [2, 96], strides = [1, 1]} : vector<16x96xf32> to vector<2x96xf32>
    %cst_188 = arith.constant dense<0.000000e+00> : vector<2x96xf32>
    %774 = tpu.matmul %741, %520, %cst_188 {dimension_numbers = #tpu.dot_dimension_numbers<[1], [0], [0], [1], [0, 0, 1, 1], [], []>} : vector<2x32xf32>, vector<32x96xf32>, vector<2x96xf32> -> vector<2x96xf32>
    %775 = vector.extract_strided_slice %773 {offsets = [0, 0], sizes = [2, 32], strides = [1, 1]} : vector<2x96xf32> to vector<2x32xf32>
    %776 = vector.extract_strided_slice %774 {offsets = [0, 0], sizes = [2, 32], strides = [1, 1]} : vector<2x96xf32> to vector<2x32xf32>
    %777 = arith.addf %775, %776 : vector<2x32xf32>
    %778 = arith.negf %777 : vector<2x32xf32>
    %779 = math.exp %778 : vector<2x32xf32>
    %cst_189 = arith.constant 1.000000e+00 : f32
    %780 = vector.broadcast %cst_189 : f32 to vector<2x32xf32>
    %781 = arith.addf %780, %779 : vector<2x32xf32>
    %782 = arith.divf %780, %781 : vector<2x32xf32>
    %783 = vector.extract_strided_slice %773 {offsets = [0, 32], sizes = [2, 32], strides = [1, 1]} : vector<2x96xf32> to vector<2x32xf32>
    %784 = vector.extract_strided_slice %774 {offsets = [0, 32], sizes = [2, 32], strides = [1, 1]} : vector<2x96xf32> to vector<2x32xf32>
    %785 = arith.addf %783, %784 : vector<2x32xf32>
    %786 = arith.negf %785 : vector<2x32xf32>
    %787 = math.exp %786 : vector<2x32xf32>
    %cst_190 = arith.constant 1.000000e+00 : f32
    %788 = vector.broadcast %cst_190 : f32 to vector<2x32xf32>
    %789 = arith.addf %788, %787 : vector<2x32xf32>
    %790 = arith.divf %788, %789 : vector<2x32xf32>
    %791 = vector.extract_strided_slice %773 {offsets = [0, 64], sizes = [2, 32], strides = [1, 1]} : vector<2x96xf32> to vector<2x32xf32>
    %792 = vector.extract_strided_slice %774 {offsets = [0, 64], sizes = [2, 32], strides = [1, 1]} : vector<2x96xf32> to vector<2x32xf32>
    %793 = arith.addf %792, %526 : vector<2x32xf32>
    %794 = arith.mulf %782, %793 : vector<2x32xf32>
    %795 = arith.addf %791, %794 : vector<2x32xf32>
    %796 = math.tanh %795 : vector<2x32xf32>
    %cst_191 = arith.constant 1.000000e+00 : f32
    %797 = vector.broadcast %cst_191 : f32 to vector<2x32xf32>
    %798 = arith.subf %797, %790 : vector<2x32xf32>
    %799 = arith.mulf %798, %796 : vector<2x32xf32>
    %800 = arith.mulf %790, %741 : vector<2x32xf32>
    %801 = arith.addf %799, %800 : vector<2x32xf32>
    %802 = vector.extract_strided_slice %518 {offsets = [6, 0], sizes = [2, 96], strides = [1, 1]} : vector<16x96xf32> to vector<2x96xf32>
    %cst_192 = arith.constant dense<0.000000e+00> : vector<2x96xf32>
    %803 = tpu.matmul %770, %522, %cst_192 {dimension_numbers = #tpu.dot_dimension_numbers<[1], [0], [0], [1], [0, 0, 1, 1], [], []>} : vector<2x32xf32>, vector<32x96xf32>, vector<2x96xf32> -> vector<2x96xf32>
    %804 = vector.extract_strided_slice %802 {offsets = [0, 0], sizes = [2, 32], strides = [1, 1]} : vector<2x96xf32> to vector<2x32xf32>
    %805 = vector.extract_strided_slice %803 {offsets = [0, 0], sizes = [2, 32], strides = [1, 1]} : vector<2x96xf32> to vector<2x32xf32>
    %806 = arith.addf %804, %805 : vector<2x32xf32>
    %807 = arith.negf %806 : vector<2x32xf32>
    %808 = math.exp %807 : vector<2x32xf32>
    %cst_193 = arith.constant 1.000000e+00 : f32
    %809 = vector.broadcast %cst_193 : f32 to vector<2x32xf32>
    %810 = arith.addf %809, %808 : vector<2x32xf32>
    %811 = arith.divf %809, %810 : vector<2x32xf32>
    %812 = vector.extract_strided_slice %802 {offsets = [0, 32], sizes = [2, 32], strides = [1, 1]} : vector<2x96xf32> to vector<2x32xf32>
    %813 = vector.extract_strided_slice %803 {offsets = [0, 32], sizes = [2, 32], strides = [1, 1]} : vector<2x96xf32> to vector<2x32xf32>
    %814 = arith.addf %812, %813 : vector<2x32xf32>
    %815 = arith.negf %814 : vector<2x32xf32>
    %816 = math.exp %815 : vector<2x32xf32>
    %cst_194 = arith.constant 1.000000e+00 : f32
    %817 = vector.broadcast %cst_194 : f32 to vector<2x32xf32>
    %818 = arith.addf %817, %816 : vector<2x32xf32>
    %819 = arith.divf %817, %818 : vector<2x32xf32>
    %820 = vector.extract_strided_slice %802 {offsets = [0, 64], sizes = [2, 32], strides = [1, 1]} : vector<2x96xf32> to vector<2x32xf32>
    %821 = vector.extract_strided_slice %803 {offsets = [0, 64], sizes = [2, 32], strides = [1, 1]} : vector<2x96xf32> to vector<2x32xf32>
    %822 = arith.addf %821, %530 : vector<2x32xf32>
    %823 = arith.mulf %811, %822 : vector<2x32xf32>
    %824 = arith.addf %820, %823 : vector<2x32xf32>
    %825 = math.tanh %824 : vector<2x32xf32>
    %cst_195 = arith.constant 1.000000e+00 : f32
    %826 = vector.broadcast %cst_195 : f32 to vector<2x32xf32>
    %827 = arith.subf %826, %819 : vector<2x32xf32>
    %828 = arith.mulf %827, %825 : vector<2x32xf32>
    %829 = arith.mulf %819, %770 : vector<2x32xf32>
    %830 = arith.addf %828, %829 : vector<2x32xf32>
    %c8_196 = arith.constant 8 : index
    %c0_197 = arith.constant 0 : index
    %831 = vector.load %arg19[%c8_196, %c0_197] : memref<16x32xf32, #tpu.memory_space<vmem>>, vector<2x32xf32>
    tpu.vector_store %arg19[%c8_196, %c0_197], %801 {strides = array<i32>} : memref<16x32xf32, #tpu.memory_space<vmem>>, vector<2x32xf32>,
    %c6_198 = arith.constant 6 : index
    %c0_199 = arith.constant 0 : index
    %832 = vector.load %arg20[%c6_198, %c0_199] : memref<16x32xf32, #tpu.memory_space<vmem>>, vector<2x32xf32>
    tpu.vector_store %arg20[%c6_198, %c0_199], %830 {strides = array<i32>} : memref<16x32xf32, #tpu.memory_space<vmem>>, vector<2x32xf32>,
    %833 = vector.extract_strided_slice %513 {offsets = [10, 0], sizes = [2, 96], strides = [1, 1]} : vector<16x96xf32> to vector<2x96xf32>
    %cst_200 = arith.constant dense<0.000000e+00> : vector<2x96xf32>
    %834 = tpu.matmul %801, %520, %cst_200 {dimension_numbers = #tpu.dot_dimension_numbers<[1], [0], [0], [1], [0, 0, 1, 1], [], []>} : vector<2x32xf32>, vector<32x96xf32>, vector<2x96xf32> -> vector<2x96xf32>
    %835 = vector.extract_strided_slice %833 {offsets = [0, 0], sizes = [2, 32], strides = [1, 1]} : vector<2x96xf32> to vector<2x32xf32>
    %836 = vector.extract_strided_slice %834 {offsets = [0, 0], sizes = [2, 32], strides = [1, 1]} : vector<2x96xf32> to vector<2x32xf32>
    %837 = arith.addf %835, %836 : vector<2x32xf32>
    %838 = arith.negf %837 : vector<2x32xf32>
    %839 = math.exp %838 : vector<2x32xf32>
    %cst_201 = arith.constant 1.000000e+00 : f32
    %840 = vector.broadcast %cst_201 : f32 to vector<2x32xf32>
    %841 = arith.addf %840, %839 : vector<2x32xf32>
    %842 = arith.divf %840, %841 : vector<2x32xf32>
    %843 = vector.extract_strided_slice %833 {offsets = [0, 32], sizes = [2, 32], strides = [1, 1]} : vector<2x96xf32> to vector<2x32xf32>
    %844 = vector.extract_strided_slice %834 {offsets = [0, 32], sizes = [2, 32], strides = [1, 1]} : vector<2x96xf32> to vector<2x32xf32>
    %845 = arith.addf %843, %844 : vector<2x32xf32>
    %846 = arith.negf %845 : vector<2x32xf32>
    %847 = math.exp %846 : vector<2x32xf32>
    %cst_202 = arith.constant 1.000000e+00 : f32
    %848 = vector.broadcast %cst_202 : f32 to vector<2x32xf32>
    %849 = arith.addf %848, %847 : vector<2x32xf32>
    %850 = arith.divf %848, %849 : vector<2x32xf32>
    %851 = vector.extract_strided_slice %833 {offsets = [0, 64], sizes = [2, 32], strides = [1, 1]} : vector<2x96xf32> to vector<2x32xf32>
    %852 = vector.extract_strided_slice %834 {offsets = [0, 64], sizes = [2, 32], strides = [1, 1]} : vector<2x96xf32> to vector<2x32xf32>
    %853 = arith.addf %852, %526 : vector<2x32xf32>
    %854 = arith.mulf %842, %853 : vector<2x32xf32>
    %855 = arith.addf %851, %854 : vector<2x32xf32>
    %856 = math.tanh %855 : vector<2x32xf32>
    %cst_203 = arith.constant 1.000000e+00 : f32
    %857 = vector.broadcast %cst_203 : f32 to vector<2x32xf32>
    %858 = arith.subf %857, %850 : vector<2x32xf32>
    %859 = arith.mulf %858, %856 : vector<2x32xf32>
    %860 = arith.mulf %850, %801 : vector<2x32xf32>
    %861 = arith.addf %859, %860 : vector<2x32xf32>
    %862 = vector.extract_strided_slice %518 {offsets = [4, 0], sizes = [2, 96], strides = [1, 1]} : vector<16x96xf32> to vector<2x96xf32>
    %cst_204 = arith.constant dense<0.000000e+00> : vector<2x96xf32>
    %863 = tpu.matmul %830, %522, %cst_204 {dimension_numbers = #tpu.dot_dimension_numbers<[1], [0], [0], [1], [0, 0, 1, 1], [], []>} : vector<2x32xf32>, vector<32x96xf32>, vector<2x96xf32> -> vector<2x96xf32>
    %864 = vector.extract_strided_slice %862 {offsets = [0, 0], sizes = [2, 32], strides = [1, 1]} : vector<2x96xf32> to vector<2x32xf32>
    %865 = vector.extract_strided_slice %863 {offsets = [0, 0], sizes = [2, 32], strides = [1, 1]} : vector<2x96xf32> to vector<2x32xf32>
    %866 = arith.addf %864, %865 : vector<2x32xf32>
    %867 = arith.negf %866 : vector<2x32xf32>
    %868 = math.exp %867 : vector<2x32xf32>
    %cst_205 = arith.constant 1.000000e+00 : f32
    %869 = vector.broadcast %cst_205 : f32 to vector<2x32xf32>
    %870 = arith.addf %869, %868 : vector<2x32xf32>
    %871 = arith.divf %869, %870 : vector<2x32xf32>
    %872 = vector.extract_strided_slice %862 {offsets = [0, 32], sizes = [2, 32], strides = [1, 1]} : vector<2x96xf32> to vector<2x32xf32>
    %873 = vector.extract_strided_slice %863 {offsets = [0, 32], sizes = [2, 32], strides = [1, 1]} : vector<2x96xf32> to vector<2x32xf32>
    %874 = arith.addf %872, %873 : vector<2x32xf32>
    %875 = arith.negf %874 : vector<2x32xf32>
    %876 = math.exp %875 : vector<2x32xf32>
    %cst_206 = arith.constant 1.000000e+00 : f32
    %877 = vector.broadcast %cst_206 : f32 to vector<2x32xf32>
    %878 = arith.addf %877, %876 : vector<2x32xf32>
    %879 = arith.divf %877, %878 : vector<2x32xf32>
    %880 = vector.extract_strided_slice %862 {offsets = [0, 64], sizes = [2, 32], strides = [1, 1]} : vector<2x96xf32> to vector<2x32xf32>
    %881 = vector.extract_strided_slice %863 {offsets = [0, 64], sizes = [2, 32], strides = [1, 1]} : vector<2x96xf32> to vector<2x32xf32>
    %882 = arith.addf %881, %530 : vector<2x32xf32>
    %883 = arith.mulf %871, %882 : vector<2x32xf32>
    %884 = arith.addf %880, %883 : vector<2x32xf32>
    %885 = math.tanh %884 : vector<2x32xf32>
    %cst_207 = arith.constant 1.000000e+00 : f32
    %886 = vector.broadcast %cst_207 : f32 to vector<2x32xf32>
    %887 = arith.subf %886, %879 : vector<2x32xf32>
    %888 = arith.mulf %887, %885 : vector<2x32xf32>
    %889 = arith.mulf %879, %830 : vector<2x32xf32>
    %890 = arith.addf %888, %889 : vector<2x32xf32>
    %c10_208 = arith.constant 10 : index
    %c0_209 = arith.constant 0 : index
    %891 = vector.load %arg19[%c10_208, %c0_209] : memref<16x32xf32, #tpu.memory_space<vmem>>, vector<2x32xf32>
    tpu.vector_store %arg19[%c10_208, %c0_209], %861 {strides = array<i32>} : memref<16x32xf32, #tpu.memory_space<vmem>>, vector<2x32xf32>,
    %c4_210 = arith.constant 4 : index
    %c0_211 = arith.constant 0 : index
    %892 = vector.load %arg20[%c4_210, %c0_211] : memref<16x32xf32, #tpu.memory_space<vmem>>, vector<2x32xf32>
    tpu.vector_store %arg20[%c4_210, %c0_211], %890 {strides = array<i32>} : memref<16x32xf32, #tpu.memory_space<vmem>>, vector<2x32xf32>,
    %893 = vector.extract_strided_slice %513 {offsets = [12, 0], sizes = [2, 96], strides = [1, 1]} : vector<16x96xf32> to vector<2x96xf32>
    %cst_212 = arith.constant dense<0.000000e+00> : vector<2x96xf32>
    %894 = tpu.matmul %861, %520, %cst_212 {dimension_numbers = #tpu.dot_dimension_numbers<[1], [0], [0], [1], [0, 0, 1, 1], [], []>} : vector<2x32xf32>, vector<32x96xf32>, vector<2x96xf32> -> vector<2x96xf32>
    %895 = vector.extract_strided_slice %893 {offsets = [0, 0], sizes = [2, 32], strides = [1, 1]} : vector<2x96xf32> to vector<2x32xf32>
    %896 = vector.extract_strided_slice %894 {offsets = [0, 0], sizes = [2, 32], strides = [1, 1]} : vector<2x96xf32> to vector<2x32xf32>
    %897 = arith.addf %895, %896 : vector<2x32xf32>
    %898 = arith.negf %897 : vector<2x32xf32>
    %899 = math.exp %898 : vector<2x32xf32>
    %cst_213 = arith.constant 1.000000e+00 : f32
    %900 = vector.broadcast %cst_213 : f32 to vector<2x32xf32>
    %901 = arith.addf %900, %899 : vector<2x32xf32>
    %902 = arith.divf %900, %901 : vector<2x32xf32>
    %903 = vector.extract_strided_slice %893 {offsets = [0, 32], sizes = [2, 32], strides = [1, 1]} : vector<2x96xf32> to vector<2x32xf32>
    %904 = vector.extract_strided_slice %894 {offsets = [0, 32], sizes = [2, 32], strides = [1, 1]} : vector<2x96xf32> to vector<2x32xf32>
    %905 = arith.addf %903, %904 : vector<2x32xf32>
    %906 = arith.negf %905 : vector<2x32xf32>
    %907 = math.exp %906 : vector<2x32xf32>
    %cst_214 = arith.constant 1.000000e+00 : f32
    %908 = vector.broadcast %cst_214 : f32 to vector<2x32xf32>
    %909 = arith.addf %908, %907 : vector<2x32xf32>
    %910 = arith.divf %908, %909 : vector<2x32xf32>
    %911 = vector.extract_strided_slice %893 {offsets = [0, 64], sizes = [2, 32], strides = [1, 1]} : vector<2x96xf32> to vector<2x32xf32>
    %912 = vector.extract_strided_slice %894 {offsets = [0, 64], sizes = [2, 32], strides = [1, 1]} : vector<2x96xf32> to vector<2x32xf32>
    %913 = arith.addf %912, %526 : vector<2x32xf32>
    %914 = arith.mulf %902, %913 : vector<2x32xf32>
    %915 = arith.addf %911, %914 : vector<2x32xf32>
    %916 = math.tanh %915 : vector<2x32xf32>
    %cst_215 = arith.constant 1.000000e+00 : f32
    %917 = vector.broadcast %cst_215 : f32 to vector<2x32xf32>
    %918 = arith.subf %917, %910 : vector<2x32xf32>
    %919 = arith.mulf %918, %916 : vector<2x32xf32>
    %920 = arith.mulf %910, %861 : vector<2x32xf32>
    %921 = arith.addf %919, %920 : vector<2x32xf32>
    %922 = vector.extract_strided_slice %518 {offsets = [2, 0], sizes = [2, 96], strides = [1, 1]} : vector<16x96xf32> to vector<2x96xf32>
    %cst_216 = arith.constant dense<0.000000e+00> : vector<2x96xf32>
    %923 = tpu.matmul %890, %522, %cst_216 {dimension_numbers = #tpu.dot_dimension_numbers<[1], [0], [0], [1], [0, 0, 1, 1], [], []>} : vector<2x32xf32>, vector<32x96xf32>, vector<2x96xf32> -> vector<2x96xf32>
    %924 = vector.extract_strided_slice %922 {offsets = [0, 0], sizes = [2, 32], strides = [1, 1]} : vector<2x96xf32> to vector<2x32xf32>
    %925 = vector.extract_strided_slice %923 {offsets = [0, 0], sizes = [2, 32], strides = [1, 1]} : vector<2x96xf32> to vector<2x32xf32>
    %926 = arith.addf %924, %925 : vector<2x32xf32>
    %927 = arith.negf %926 : vector<2x32xf32>
    %928 = math.exp %927 : vector<2x32xf32>
    %cst_217 = arith.constant 1.000000e+00 : f32
    %929 = vector.broadcast %cst_217 : f32 to vector<2x32xf32>
    %930 = arith.addf %929, %928 : vector<2x32xf32>
    %931 = arith.divf %929, %930 : vector<2x32xf32>
    %932 = vector.extract_strided_slice %922 {offsets = [0, 32], sizes = [2, 32], strides = [1, 1]} : vector<2x96xf32> to vector<2x32xf32>
    %933 = vector.extract_strided_slice %923 {offsets = [0, 32], sizes = [2, 32], strides = [1, 1]} : vector<2x96xf32> to vector<2x32xf32>
    %934 = arith.addf %932, %933 : vector<2x32xf32>
    %935 = arith.negf %934 : vector<2x32xf32>
    %936 = math.exp %935 : vector<2x32xf32>
    %cst_218 = arith.constant 1.000000e+00 : f32
    %937 = vector.broadcast %cst_218 : f32 to vector<2x32xf32>
    %938 = arith.addf %937, %936 : vector<2x32xf32>
    %939 = arith.divf %937, %938 : vector<2x32xf32>
    %940 = vector.extract_strided_slice %922 {offsets = [0, 64], sizes = [2, 32], strides = [1, 1]} : vector<2x96xf32> to vector<2x32xf32>
    %941 = vector.extract_strided_slice %923 {offsets = [0, 64], sizes = [2, 32], strides = [1, 1]} : vector<2x96xf32> to vector<2x32xf32>
    %942 = arith.addf %941, %530 : vector<2x32xf32>
    %943 = arith.mulf %931, %942 : vector<2x32xf32>
    %944 = arith.addf %940, %943 : vector<2x32xf32>
    %945 = math.tanh %944 : vector<2x32xf32>
    %cst_219 = arith.constant 1.000000e+00 : f32
    %946 = vector.broadcast %cst_219 : f32 to vector<2x32xf32>
    %947 = arith.subf %946, %939 : vector<2x32xf32>
    %948 = arith.mulf %947, %945 : vector<2x32xf32>
    %949 = arith.mulf %939, %890 : vector<2x32xf32>
    %950 = arith.addf %948, %949 : vector<2x32xf32>
    %c12_220 = arith.constant 12 : index
    %c0_221 = arith.constant 0 : index
    %951 = vector.load %arg19[%c12_220, %c0_221] : memref<16x32xf32, #tpu.memory_space<vmem>>, vector<2x32xf32>
    tpu.vector_store %arg19[%c12_220, %c0_221], %921 {strides = array<i32>} : memref<16x32xf32, #tpu.memory_space<vmem>>, vector<2x32xf32>,
    %c2_222 = arith.constant 2 : index
    %c0_223 = arith.constant 0 : index
    %952 = vector.load %arg20[%c2_222, %c0_223] : memref<16x32xf32, #tpu.memory_space<vmem>>, vector<2x32xf32>
    tpu.vector_store %arg20[%c2_222, %c0_223], %950 {strides = array<i32>} : memref<16x32xf32, #tpu.memory_space<vmem>>, vector<2x32xf32>,
    %953 = vector.extract_strided_slice %513 {offsets = [14, 0], sizes = [2, 96], strides = [1, 1]} : vector<16x96xf32> to vector<2x96xf32>
    %cst_224 = arith.constant dense<0.000000e+00> : vector<2x96xf32>
    %954 = tpu.matmul %921, %520, %cst_224 {dimension_numbers = #tpu.dot_dimension_numbers<[1], [0], [0], [1], [0, 0, 1, 1], [], []>} : vector<2x32xf32>, vector<32x96xf32>, vector<2x96xf32> -> vector<2x96xf32>
    %955 = vector.extract_strided_slice %953 {offsets = [0, 0], sizes = [2, 32], strides = [1, 1]} : vector<2x96xf32> to vector<2x32xf32>
    %956 = vector.extract_strided_slice %954 {offsets = [0, 0], sizes = [2, 32], strides = [1, 1]} : vector<2x96xf32> to vector<2x32xf32>
    %957 = arith.addf %955, %956 : vector<2x32xf32>
    %958 = arith.negf %957 : vector<2x32xf32>
    %959 = math.exp %958 : vector<2x32xf32>
    %cst_225 = arith.constant 1.000000e+00 : f32
    %960 = vector.broadcast %cst_225 : f32 to vector<2x32xf32>
    %961 = arith.addf %960, %959 : vector<2x32xf32>
    %962 = arith.divf %960, %961 : vector<2x32xf32>
    %963 = vector.extract_strided_slice %953 {offsets = [0, 32], sizes = [2, 32], strides = [1, 1]} : vector<2x96xf32> to vector<2x32xf32>
    %964 = vector.extract_strided_slice %954 {offsets = [0, 32], sizes = [2, 32], strides = [1, 1]} : vector<2x96xf32> to vector<2x32xf32>
    %965 = arith.addf %963, %964 : vector<2x32xf32>
    %966 = arith.negf %965 : vector<2x32xf32>
    %967 = math.exp %966 : vector<2x32xf32>
    %cst_226 = arith.constant 1.000000e+00 : f32
    %968 = vector.broadcast %cst_226 : f32 to vector<2x32xf32>
    %969 = arith.addf %968, %967 : vector<2x32xf32>
    %970 = arith.divf %968, %969 : vector<2x32xf32>
    %971 = vector.extract_strided_slice %953 {offsets = [0, 64], sizes = [2, 32], strides = [1, 1]} : vector<2x96xf32> to vector<2x32xf32>
    %972 = vector.extract_strided_slice %954 {offsets = [0, 64], sizes = [2, 32], strides = [1, 1]} : vector<2x96xf32> to vector<2x32xf32>
    %973 = arith.addf %972, %526 : vector<2x32xf32>
    %974 = arith.mulf %962, %973 : vector<2x32xf32>
    %975 = arith.addf %971, %974 : vector<2x32xf32>
    %976 = math.tanh %975 : vector<2x32xf32>
    %cst_227 = arith.constant 1.000000e+00 : f32
    %977 = vector.broadcast %cst_227 : f32 to vector<2x32xf32>
    %978 = arith.subf %977, %970 : vector<2x32xf32>
    %979 = arith.mulf %978, %976 : vector<2x32xf32>
    %980 = arith.mulf %970, %921 : vector<2x32xf32>
    %981 = arith.addf %979, %980 : vector<2x32xf32>
    %982 = vector.extract_strided_slice %518 {offsets = [0, 0], sizes = [2, 96], strides = [1, 1]} : vector<16x96xf32> to vector<2x96xf32>
    %cst_228 = arith.constant dense<0.000000e+00> : vector<2x96xf32>
    %983 = tpu.matmul %950, %522, %cst_228 {dimension_numbers = #tpu.dot_dimension_numbers<[1], [0], [0], [1], [0, 0, 1, 1], [], []>} : vector<2x32xf32>, vector<32x96xf32>, vector<2x96xf32> -> vector<2x96xf32>
    %984 = vector.extract_strided_slice %982 {offsets = [0, 0], sizes = [2, 32], strides = [1, 1]} : vector<2x96xf32> to vector<2x32xf32>
    %985 = vector.extract_strided_slice %983 {offsets = [0, 0], sizes = [2, 32], strides = [1, 1]} : vector<2x96xf32> to vector<2x32xf32>
    %986 = arith.addf %984, %985 : vector<2x32xf32>
    %987 = arith.negf %986 : vector<2x32xf32>
    %988 = math.exp %987 : vector<2x32xf32>
    %cst_229 = arith.constant 1.000000e+00 : f32
    %989 = vector.broadcast %cst_229 : f32 to vector<2x32xf32>
    %990 = arith.addf %989, %988 : vector<2x32xf32>
    %991 = arith.divf %989, %990 : vector<2x32xf32>
    %992 = vector.extract_strided_slice %982 {offsets = [0, 32], sizes = [2, 32], strides = [1, 1]} : vector<2x96xf32> to vector<2x32xf32>
    %993 = vector.extract_strided_slice %983 {offsets = [0, 32], sizes = [2, 32], strides = [1, 1]} : vector<2x96xf32> to vector<2x32xf32>
    %994 = arith.addf %992, %993 : vector<2x32xf32>
    %995 = arith.negf %994 : vector<2x32xf32>
    %996 = math.exp %995 : vector<2x32xf32>
    %cst_230 = arith.constant 1.000000e+00 : f32
    %997 = vector.broadcast %cst_230 : f32 to vector<2x32xf32>
    %998 = arith.addf %997, %996 : vector<2x32xf32>
    %999 = arith.divf %997, %998 : vector<2x32xf32>
    %1000 = vector.extract_strided_slice %982 {offsets = [0, 64], sizes = [2, 32], strides = [1, 1]} : vector<2x96xf32> to vector<2x32xf32>
    %1001 = vector.extract_strided_slice %983 {offsets = [0, 64], sizes = [2, 32], strides = [1, 1]} : vector<2x96xf32> to vector<2x32xf32>
    %1002 = arith.addf %1001, %530 : vector<2x32xf32>
    %1003 = arith.mulf %991, %1002 : vector<2x32xf32>
    %1004 = arith.addf %1000, %1003 : vector<2x32xf32>
    %1005 = math.tanh %1004 : vector<2x32xf32>
    %cst_231 = arith.constant 1.000000e+00 : f32
    %1006 = vector.broadcast %cst_231 : f32 to vector<2x32xf32>
    %1007 = arith.subf %1006, %999 : vector<2x32xf32>
    %1008 = arith.mulf %1007, %1005 : vector<2x32xf32>
    %1009 = arith.mulf %999, %950 : vector<2x32xf32>
    %1010 = arith.addf %1008, %1009 : vector<2x32xf32>
    %c14_232 = arith.constant 14 : index
    %c0_233 = arith.constant 0 : index
    %1011 = vector.load %arg19[%c14_232, %c0_233] : memref<16x32xf32, #tpu.memory_space<vmem>>, vector<2x32xf32>
    tpu.vector_store %arg19[%c14_232, %c0_233], %981 {strides = array<i32>} : memref<16x32xf32, #tpu.memory_space<vmem>>, vector<2x32xf32>,
    %c0_234 = arith.constant 0 : index
    %c0_235 = arith.constant 0 : index
    %1012 = vector.load %arg20[%c0_234, %c0_235] : memref<16x32xf32, #tpu.memory_space<vmem>>, vector<2x32xf32>
    tpu.vector_store %arg20[%c0_234, %c0_235], %1010 {strides = array<i32>} : memref<16x32xf32, #tpu.memory_space<vmem>>, vector<2x32xf32>,
    %c0_236 = arith.constant 0 : index
    %c0_237 = arith.constant 0 : index
    %1013 = vector.load %arg19[%c0_236, %c0_237] : memref<16x32xf32, #tpu.memory_space<vmem>>, vector<16x32xf32>
    %c0_238 = arith.constant 0 : index
    %c0_239 = arith.constant 0 : index
    %1014 = vector.load %arg20[%c0_238, %c0_239] : memref<16x32xf32, #tpu.memory_space<vmem>>, vector<16x32xf32>
    %1015 = tpu.concatenate %1013, %1014 in 1 : vector<16x32xf32>, vector<16x32xf32> -> vector<16x64xf32>
    %c0_240 = arith.constant 0 : index
    %c0_241 = arith.constant 0 : index
    %1016 = vector.load %arg14[%c0_240, %c0_241] : memref<64x10xf32, #tpu.memory_space<vmem>>, vector<64x10xf32>
    %cst_242 = arith.constant dense<0.000000e+00> : vector<16x10xf32>
    %1017 = tpu.matmul %1015, %1016, %cst_242 {dimension_numbers = #tpu.dot_dimension_numbers<[1], [0], [0], [1], [0, 0, 1, 1], [], []>} : vector<16x64xf32>, vector<64x10xf32>, vector<16x10xf32> -> vector<16x10xf32>
    %c0_243 = arith.constant 0 : index
    %c0_244 = arith.constant 0 : index
    %1018 = vector.load %arg15[%c0_243, %c0_244] : memref<1x10xf32, #tpu.memory_space<vmem>>, vector<1x10xf32>
    %1019 = vector.broadcast %1018 : vector<1x10xf32> to vector<16x10xf32>
    %1020 = arith.addf %1017, %1019 : vector<16x10xf32>
    %cst_245 = arith.constant dense<0xFF800000> : vector<16xf32>
    %1021 = vector.multi_reduction <maximumf>, %1020, %cst_245 [1] : vector<16x10xf32> to vector<16xf32>
    %1022 = vector.shape_cast %1021 : vector<16xf32> to vector<16x1xf32>
    %1023 = vector.broadcast %1022 : vector<16x1xf32> to vector<16x10xf32>
    %1024 = arith.subf %1020, %1023 : vector<16x10xf32>
    %1025 = math.exp %1024 : vector<16x10xf32>
    %cst_246 = arith.constant dense<0.000000e+00> : vector<16xf32>
    %1026 = vector.multi_reduction <add>, %1025, %cst_246 [1] : vector<16x10xf32> to vector<16xf32>
    %1027 = vector.shape_cast %1026 : vector<16xf32> to vector<16x1xf32>
    %1028 = math.log %1027 : vector<16x1xf32>
    %1029 = vector.broadcast %1028 : vector<16x1xf32> to vector<16x10xf32>
    %1030 = arith.subf %1024, %1029 : vector<16x10xf32>
    %c0_247 = arith.constant 0 : index
    %c0_248 = arith.constant 0 : index
    %1031 = vector.load %arg16[%c0_247, %c0_248] : memref<16x10xf32, #tpu.memory_space<vmem>>, vector<16x10xf32>
    tpu.vector_store %arg16[%c0_247, %c0_248], %1030 {strides = array<i32>} : memref<16x10xf32, #tpu.memory_space<vmem>>, vector<16x10xf32>,
    return
  }
  func.func @transform_0(%arg0: i32) -> (i32, i32) {
    %c0_i32 = arith.constant 0 : i32
    %c0_i32_0 = arith.constant 0 : i32
    %c0_i32_1 = arith.constant 0 : i32
    return %c0_i32, %c0_i32_0 : i32, i32
  }
  func.func @transform_1(%arg0: i32) -> (i32, i32) {
    %c0_i32 = arith.constant 0 : i32
    %c0_i32_0 = arith.constant 0 : i32
    %c0_i32_1 = arith.constant 0 : i32
    return %c0_i32, %c0_i32_0 : i32, i32
  }
  func.func @transform_2(%arg0: i32) -> (i32, i32) {
    %c0_i32 = arith.constant 0 : i32
    %c0_i32_0 = arith.constant 0 : i32
    %c0_i32_1 = arith.constant 0 : i32
    return %c0_i32, %c0_i32_0 : i32, i32
  }
  func.func @transform_3(%arg0: i32) -> (i32, i32) {
    %c0_i32 = arith.constant 0 : i32
    %c0_i32_0 = arith.constant 0 : i32
    %c0_i32_1 = arith.constant 0 : i32
    return %c0_i32, %c0_i32_0 : i32, i32
  }
  func.func @transform_4(%arg0: i32) -> (i32, i32) {
    %c0_i32 = arith.constant 0 : i32
    %c0_i32_0 = arith.constant 0 : i32
    %c0_i32_1 = arith.constant 0 : i32
    return %c0_i32, %c0_i32_0 : i32, i32
  }
  func.func @transform_5(%arg0: i32) -> (i32, i32, i32) {
    %c0_i32 = arith.constant 0 : i32
    %c0_i32_0 = arith.constant 0 : i32
    %c0_i32_1 = arith.constant 0 : i32
    %c0_i32_2 = arith.constant 0 : i32
    return %c0_i32, %c0_i32_0, %c0_i32_1 : i32, i32, i32
  }
  func.func @transform_6(%arg0: i32) -> (i32, i32, i32) {
    %c0_i32 = arith.constant 0 : i32
    %c0_i32_0 = arith.constant 0 : i32
    %c0_i32_1 = arith.constant 0 : i32
    %c0_i32_2 = arith.constant 0 : i32
    return %c0_i32, %c0_i32_0, %c0_i32_1 : i32, i32, i32
  }
  func.func @transform_7(%arg0: i32) -> (i32, i32) {
    %c0_i32 = arith.constant 0 : i32
    %c0_i32_0 = arith.constant 0 : i32
    %c0_i32_1 = arith.constant 0 : i32
    return %c0_i32, %c0_i32_0 : i32, i32
  }
  func.func @transform_8(%arg0: i32) -> (i32, i32) {
    %c0_i32 = arith.constant 0 : i32
    %c0_i32_0 = arith.constant 0 : i32
    %c0_i32_1 = arith.constant 0 : i32
    return %c0_i32, %c0_i32_0 : i32, i32
  }
  func.func @transform_9(%arg0: i32) -> (i32, i32) {
    %c0_i32 = arith.constant 0 : i32
    %c0_i32_0 = arith.constant 0 : i32
    %c0_i32_1 = arith.constant 0 : i32
    return %c0_i32, %c0_i32_0 : i32, i32
  }
  func.func @transform_10(%arg0: i32) -> (i32, i32) {
    %c0_i32 = arith.constant 0 : i32
    %c0_i32_0 = arith.constant 0 : i32
    %c0_i32_1 = arith.constant 0 : i32
    return %c0_i32, %c0_i32_0 : i32, i32
  }
  func.func @transform_11(%arg0: i32) -> (i32, i32, i32) {
    %c0_i32 = arith.constant 0 : i32
    %c0_i32_0 = arith.constant 0 : i32
    %c0_i32_1 = arith.constant 0 : i32
    %c0_i32_2 = arith.constant 0 : i32
    return %c0_i32, %c0_i32_0, %c0_i32_1 : i32, i32, i32
  }
  func.func @transform_12(%arg0: i32) -> (i32, i32, i32) {
    %c0_i32 = arith.constant 0 : i32
    %c0_i32_0 = arith.constant 0 : i32
    %c0_i32_1 = arith.constant 0 : i32
    %c0_i32_2 = arith.constant 0 : i32
    return %c0_i32, %c0_i32_0, %c0_i32_1 : i32, i32, i32
  }
  func.func @transform_13(%arg0: i32) -> (i32, i32) {
    %c0_i32 = arith.constant 0 : i32
    %c0_i32_0 = arith.constant 0 : i32
    %c0_i32_1 = arith.constant 0 : i32
    return %c0_i32, %c0_i32_0 : i32, i32
  }
  func.func @transform_14(%arg0: i32) -> (i32, i32) {
    %c0_i32 = arith.constant 0 : i32
    %c0_i32_0 = arith.constant 0 : i32
    %c0_i32_1 = arith.constant 0 : i32
    return %c0_i32, %c0_i32_0 : i32, i32
  }
  func.func @transform_15(%arg0: i32) -> (i32, i32) {
    %c0_i32 = arith.constant 0 : i32
    %c0_i32_0 = arith.constant 0 : i32
    %c0_i32_1 = arith.constant 0 : i32
    return %c0_i32, %c0_i32_0 : i32, i32
  }
}

</mosaic_0001>

<bundles_post_ra>
// kernel: gocrnn_forward.1
= control target key start
LH: loop header
LB: loop body
LE: loop exit
PB: predicated region body
PF: predicated region fallthrough
CT: control target
= control target key end

     0   :  { %v5162_v0 = vmov 0   ;;  %vm137_vm0 = vcmask 7168   ;;  %s5163_s18 = smov 64   ;;  %vm141_vm1 = vcmask 1040384   ;;  %v5164_v26 = vmov 0.0   ;;  %s6341_s2 = inlined_call_operand.vmem [shape: bf16[129,96], index: 2, kind: input, shape index: {}]   ;;  %s6342_s1 = inlined_call_operand.vmem [shape: bf16[129,96], index: 1, kind: input, shape index: {}]   ;;  %s6343_s0 = inlined_call_operand.vmem [shape: bf16[16,129], index: 0, kind: input, shape index: {}]   ;;  %s6344_s6 = inlined_call_operand.vmem [shape: f32[2,1,32], index: 6, kind: input, shape index: {}]   ;;  %s6345_s5 = inlined_call_operand.vmem [shape: f32[2,32,96], index: 5, kind: input, shape index: {}]   ;;  %s6346_s4 = inlined_call_operand.vmem [shape: f32[1,96], index: 4, kind: input, shape index: {}]   ;;  %s6347_s3 = inlined_call_operand.vmem [shape: f32[1,96], index: 3, kind: input, shape index: {}]   ;;  %s6348_s8 = inlined_call_operand.vmem [shape: bf16[64,96], index: 8, kind: input, shape index: {}]   ;;  %s6349_s7 = inlined_call_operand.vmem [shape: bf16[64,96], index: 7, kind: input, shape index: {}]   ;;  %s6350_s12 = inlined_call_operand.vmem [shape: f32[2,1,32], index: 12, kind: input, shape index: {}]   ;;  %s6351_s11 = inlined_call_operand.vmem [shape: f32[2,32,96], index: 11, kind: input, shape index: {}]   ;;  %s6352_s10 = inlined_call_operand.vmem [shape: f32[1,96], index: 10, kind: input, shape index: {}]   ;;  %s6353_s9 = inlined_call_operand.vmem [shape: f32[1,96], index: 9, kind: input, shape index: {}]   ;;  %s6354_s13 = inlined_call_operand.vmem [shape: f32[64,10], index: 13, kind: input, shape index: {}]   ;;  %s6355_s14 = inlined_call_operand.vmem [shape: f32[1,10], index: 14, kind: input, shape index: {}]   ;;  %s6356_s15 = inlined_call_operand.vmem [shape: f32[16,10], index: 15, kind: output, shape index: {}]  }
   0x1   :  { %266 = vmatprep.subr.bf16.mxu1 %v5162_v0  ;;  %v4922_v1 = vld [vmem:[%s6341_s2 + $0x38] sm:$0xff]   ;;  %147 = vmatprep.subr.bf16.mxu0 %v5162_v0  ;;  %v4923_v2 = vld [vmem:[%s6341_s2 + $0x30] sm:$0xff]   ;;  %v4925_v5 = vld [vmem:[%s6341_s2 + $0x28] sm:$0xff]   ;;  %v143_v20 = vsel %vm141_vm1, 65535, %v5162_v0  ;;  %vm5165_vm2 = vmmov 0   ;;  %vm329_vm3 = vcmask 261120  }
   0x2   :  { %267 = vmatpush1.bf16.msra.mxu1 %v4922_v1  ;;  %v4924_v3 = vld [vmem:[%s6342_s1 + $0x38] sm:$0xff]   ;;  %v4926_v4 = vld [vmem:[%s6342_s1 + $0x30] sm:$0xff]   ;;  %v4928_v6 = vld [vmem:[%s6342_s1 + $0x28] sm:$0xff]   ;;  %vm541_vm4 = vcmask 254976   ;;  %vm547_vm5 = vcmask 261126   ;;  %vm766_vm6 = vcmask 257026  }
   0x3   :  { %268 = vmatprep.subr.bf16.mxu1 %v5162_v0  ;;  %148 = vmatpush1.bf16.msra.mxu0 %v4924_v3  ;;  %v4927_v7 = vld [vmem:[%s6341_s2 + $0x20] sm:$0xff]   ;;  %v4929_v9 = vld [vmem:[%s6341_s2 + $0x18] sm:$0xff]   ;;  %v4931_v12 = vld [vmem:[%s6341_s2 + $0x10] sm:$0xff]   ;;  %vm772_vm7 = vcmask 259076   ;;  %vm2163_vm8 = vcmask 523264   ;;  %vm4192_vm9 = vcmask 80896  }
   0x4   :  { %149 = vmatprep.subr.bf16.mxu0 %v5162_v0  ;;  %v4930_v8 = vld [vmem:[%s6342_s1 + $0x20] sm:$0xff]   ;;  %v4932_v10 = vld [vmem:[%s6342_s1 + $0x18] sm:$0xff]   ;;  %v4934_v13 = vld [vmem:[%s6342_s1 + $0x10] sm:$0xff]  }
   0x5   :  { %v4940_v11 = vld [vmem:[%s6343_s0 + $0x4] ss:$8 sps:$4 sm:$0xff]   ;;  %v4253_v14 = vld [vmem:[%s6344_s6 + $0x1] ss:$0 sm:$0xff]  ;;  %v4251_v16 = vld [vmem:[%s6344_s6] ss:$0 sm:$0xff] }
   0x6   :  { %269 = vmatpush1.bf16.msra.mxu1 %v4923_v2  ;;  %4246 = vmatprep.mubr.msk.bf16.mxu1 %vm137_vm0, %v4940_v11  ;;  %v4933_v15 = vld [vmem:[%s6341_s2 + $0x8] sm:$0xff]   ;;  %v4935_v18 = vld [vmem:[%s6341_s2] sm:$0xff]   ;;  %v5339_v27 = vld [vmem:[%s6345_s5 + $0x18] sm:$0xff] }
   0x7   :  { %270 = vmatprep.subr.bf16.mxu1 %v5162_v0  ;;  %150 = vmatpush1.bf16.msra.mxu0 %v4926_v4  ;;  %v4936_v17 = vld [vmem:[%s6342_s1 + $0x8] sm:$0xff]   ;;  %v4937_v19 = vld [vmem:[%s6341_s2 + $0x40] ss:$0 sps:$4 sm:$0x11]   ;;  %v5344_v28 = vld [vmem:[%s6345_s5 + $0x10] sm:$0xff] }
   0x8   :  { %151 = vmatprep.subr.bf16.mxu0 %v5162_v0  ;;  %4235 = vmatprep.mubr.msk.bf16.mxu0 %vm137_vm0, %v4940_v11  ;;  %v4941_v21 = vld [vmem:[%s6342_s1] sm:$0xff]   ;;  %v264_v23 = vand.u32 %v4937_v19, %v143_v20  ;;  %v5354_v29 = vld [vmem:[%s6345_s5 + $0x8] sm:$0xff]  ;;  %v5371_v31 = vld [vmem:[%s6345_s5 + $0x38] sm:$0xff] }
   0x9   :  { %513 = vrot.lane.b32.xlu0 %v4253_v14, %s5163_s18  ;;  %v4942_v22 = vld [vmem:[%s6342_s1 + $0x40] ss:$0 sps:$4 sm:$0x11]   ;;  %v5381_v32 = vld [vmem:[%s6345_s5 + $0x30] sm:$0xff]  ;;  %v5390_v33 = vld [vmem:[%s6345_s5 + $0x28] sm:$0xff] }
   0xa   :  { %271 = vmatpush1.bf16.msra.mxu1 %v4925_v5  ;;  %v145_v24 = vand.u32 %v4942_v22, %v143_v20  ;;  %v4938_v25 = vld [vmem:[%s6343_s0] ss:$8 sps:$4 sm:$0xff]  }
   0xb   :  { %272 = vmatprep.subr.bf16.mxu1 %v5162_v0  ;;  %152 = vmatpush1.bf16.msra.mxu0 %v4928_v6  ;;  %v5362_v30 = vld [vmem:[%s6345_s5] sm:$0xff] }
   0xc   :  { %153 = vmatprep.subr.bf16.mxu0 %v5162_v0  ;;  %v5399_v34 = vld [vmem:[%s6345_s5 + $0x20] sm:$0xff] }
   0xd   :  { %410 = vrot.lane.b32.xlu0 %v4251_v16, %s5163_s18  ;;  %v4236_v35 = vld [vmem:[%s6346_s4] ss:$0 sm:$0xff] }
   0xe   :  { %273 = vmatpush1.bf16.msra.mxu1 %v4927_v7  ;;  %v4223_v46 = vld [vmem:[%s6347_s3] ss:$0 sm:$0xff]  ;;  %s5166_s3 = smov 96  }
   0xf   :  { %274 = vmatprep.subr.bf16.mxu1 %v5162_v0  ;;  %154 = vmatpush1.bf16.msra.mxu0 %v4930_v8 }
  0x10   :  { %155 = vmatprep.subr.bf16.mxu0 %v5162_v0 }
  0x12   :  { %275 = vmatpush1.bf16.msra.mxu1 %v4929_v9 }
  0x13   :  { %276 = vmatprep.subr.bf16.mxu1 %v5162_v0  ;;  %156 = vmatpush1.bf16.msra.mxu0 %v4932_v10 }
  0x14   :  { %157 = vmatprep.subr.bf16.mxu0 %v5162_v0 }
  0x16   :  { %277 = vmatpush1.bf16.msra.mxu1 %v4931_v12 }
  0x17   :  { %278 = vmatprep.subr.bf16.mxu1 %v5162_v0  ;;  %158 = vmatpush1.bf16.msra.mxu0 %v4934_v13 }
  0x18   :  { %159 = vmatprep.subr.bf16.mxu0 %v5162_v0 }
  0x1a   :  { %279 = vmatpush1.bf16.msra.mxu1 %v4933_v15 }
  0x1b   :  { %280 = vmatprep.subr.bf16.mxu1 %v5162_v0  ;;  %160 = vmatpush1.bf16.msra.mxu0 %v4936_v17 }
  0x1c   :  { %161 = vmatprep.subr.bf16.mxu0 %v5162_v0 }
  0x1e   :  { %281 = vmatpush1.bf16.msra.mxu1 %v4935_v18 }
  0x1f   :  { %296 = vmatprep.subr.bf16.mxu1 %v5162_v0  ;;  %162 = vmatpush1.bf16.msra.mxu0 %v4941_v21 }
  0x20   :  { %177 = vmatprep.subr.bf16.mxu0 %v5162_v0 }
  0x22   :  { %297 = vmatpush2.bf16.msra.mxu1 %v264_v23 }
  0x23   :  { %4516 = vmatprep.subr.mxu1 %v5164_v26  ;;  %178 = vmatpush2.bf16.msra.mxu0 %v145_v24 }
  0x24   :  { %4538 = vmatprep.subr.mxu0 %v5164_v26 }
  0x25   :  { %299 = vmatmul.mubr.bf16.vlgmr.msra.gmra.mxu1 %v4938_v25 }
  0x26   :  { %4517 = vmatpush3.msra.mxu1 %v5339_v27  ;;  %4524 = vmatprep.mubr.msk.f32.mxu1 %vm5165_vm2, %v5164_v26 }
  0x27   :  { %4518 = vmatprep.subr.mxu1 %v5164_v26  ;;  %180 = vmatmul.mubr.bf16.vlgmr.msra.gmra.mxu0 %v4938_v25 }
  0x28   :  { %4519 = vmatpush3.msra.mxu1 %v5344_v28  ;;  %4539 = vmatpush3.msra.mxu0 %v5339_v27 }
  0x29   :  { %4520 = vmatprep.subr.mxu1 %v5164_v26  ;;  %4540 = vmatprep.subr.mxu0 %v5164_v26 }
  0x2a   :  { %4521 = vmatpush3.msra.mxu1 %v5354_v29  ;;  %4541 = vmatpush3.msra.mxu0 %v5344_v28 }
  0x2b   :  { %4522 = vmatprep.subr.mxu1 %v5164_v26  ;;  %4542 = vmatprep.subr.mxu0 %v5164_v26 }
  0x2c   :  { %4523 = vmatpush3.msra.mxu1 %v5362_v30  ;;  %4543 = vmatpush3.msra.mxu0 %v5354_v29 }
  0x2d   :  { %4525 = vmatmul.mubr.f32.vlgmr.msra.gmra.mxu1 %v5164_v26  ;;  %4527 = vmatprep.subr.mxu1 %v5164_v26 }
  0x2e   :  { %4528 = vmatpush3.msra.mxu1 %v5371_v31  ;;  %4535 = vmatprep.mubr.msk.f32.mxu1 %vm5165_vm2, %v5164_v26 }
  0x2f   :  { %4529 = vmatprep.subr.mxu1 %v5164_v26  ;;  %4544 = vmatprep.subr.mxu0 %v5164_v26 }
  0x30   :  { %4530 = vmatpush3.msra.mxu1 %v5381_v32  ;;  %4545 = vmatpush3.msra.mxu0 %v5362_v30 }
  0x31   :  { %4531 = vmatprep.subr.mxu1 %v5164_v26  ;;  %4546 = vmatprep.mubr.msk.f32.mxu0 %vm5165_vm2, %v5164_v26 }
  0x32   :  { %4532 = vmatpush3.msra.mxu1 %v5390_v33  ;;  %4560 = vmatprep.subr.mxu0 %v5164_v26 }
  0x33   :  { %4533 = vmatprep.subr.mxu1 %v5164_v26 }
  0x34   :  { %4534 = vmatpush3.msra.mxu1 %v5399_v34 }
  0x35   :  { %4536 = vmatmul.mubr.f32.vlgmr.msra.gmra.mxu1 %v5164_v26  ;;  %4549 = vmatprep.subr.mxu1 %v5164_v26 }
  0x36   :  { %4550 = vmatpush3.msra.mxu1 %v5371_v31  ;;  %4557 = vmatprep.mubr.msk.f32.mxu1 %vm5165_vm2, %v5164_v26 }
  0x37   :  { %4551 = vmatprep.subr.mxu1 %v5164_v26 }
  0x38   :  { %4552 = vmatpush3.msra.mxu1 %v5381_v32 }
  0x39   :  { %4553 = vmatprep.subr.mxu1 %v5164_v26 }
  0x3a   :  { %4554 = vmatpush3.msra.mxu1 %v5390_v33 }
  0x3b   :  { %4555 = vmatprep.subr.mxu1 %v5164_v26 }
  0x3c   :  { %4556 = vmatpush3.msra.mxu1 %v5399_v34 }
  0x3d   :  { %4571 = vmatprep.subr.mxu1 %v5164_v26 }
  0x7b   :  { %v5424_v45 = vpop.permute.xlu0 %513 }
  0x7f   :  { %v5432_v54 = vpop.permute.xlu0 %410 }
  0xe5   :  { %v300_v36 = vpop.f32.mrf.mxu1 }
  0xe6   :  { %v5422_v37 = vadd.f32 %v4236_v35, %v300_v36 }
  0xe7   :  { %v302_v38 = vpop.f32.mrf.mxu1  ;;  %v181_v39 = vpop.f32.mrf.mxu0 }
  0xe8   :  { %v5439_v58 = vadd.f32 %v4223_v46, %v181_v39 }
  0xe9   :  { %v303_v40 = vpop.f32.mrf.mxu1  ;;  %v183_v41 = vpop.f32.mrf.mxu0 }
  0xea   :  { %v5437_v57 = vadd.f32 %v4236_v35, %v303_v40 }
  0xeb   :  { %v305_v42 = vpop.f32.mrf.mxu1  ;;  %v184_v47 = vpop.f32.mrf.mxu0 }
  0xec   :  { %v5429_v48 = vadd.f32 %v4223_v46, %v184_v47 }
  0xed   :  { %v399_v43 = vpop.f32.mrf.mxu1  ;;  %v186_v50 = vpop.f32.mrf.mxu0 }
  0xee   :  { %v413_v55 = vadd.f32 %v5432_v54, %v399_v43  ;;  %v403_v60 = vadd.f32 %v399_v43, %v5439_v58 }
  0xef   :  { %v4526_v44 = vpop.f32.mrf.mxu1 }
  0xf0   :  { %v4254_v62 = vmul.f32 -1.442695, %v403_v60 }
  0xf5   :  { %v499_v49 = vpop.f32.mrf.mxu1 }
  0xf6   :  { %v516_v51 = vadd.f32 %v5424_v45, %v499_v49  ;;  %v504_v56 = vrot.slane %v499_v49, 2 }
  0xf7   :  { %v4537_v52 = vpop.f32.mrf.mxu1 }
  0xf8   :  { %v518_v53 = vrot.slane %v516_v51, 2  ;;  %v506_v59 = vadd.f32 %v504_v56, %v5437_v57 }
  0xfa   :  { %519 = vrot.lane.b32.xlu1 %v518_v53, %s5163_s18  ;;  %v4255_v61 = vmul.f32 -1.442695, %v506_v59 }
  0xfc   :  { %4951 = vpow2.f32 %v4255_v61 }
  0xfd   :  { %4953 = vpow2.f32 %v4254_v62 }
  0xfe   :  { %415 = vrot.lane.b32.xlu1 %v413_v55, %s5163_s18 }
 0x109   :  { %v4952_v63 = vpop.eup %4951 }
 0x10a   :  { %v510_v0 = vadd.f32 1.0, %v4952_v63  ;;  %v4954_v1 = vpop.eup %4953 }
 0x10b   :  { %v407_v2 = vadd.f32 1.0, %v4954_v1 }
 0x10c   :  { %4955 = vrcp.f32 %v510_v0 }
 0x10d   :  { %4957 = vrcp.f32 %v407_v2 }
 0x119   :  { %v4956_v3 = vpop.eup %4955 }
 0x11a   :  { %v4958_v6 = vpop.eup %4957  ;;  %v529_v15 = vsub.f32 1.0, %v4956_v3  ;;  %v535_v17 = vmul.f32 0.0, %v4956_v3 }
 0x11b   :  { %v425_v20 = vsub.f32 1.0, %v4958_v6  ;;  %v431_v22 = vmul.f32 0.0, %v4958_v6 }
 0x16c   :  { %v520_v4 = vpop.permute.xlu1 %519 }
 0x16d   :  { %v522_v5 = vmul.f32 %v4956_v3, %v520_v4 }
 0x16f   :  { %524 = vrot.lane.b32.xlu0 %v522_v5, %s5163_s18 }
 0x170   :  { %v416_v7 = vpop.permute.xlu1 %415 }
 0x171   :  { %v418_v8 = vmul.f32 %v4958_v6, %v416_v7 }
 0x173   :  { %420 = vrot.lane.b32.xlu1 %v418_v8, %s5163_s18 }
 0x1e1   :  { %v525_v9 = vpop.permute.xlu0 %524 }
 0x1e2   :  { %v527_v10 = vadd.f32 %v525_v9, %v5437_v57 }
 0x1e4   :  { %4959 = vtanh.f32 %v527_v10 }
 0x1e5   :  { %v421_v11 = vpop.permute.xlu1 %420 }
 0x1e6   :  { %v423_v12 = vadd.f32 %v421_v11, %v5439_v58 }
 0x1e8   :  { %4961 = vtanh.f32 %v423_v12 }
 0x1f1   :  { %v4960_v13 = vpop.eup %4959 }
 0x1f2   :  { %531 = vrot.lane.b32.xlu0 %v4960_v13, %s5166_s3 }
 0x1f5   :  { %v4962_v14 = vpop.eup %4961 }
 0x1f6   :  { %427 = vrot.lane.b32.xlu1 %v4962_v14, %s5166_s3 }
 0x264   :  { %v532_v16 = vpop.permute.xlu0 %531 }
 0x265   :  { %v534_v18 = vmul.f32 %v532_v16, %v529_v15 }
 0x267   :  { %v5449_v19 = vadd.f32 %v535_v17, %v534_v18 }
 0x268   :  { %v428_v21 = vpop.permute.xlu1 %427 }
 0x269   :  { %v430_v23 = vmul.f32 %v428_v21, %v425_v20  ;;  %v654_v24 = vrot.slane %v5449_v19, 6  ;;  %v758_v10 = vrot.slane %v5449_v19, 2 }
 0x26b   :  { %v5452_v25 = vadd.f32 %v431_v22, %v430_v23  ;;  %655 = vrot.lane.b32.xlu0 %v654_v24, %s5166_s3 }
 0x26d   :  { %538 = vrot.lane.b32.xlu1 %v5452_v25, %s5166_s3  ;;  %v650_v12 = vrot.slane %v5452_v25, 6 }
 0x2dd   :  { %v656_v35 = vpop.permute.xlu0 %655 }
 0x2de   :  { %4558 = vmatmul.mubr.msk.f32.vlgmr.msra.gmra.mxu1 %vm329_vm3, %v656_v35 }
 0x2df   :  { %v539_v36 = vpop.permute.xlu1 %538  ;;  %4572 = vmatpush3.msra.mxu1 %v5371_v31  ;;  %4579 = vmatprep.mubr.msk.f32.mxu1 %vm5165_vm2, %v5164_v26 }
 0x2e0   :  { %542 = vst.msk [vmem:[#allocation2] sm:$0x3] %vm541_vm4, %v539_v36  ;;  %4547 = vmatmul.mubr.msk.f32.vlgmr.msra.gmra.mxu0 %vm329_vm3, %v539_v36  ;;  %4573 = vmatprep.subr.mxu1 %v5164_v26 }
 0x2e1   :  { %4561 = vmatpush3.msra.mxu0 %v5339_v27  ;;  %4574 = vmatpush3.msra.mxu1 %v5381_v32 }
 0x2e2   :  { %4562 = vmatprep.subr.mxu0 %v5164_v26  ;;  %4575 = vmatprep.subr.mxu1 %v5164_v26 }
 0x2e3   :  { %4563 = vmatpush3.msra.mxu0 %v5344_v28  ;;  %4576 = vmatpush3.msra.mxu1 %v5390_v33 }
 0x2e4   :  { %4564 = vmatprep.subr.mxu0 %v5164_v26  ;;  %4577 = vmatprep.subr.mxu1 %v5164_v26 }
 0x2e5   :  { %4578 = vmatpush3.msra.mxu1 %v5399_v34  ;;  %4565 = vmatpush3.msra.mxu0 %v5354_v29 }
 0x2e6   :  { %4566 = vmatprep.subr.mxu0 %v5164_v26  ;;  %4568 = vmatprep.mubr.msk.f32.mxu0 %vm5165_vm2, %v5164_v26 }
 0x2e7   :  { %4567 = vmatpush3.msra.mxu0 %v5362_v30  ;;  %4593 = vmatprep.subr.mxu1 %v5164_v26 }
 0x2e8   :  { %4582 = vmatprep.subr.mxu0 %v5164_v26 }
 0x39e   :  { %v725_v38 = vpop.f32.mrf.mxu1 }
 0x39f   :  { %v739_v39 = vadd.f32 %v725_v38, %v5424_v45  ;;  %v730_v47 = vrot.slane %v725_v38, 4 }
 0x3a0   :  { %v617_v40 = vpop.f32.mrf.mxu0  ;;  %v4559_v41 = vpop.f32.mrf.mxu1 }
 0x3a1   :  { %v741_v42 = vrot.slane %v739_v39, 4  ;;  %v631_v43 = vadd.f32 %v617_v40, %v5432_v54  ;;  %v622_v49 = vrot.slane %v617_v40, 6  ;;  %v732_v50 = vadd.f32 %v730_v47, %v5437_v57 }
 0x3a2   :  { %v4548_v44 = vpop.f32.mrf.mxu0 }
 0x3a3   :  { %v633_v46 = vrot.slane %v631_v43, 6  ;;  %742 = vrot.lane.b32.xlu0 %v741_v42, %s5163_s18  ;;  %v624_v51 = vadd.f32 %v622_v49, %v5439_v58  ;;  %v4259_v52 = vmul.f32 -1.442695, %v732_v50 }
 0x3a5   :  { %634 = vrot.lane.b32.xlu1 %v633_v46, %s5163_s18  ;;  %v4257_v53 = vmul.f32 -1.442695, %v624_v51  ;;  %4963 = vpow2.f32 %v4259_v52 }
 0x3a7   :  { %4965 = vpow2.f32 %v4257_v53 }
 0x3b2   :  { %v4964_v55 = vpop.eup %4963 }
 0x3b3   :  { %v736_v59 = vadd.f32 1.0, %v4964_v55 }
 0x3b4   :  { %v4966_v56 = vpop.eup %4965 }
 0x3b5   :  { %v628_v60 = vadd.f32 1.0, %v4966_v56  ;;  %4967 = vrcp.f32 %v736_v59 }
 0x3b7   :  { %4969 = vrcp.f32 %v628_v60 }
 0x3c2   :  { %v4968_v61 = vpop.eup %4967 }
 0x3c3   :  { %v752_v9 = vsub.f32 1.0, %v4968_v61  ;;  %v760_v13 = vmul.f32 %v4968_v61, %v758_v10 }
 0x3c4   :  { %v4970_v0 = vpop.eup %4969 }
 0x3c5   :  { %v644_v15 = vsub.f32 1.0, %v4970_v0  ;;  %v652_v20 = vmul.f32 %v4970_v0, %v650_v12 }
 0x415   :  { %v743_v62 = vpop.permute.xlu0 %742 }
 0x416   :  { %v745_v63 = vmul.f32 %v4968_v61, %v743_v62 }
 0x417   :  { %v635_v1 = vpop.permute.xlu1 %634 }
 0x418   :  { %v637_v2 = vmul.f32 %v4970_v0, %v635_v1  ;;  %747 = vrot.lane.b32.xlu0 %v745_v63, %s5163_s18 }
 0x41a   :  { %639 = vrot.lane.b32.xlu1 %v637_v2, %s5163_s18 }
 0x48a   :  { %v748_v3 = vpop.permute.xlu0 %747 }
 0x48b   :  { %v750_v4 = vadd.f32 %v748_v3, %v5437_v57 }
 0x48c   :  { %v640_v5 = vpop.permute.xlu1 %639 }
 0x48d   :  { %4971 = vtanh.f32 %v750_v4  ;;  %v642_v6 = vadd.f32 %v640_v5, %v5439_v58 }
 0x48f   :  { %4973 = vtanh.f32 %v642_v6 }
 0x49a   :  { %v4972_v7 = vpop.eup %4971 }
 0x49b   :  { %754 = vrot.lane.b32.xlu0 %v4972_v7, %s5166_s3 }
 0x49c   :  { %v4974_v8 = vpop.eup %4973 }
 0x49d   :  { %646 = vrot.lane.b32.xlu1 %v4974_v8, %s5166_s3 }
 0x50d   :  { %v755_v11 = vpop.permute.xlu0 %754 }
 0x50e   :  { %v757_v14 = vmul.f32 %v755_v11, %v752_v9 }
 0x50f   :  { %v647_v16 = vpop.permute.xlu1 %646 }
 0x510   :  { %v5494_v17 = vadd.f32 %v760_v13, %v757_v14  ;;  %v649_v18 = vmul.f32 %v647_v16, %v644_v15 }
 0x512   :  { %v5496_v21 = vadd.f32 %v652_v20, %v649_v18  ;;  %v882_v22 = vrot.slane %v5494_v17, 4  ;;  %v986_v8 = vrot.slane %v5494_v17, 2 }
 0x514   :  { %883 = vrot.lane.b32.xlu0 %v882_v22, %s5166_s3  ;;  %v774_v23 = vrot.slane %v5496_v21, 2  ;;  %v878_v13 = vrot.slane %v5496_v21, 6 }
 0x516   :  { %775 = vrot.lane.b32.xlu1 %v774_v23, %s5166_s3 }
 0x586   :  { %v884_v24 = vpop.permute.xlu0 %883 }
 0x587   :  { %4580 = vmatmul.mubr.msk.f32.vlgmr.msra.gmra.mxu1 %vm329_vm3, %v884_v24 }
 0x588   :  { %v776_v25 = vpop.permute.xlu1 %775  ;;  %4594 = vmatpush3.msra.mxu1 %v5371_v31  ;;  %4601 = vmatprep.mubr.msk.f32.mxu1 %vm5165_vm2, %v5164_v26 }
 0x589   :  { %4569 = vmatmul.mubr.msk.f32.vlgmr.msra.gmra.mxu0 %vm329_vm3, %v776_v25  ;;  %4595 = vmatprep.subr.mxu1 %v5164_v26 }
 0x58a   :  { %4583 = vmatpush3.msra.mxu0 %v5339_v27  ;;  %4596 = vmatpush3.msra.mxu1 %v5381_v32 }
 0x58b   :  { %4584 = vmatprep.subr.mxu0 %v5164_v26  ;;  %4597 = vmatprep.subr.mxu1 %v5164_v26 }
 0x58c   :  { %4585 = vmatpush3.msra.mxu0 %v5344_v28  ;;  %4598 = vmatpush3.msra.mxu1 %v5390_v33 }
 0x58d   :  { %4586 = vmatprep.subr.mxu0 %v5164_v26  ;;  %4599 = vmatprep.subr.mxu1 %v5164_v26 }
 0x58e   :  { %4600 = vmatpush3.msra.mxu1 %v5399_v34  ;;  %4587 = vmatpush3.msra.mxu0 %v5354_v29 }
 0x58f   :  { %4588 = vmatprep.subr.mxu0 %v5164_v26  ;;  %4590 = vmatprep.mubr.msk.f32.mxu0 %vm5165_vm2, %v5164_v26 }
 0x590   :  { %4589 = vmatpush3.msra.mxu0 %v5362_v30  ;;  %4615 = vmatprep.subr.mxu1 %v5164_v26 }
 0x591   :  { %4604 = vmatprep.subr.mxu0 %v5164_v26 }
 0x647   :  { %v953_v35 = vpop.f32.mrf.mxu1 }
 0x648   :  { %v967_v36 = vadd.f32 %v953_v35, %v5424_v45  ;;  %v958_v44 = vrot.slane %v953_v35, 6 }
 0x649   :  { %v845_v38 = vpop.f32.mrf.mxu0  ;;  %v4581_v39 = vpop.f32.mrf.mxu1 }
 0x64a   :  { %v969_v40 = vrot.slane %v967_v36, 6  ;;  %v859_v41 = vadd.f32 %v845_v38, %v5432_v54  ;;  %v850_v46 = vrot.slane %v845_v38, 4  ;;  %v960_v47 = vadd.f32 %v958_v44, %v5437_v57 }
 0x64b   :  { %v4570_v42 = vpop.f32.mrf.mxu0 }
 0x64c   :  { %v861_v43 = vrot.slane %v859_v41, 4  ;;  %970 = vrot.lane.b32.xlu0 %v969_v40, %s5163_s18  ;;  %v852_v49 = vadd.f32 %v850_v46, %v5439_v58  ;;  %v4263_v50 = vmul.f32 -1.442695, %v960_v47 }
 0x64e   :  { %862 = vrot.lane.b32.xlu1 %v861_v43, %s5163_s18  ;;  %v4261_v51 = vmul.f32 -1.442695, %v852_v49  ;;  %4975 = vpow2.f32 %v4263_v50 }
 0x650   :  { %4977 = vpow2.f32 %v4261_v51 }
 0x65b   :  { %v4976_v52 = vpop.eup %4975 }
 0x65c   :  { %v964_v55 = vadd.f32 1.0, %v4976_v52 }
 0x65d   :  { %v4978_v53 = vpop.eup %4977 }
 0x65e   :  { %v856_v56 = vadd.f32 1.0, %v4978_v53  ;;  %4979 = vrcp.f32 %v964_v55 }
 0x660   :  { %4981 = vrcp.f32 %v856_v56 }
 0x66b   :  { %v4980_v59 = vpop.eup %4979 }
 0x66c   :  { %v980_v7 = vsub.f32 1.0, %v4980_v59  ;;  %v988_v10 = vmul.f32 %v4980_v59, %v986_v8 }
 0x66d   :  { %v4982_v62 = vpop.eup %4981 }
 0x66e   :  { %v872_v12 = vsub.f32 1.0, %v4982_v62  ;;  %v880_v16 = vmul.f32 %v4982_v62, %v878_v13 }
 0x6be   :  { %v971_v60 = vpop.permute.xlu0 %970 }
 0x6bf   :  { %v973_v61 = vmul.f32 %v4980_v59, %v971_v60 }
 0x6c0   :  { %v863_v63 = vpop.permute.xlu1 %862 }
 0x6c1   :  { %v865_v0 = vmul.f32 %v4982_v62, %v863_v63  ;;  %975 = vrot.lane.b32.xlu0 %v973_v61, %s5163_s18 }
 0x6c3   :  { %867 = vrot.lane.b32.xlu1 %v865_v0, %s5163_s18 }
 0x733   :  { %v976_v1 = vpop.permute.xlu0 %975 }
 0x734   :  { %v978_v2 = vadd.f32 %v976_v1, %v5437_v57 }
 0x735   :  { %v868_v3 = vpop.permute.xlu1 %867 }
 0x736   :  { %4983 = vtanh.f32 %v978_v2  ;;  %v870_v4 = vadd.f32 %v868_v3, %v5439_v58 }
 0x738   :  { %4985 = vtanh.f32 %v870_v4 }
 0x743   :  { %v4984_v5 = vpop.eup %4983 }
 0x744   :  { %982 = vrot.lane.b32.xlu0 %v4984_v5, %s5166_s3 }
 0x745   :  { %v4986_v6 = vpop.eup %4985 }
 0x746   :  { %874 = vrot.lane.b32.xlu1 %v4986_v6, %s5166_s3 }
 0x7b6   :  { %v983_v9 = vpop.permute.xlu0 %982 }
 0x7b7   :  { %v985_v11 = vmul.f32 %v983_v9, %v980_v7 }
 0x7b8   :  { %v875_v14 = vpop.permute.xlu1 %874 }
 0x7b9   :  { %v5538_v15 = vadd.f32 %v988_v10, %v985_v11  ;;  %v877_v18 = vmul.f32 %v875_v14, %v872_v12 }
 0x7bb   :  { %v5540_v20 = vadd.f32 %v880_v16, %v877_v18  ;;  %v1108_v22 = vrot.slane %v5538_v15, 2 }
 0x7bd   :  { %1109 = vrot.lane.b32.xlu0 %v1108_v22, %s5166_s3  ;;  %v1000_v23 = vrot.slane %v5540_v20, 4  ;;  %v1104_v10 = vrot.slane %v5540_v20, 6 }
 0x7bf   :  { %1001 = vrot.lane.b32.xlu1 %v1000_v23, %s5166_s3 }
 0x82f   :  { %v1110_v24 = vpop.permute.xlu0 %1109 }
 0x830   :  { %4602 = vmatmul.mubr.msk.f32.vlgmr.msra.gmra.mxu1 %vm329_vm3, %v1110_v24 }
 0x831   :  { %v1002_v25 = vpop.permute.xlu1 %1001  ;;  %4616 = vmatpush3.msra.mxu1 %v5371_v31  ;;  %4623 = vmatprep.mubr.msk.f32.mxu1 %vm5165_vm2, %v5164_v26 }
 0x832   :  { %4591 = vmatmul.mubr.msk.f32.vlgmr.msra.gmra.mxu0 %vm329_vm3, %v1002_v25  ;;  %4617 = vmatprep.subr.mxu1 %v5164_v26 }
 0x833   :  { %4618 = vmatpush3.msra.mxu1 %v5381_v32  ;;  %4605 = vmatpush3.msra.mxu0 %v5339_v27 }
 0x834   :  { %4619 = vmatprep.subr.mxu1 %v5164_v26  ;;  %4606 = vmatprep.subr.mxu0 %v5164_v26 }
 0x835   :  { %4620 = vmatpush3.msra.mxu1 %v5390_v33  ;;  %4607 = vmatpush3.msra.mxu0 %v5344_v28 }
 0x836   :  { %4621 = vmatprep.subr.mxu1 %v5164_v26  ;;  %4608 = vmatprep.subr.mxu0 %v5164_v26 }
 0x837   :  { %4622 = vmatpush3.msra.mxu1 %v5399_v34  ;;  %4609 = vmatpush3.msra.mxu0 %v5354_v29 }
 0x838   :  { %4610 = vmatprep.subr.mxu0 %v5164_v26  ;;  %4612 = vmatprep.mubr.msk.f32.mxu0 %vm5165_vm2, %v5164_v26 }
 0x839   :  { %4611 = vmatpush3.msra.mxu0 %v5362_v30  ;;  %4637 = vmatprep.subr.mxu1 %v5164_v26 }
 0x83a   :  { %4626 = vmatprep.subr.mxu0 %v5164_v26 }
 0x8f0   :  { %v1179_v35 = vpop.f32.mrf.mxu1 }
 0x8f1   :  { %v1190_v36 = vadd.f32 %v1179_v35, %v5424_v45  ;;  %v1183_v43 = vadd.f32 %v1179_v35, %v5437_v57 }
 0x8f2   :  { %v1071_v38 = vpop.f32.mrf.mxu0  ;;  %v4603_v39 = vpop.f32.mrf.mxu1 }
 0x8f3   :  { %v1085_v40 = vadd.f32 %v1071_v38, %v5432_v54  ;;  %1192 = vrot.lane.b32.xlu0 %v1190_v36, %s5163_s18  ;;  %v1076_v44 = vrot.slane %v1071_v38, 2  ;;  %v4267_v46 = vmul.f32 -1.442695, %v1183_v43 }
 0x8f4   :  { %v4592_v41 = vpop.f32.mrf.mxu0 }
 0x8f5   :  { %v1087_v42 = vrot.slane %v1085_v40, 2  ;;  %v1078_v47 = vadd.f32 %v1076_v44, %v5439_v58  ;;  %4987 = vpow2.f32 %v4267_v46 }
 0x8f7   :  { %1088 = vrot.lane.b32.xlu1 %v1087_v42, %s5163_s18  ;;  %v4265_v49 = vmul.f32 -1.442695, %v1078_v47 }
 0x8f9   :  { %4989 = vpow2.f32 %v4265_v49 }
 0x902   :  { %v4988_v50 = vpop.eup %4987 }
 0x903   :  { %v1187_v51 = vadd.f32 1.0, %v4988_v50 }
 0x905   :  { %4991 = vrcp.f32 %v1187_v51 }
 0x906   :  { %v4990_v52 = vpop.eup %4989 }
 0x907   :  { %v1082_v53 = vadd.f32 1.0, %v4990_v52 }
 0x909   :  { %4993 = vrcp.f32 %v1082_v53 }
 0x912   :  { %v4992_v55 = vpop.eup %4991 }
 0x913   :  { %v1202_v5 = vsub.f32 1.0, %v4992_v55  ;;  %v1209_v7 = vmul.f32 %v4992_v55, %v1108_v22 }
 0x916   :  { %v4994_v60 = vpop.eup %4993 }
 0x965   :  { %v1193_v56 = vpop.permute.xlu0 %1192 }
 0x966   :  { %v1195_v59 = vmul.f32 %v4992_v55, %v1193_v56 }
 0x968   :  { %1197 = vrot.lane.b32.xlu0 %v1195_v59, %s5163_s18 }
 0x969   :  { %v1089_v61 = vpop.permute.xlu1 %1088 }
 0x96a   :  { %v1091_v62 = vmul.f32 %v4994_v60, %v1089_v61 }
 0x96c   :  { %1093 = vrot.lane.b32.xlu1 %v1091_v62, %s5163_s18 }
 0x9da   :  { %v1198_v63 = vpop.permute.xlu0 %1197 }
 0x9db   :  { %v1200_v0 = vadd.f32 %v1198_v63, %v5437_v57  ;;  %v1098_v57 = vsub.f32 1.0, %v4994_v60 }
 0x9dd   :  { %4995 = vtanh.f32 %v1200_v0 }
 0x9de   :  { %v1094_v1 = vpop.permute.xlu1 %1093 }
 0x9df   :  { %v1096_v2 = vadd.f32 %v1094_v1, %v5439_v58  ;;  %v1106_v58 = vmul.f32 %v4994_v60, %v1104_v10 }
 0x9e1   :  { %4997 = vtanh.f32 %v1096_v2 }
 0x9ea   :  { %v4996_v3 = vpop.eup %4995 }
 0x9eb   :  { %1204 = vrot.lane.b32.xlu0 %v4996_v3, %s5166_s3 }
 0x9ee   :  { %v4998_v4 = vpop.eup %4997 }
 0x9ef   :  { %1100 = vrot.lane.b32.xlu1 %v4998_v4, %s5166_s3 }
 0xa5d   :  { %v1205_v6 = vpop.permute.xlu0 %1204 }
 0xa5e   :  { %v1207_v8 = vmul.f32 %v1205_v6, %v1202_v5 }
 0xa60   :  { %v5584_v9 = vadd.f32 %v1209_v7, %v1207_v8 }
 0xa61   :  { %v1101_v11 = vpop.permute.xlu1 %1100 }
 0xa62   :  { %v1103_v12 = vmul.f32 %v1101_v11, %v1098_v57  ;;  %1217 = vrot.lane.b32.xlu0 %v5584_v9, %s5166_s3  ;;  %v1425_v1 = vrot.slane %v5584_v9, 2 }
 0xa64   :  { %v5589_v13 = vadd.f32 %v1106_v58, %v1103_v12 }
 0xa66   :  { %v1221_v14 = vrot.slane %v5589_v13, 6 }
 0xa68   :  { %1222 = vrot.lane.b32.xlu1 %v1221_v14, %s5166_s3 }
 0xad4   :  { %v1218_v16 = vpop.permute.xlu0 %1217 }
 0xad5   :  { %1220 = vst.msk [vmem:[#allocation3 + $0x8] sm:$0x3] %vm541_vm4, %v1218_v16  ;;  %4624 = vmatmul.mubr.msk.f32.vlgmr.msra.gmra.mxu1 %vm329_vm3, %v1218_v16 }
 0xad6   :  { %4638 = vmatpush3.msra.mxu1 %v5371_v31  ;;  %4645 = vmatprep.mubr.msk.f32.mxu1 %vm5165_vm2, %v5164_v26 }
 0xad7   :  { %4639 = vmatprep.subr.mxu1 %v5164_v26 }
 0xad8   :  { %4640 = vmatpush3.msra.mxu1 %v5381_v32 }
 0xad9   :  { %4641 = vmatprep.subr.mxu1 %v5164_v26 }
 0xada   :  { %v1223_v18 = vpop.permute.xlu1 %1222  ;;  %4642 = vmatpush3.msra.mxu1 %v5390_v33 }
 0xadb   :  { %4613 = vmatmul.mubr.msk.f32.vlgmr.msra.gmra.mxu0 %vm329_vm3, %v1223_v18  ;;  %4643 = vmatprep.subr.mxu1 %v5164_v26 }
 0xadc   :  { %4627 = vmatpush3.msra.mxu0 %v5339_v27  ;;  %4644 = vmatpush3.msra.mxu1 %v5399_v34 }
 0xadd   :  { %4628 = vmatprep.subr.mxu0 %v5164_v26  ;;  %4634 = vmatprep.mubr.msk.f32.mxu0 %vm5165_vm2, %v5164_v26 }
 0xade   :  { %4629 = vmatpush3.msra.mxu0 %v5344_v28  ;;  %4659 = vmatprep.subr.mxu1 %v5164_v26 }
 0xadf   :  { %4630 = vmatprep.subr.mxu0 %v5164_v26 }
 0xae0   :  { %4631 = vmatpush3.msra.mxu0 %v5354_v29 }
 0xae1   :  { %4632 = vmatprep.subr.mxu0 %v5164_v26 }
 0xae2   :  { %4633 = vmatpush3.msra.mxu0 %v5362_v30 }
 0xae3   :  { %4648 = vmatprep.subr.mxu0 %v5164_v26 }
 0xb95   :  { %v1392_v22 = vpop.f32.mrf.mxu1 }
 0xb96   :  { %v1406_v23 = vadd.f32 %v1392_v22, %v5424_v45  ;;  %v1397_v39 = vrot.slane %v1392_v22, 2 }
 0xb97   :  { %v4625_v24 = vpop.f32.mrf.mxu1 }
 0xb98   :  { %v1408_v25 = vrot.slane %v1406_v23, 2  ;;  %v1399_v40 = vadd.f32 %v1397_v39, %v5422_v37 }
 0xb9a   :  { %1409 = vrot.lane.b32.xlu0 %v1408_v25, %s5163_s18  ;;  %v4271_v41 = vmul.f32 -1.442695, %v1399_v40 }
 0xb9b   :  { %v1292_v35 = vpop.f32.mrf.mxu0 }
 0xb9c   :  { %v1303_v36 = vadd.f32 %v1292_v35, %v5432_v54  ;;  %v1296_v42 = vadd.f32 %v1292_v35, %v5429_v48  ;;  %4999 = vpow2.f32 %v4271_v41 }
 0xb9d   :  { %v4614_v38 = vpop.f32.mrf.mxu0 }
 0xb9e   :  { %1305 = vrot.lane.b32.xlu1 %v1303_v36, %s5163_s18  ;;  %v4269_v43 = vmul.f32 -1.442695, %v1296_v42 }
 0xba0   :  { %5001 = vpow2.f32 %v4269_v43 }
 0xba9   :  { %v5000_v44 = vpop.eup %4999 }
 0xbaa   :  { %v1403_v46 = vadd.f32 1.0, %v5000_v44 }
 0xbac   :  { %5003 = vrcp.f32 %v1403_v46 }
 0xbad   :  { %v5002_v47 = vpop.eup %5001 }
 0xbae   :  { %v1300_v49 = vadd.f32 1.0, %v5002_v47 }
 0xbb0   :  { %5005 = vrcp.f32 %v1300_v49 }
 0xbb9   :  { %v5004_v50 = vpop.eup %5003 }
 0xbba   :  { %v1419_v2 = vsub.f32 1.0, %v5004_v50  ;;  %v1427_v4 = vmul.f32 %v5004_v50, %v1425_v1 }
 0xbbd   :  { %v5006_v53 = vpop.eup %5005 }
 0xbbe   :  { %v1315_v7 = vsub.f32 1.0, %v5006_v53  ;;  %v1322_v57 = vmul.f32 %v5006_v53, %v1221_v14 }
 0xc0c   :  { %v1410_v51 = vpop.permute.xlu0 %1409 }
 0xc0d   :  { %v1412_v52 = vmul.f32 %v5004_v50, %v1410_v51 }
 0xc0f   :  { %1414 = vrot.lane.b32.xlu0 %v1412_v52, %s5163_s18 }
 0xc10   :  { %v1306_v55 = vpop.permute.xlu1 %1305 }
 0xc11   :  { %v1308_v56 = vmul.f32 %v5006_v53, %v1306_v55 }
 0xc13   :  { %1310 = vrot.lane.b32.xlu1 %v1308_v56, %s5163_s18 }
 0xc81   :  { %v1415_v59 = vpop.permute.xlu0 %1414 }
 0xc82   :  { %v1417_v60 = vadd.f32 %v1415_v59, %v5422_v37 }
 0xc84   :  { %5007 = vtanh.f32 %v1417_v60 }
 0xc85   :  { %v1311_v61 = vpop.permute.xlu1 %1310 }
 0xc86   :  { %v1313_v62 = vadd.f32 %v1311_v61, %v5429_v48 }
 0xc88   :  { %5009 = vtanh.f32 %v1313_v62 }
 0xc91   :  { %v5008_v63 = vpop.eup %5007 }
 0xc92   :  { %1421 = vrot.lane.b32.xlu0 %v5008_v63, %s5166_s3 }
 0xc95   :  { %v5010_v0 = vpop.eup %5009 }
 0xc96   :  { %1317 = vrot.lane.b32.xlu1 %v5010_v0, %s5166_s3 }
 0xd04   :  { %v1422_v3 = vpop.permute.xlu0 %1421 }
 0xd05   :  { %v1424_v5 = vmul.f32 %v1422_v3, %v1419_v2 }
 0xd07   :  { %v5631_v6 = vadd.f32 %v1427_v4, %v1424_v5 }
 0xd08   :  { %v1318_v8 = vpop.permute.xlu1 %1317 }
 0xd09   :  { %v1320_v10 = vmul.f32 %v1318_v8, %v1315_v7  ;;  %v1544_v11 = vrot.slane %v5631_v6, 6  ;;  %v1648_v61 = vrot.slane %v5631_v6, 2 }
 0xd0b   :  { %v5636_v58 = vadd.f32 %v1322_v57, %v1320_v10  ;;  %1545 = vrot.lane.b32.xlu0 %v1544_v11, %s5166_s3 }
 0xd0d   :  { %1430 = vrot.lane.b32.xlu1 %v5636_v58, %s5166_s3  ;;  %v1540_v63 = vrot.slane %v5636_v58, 6 }
 0xd7d   :  { %v1546_v9 = vpop.permute.xlu0 %1545 }
 0xd7e   :  { %4646 = vmatmul.mubr.msk.f32.vlgmr.msra.gmra.mxu1 %vm329_vm3, %v1546_v9  ;;  %v5151_v9 = vld [vmem:[%s6345_s5 + $0x18] sm:$0xff] }
 0xd7f   :  { %v1431_v12 = vpop.permute.xlu1 %1430  ;;  %4660 = vmatpush3.msra.mxu1 %v5371_v31  ;;  %4667 = vmatprep.mubr.msk.f32.mxu1 %vm5165_vm2, %v5164_v26 }
 0xd80   :  { %1433 = vst.msk [vmem:[#allocation2 + $0x8] sm:$0x3] %vm541_vm4, %v1431_v12  ;;  %4635 = vmatmul.mubr.msk.f32.vlgmr.msra.gmra.mxu0 %vm329_vm3, %v1431_v12  ;;  %4661 = vmatprep.subr.mxu1 %v5164_v26 }
 0xd81   :  { %4649 = vmatpush3.msra.mxu0 %v5339_v27  ;;  %4662 = vmatpush3.msra.mxu1 %v5381_v32 }
 0xd82   :  { %4650 = vmatprep.subr.mxu0 %v5164_v26  ;;  %4663 = vmatprep.subr.mxu1 %v5164_v26 }
 0xd83   :  { %4651 = vmatpush3.msra.mxu0 %v5344_v28  ;;  %4664 = vmatpush3.msra.mxu1 %v5390_v33 }
 0xd84   :  { %4652 = vmatprep.subr.mxu0 %v5164_v26  ;;  %4665 = vmatprep.subr.mxu1 %v5164_v26 }
 0xd85   :  { %4666 = vmatpush3.msra.mxu1 %v5399_v34  ;;  %4653 = vmatpush3.msra.mxu0 %v5354_v29 }
 0xd86   :  { %4654 = vmatprep.subr.mxu0 %v5164_v26  ;;  %4656 = vmatprep.mubr.msk.f32.mxu0 %vm5165_vm2, %v5164_v26 }
 0xd87   :  { %4655 = vmatpush3.msra.mxu0 %v5362_v30  ;;  %4681 = vmatprep.subr.mxu1 %v5164_v26 }
 0xd88   :  { %4670 = vmatprep.subr.mxu0 %v5164_v26 }
 0xe3e   :  { %v1615_v27 = vpop.f32.mrf.mxu1 }
 0xe3f   :  { %v1629_v28 = vadd.f32 %v1615_v27, %v5424_v45  ;;  %v1620_v24 = vrot.slane %v1615_v27, 4 }
 0xe40   :  { %v1507_v14 = vpop.f32.mrf.mxu0  ;;  %v4647_v16 = vpop.f32.mrf.mxu1 }
 0xe41   :  { %v1631_v18 = vrot.slane %v1629_v28, 4  ;;  %v1521_v22 = vadd.f32 %v1507_v14, %v5432_v54  ;;  %v1512_v30 = vrot.slane %v1507_v14, 6  ;;  %v1622_v25 = vadd.f32 %v1620_v24, %v5422_v37 }
 0xe42   :  { %v4636_v29 = vpop.f32.mrf.mxu0 }
 0xe43   :  { %v1523_v23 = vrot.slane %v1521_v22, 6  ;;  %1632 = vrot.lane.b32.xlu0 %v1631_v18, %s5163_s18  ;;  %v1514_v35 = vadd.f32 %v1512_v30, %v5429_v48  ;;  %v4275_v36 = vmul.f32 -1.442695, %v1622_v25 }
 0xe45   :  { %1524 = vrot.lane.b32.xlu1 %v1523_v23, %s5163_s18  ;;  %v4273_v38 = vmul.f32 -1.442695, %v1514_v35  ;;  %5011 = vpow2.f32 %v4275_v36 }
 0xe47   :  { %5013 = vpow2.f32 %v4273_v38 }
 0xe52   :  { %v5012_v39 = vpop.eup %5011 }
 0xe53   :  { %v1626_v41 = vadd.f32 1.0, %v5012_v39 }
 0xe54   :  { %v5014_v40 = vpop.eup %5013 }
 0xe55   :  { %v1518_v42 = vadd.f32 1.0, %v5014_v40  ;;  %5015 = vrcp.f32 %v1626_v41 }
 0xe57   :  { %5017 = vrcp.f32 %v1518_v42 }
 0xe62   :  { %v5016_v43 = vpop.eup %5015 }
 0xe63   :  { %v1642_v60 = vsub.f32 1.0, %v5016_v43  ;;  %v1650_v0 = vmul.f32 %v5016_v43, %v1648_v61 }
 0xe64   :  { %v5018_v47 = vpop.eup %5017 }
 0xe65   :  { %v1534_v2 = vsub.f32 1.0, %v5018_v47  ;;  %v1542_v5 = vmul.f32 %v5018_v47, %v1540_v63 }
 0xeb5   :  { %v1633_v44 = vpop.permute.xlu0 %1632 }
 0xeb6   :  { %v1635_v46 = vmul.f32 %v5016_v43, %v1633_v44 }
 0xeb7   :  { %v1525_v49 = vpop.permute.xlu1 %1524 }
 0xeb8   :  { %v1527_v50 = vmul.f32 %v5018_v47, %v1525_v49  ;;  %1637 = vrot.lane.b32.xlu0 %v1635_v46, %s5163_s18 }
 0xeba   :  { %1529 = vrot.lane.b32.xlu1 %v1527_v50, %s5163_s18 }
 0xf2a   :  { %v1638_v51 = vpop.permute.xlu0 %1637 }
 0xf2b   :  { %v1640_v52 = vadd.f32 %v1638_v51, %v5422_v37 }
 0xf2c   :  { %v1530_v53 = vpop.permute.xlu1 %1529 }
 0xf2d   :  { %5019 = vtanh.f32 %v1640_v52  ;;  %v1532_v55 = vadd.f32 %v1530_v53, %v5429_v48 }
 0xf2f   :  { %5021 = vtanh.f32 %v1532_v55 }
 0xf3a   :  { %v5020_v56 = vpop.eup %5019 }
 0xf3b   :  { %1644 = vrot.lane.b32.xlu0 %v5020_v56, %s5166_s3 }
 0xf3c   :  { %v5022_v59 = vpop.eup %5021 }
 0xf3d   :  { %1536 = vrot.lane.b32.xlu1 %v5022_v59, %s5166_s3 }
 0xfad   :  { %v1645_v62 = vpop.permute.xlu0 %1644 }
 0xfae   :  { %v1647_v1 = vmul.f32 %v1645_v62, %v1642_v60 }
 0xfaf   :  { %v1537_v3 = vpop.permute.xlu1 %1536 }
 0xfb0   :  { %v5678_v4 = vadd.f32 %v1650_v0, %v1647_v1  ;;  %v1539_v7 = vmul.f32 %v1537_v3, %v1534_v2 }
 0xfb2   :  { %v5680_v8 = vadd.f32 %v1542_v5, %v1539_v7  ;;  %v1770_v57 = vrot.slane %v5678_v4, 4  ;;  %v1874_v59 = vrot.slane %v5678_v4, 2 }
 0xfb4   :  { %1771 = vrot.lane.b32.xlu0 %v1770_v57, %s5166_s3  ;;  %v1662_v10 = vrot.slane %v5680_v8, 2  ;;  %v1766_v0 = vrot.slane %v5680_v8, 6 }
 0xfb6   :  { %1663 = vrot.lane.b32.xlu1 %v1662_v10, %s5166_s3 }
0x1026   :  { %v1772_v11 = vpop.permute.xlu0 %1771 }
0x1027   :  { %4668 = vmatmul.mubr.msk.f32.vlgmr.msra.gmra.mxu1 %vm329_vm3, %v1772_v11 }
0x1028   :  { %v1664_v58 = vpop.permute.xlu1 %1663  ;;  %4682 = vmatpush3.msra.mxu1 %v5371_v31  ;;  %4689 = vmatprep.mubr.msk.f32.mxu1 %vm5165_vm2, %v5164_v26  ;;  %v5152_v31 = vld [vmem:[%s6345_s5 + $0x10] sm:$0xff] }
0x1029   :  { %4657 = vmatmul.mubr.msk.f32.vlgmr.msra.gmra.mxu0 %vm329_vm3, %v1664_v58  ;;  %4683 = vmatprep.subr.mxu1 %v5164_v26 }
0x102a   :  { %4671 = vmatpush3.msra.mxu0 %v5151_v9  ;;  %4684 = vmatpush3.msra.mxu1 %v5381_v32  ;;  %v5153_v32 = vld [vmem:[%s6345_s5 + $0x8] sm:$0xff] }
0x102b   :  { %4672 = vmatprep.subr.mxu0 %v5164_v26  ;;  %4685 = vmatprep.subr.mxu1 %v5164_v26 }
0x102c   :  { %4673 = vmatpush3.msra.mxu0 %v5152_v31  ;;  %4686 = vmatpush3.msra.mxu1 %v5390_v33  ;;  %v5154_v33 = vld [vmem:[%s6345_s5] sm:$0xff] }
0x102d   :  { %4674 = vmatprep.subr.mxu0 %v5164_v26  ;;  %4687 = vmatprep.subr.mxu1 %v5164_v26 }
0x102e   :  { %4688 = vmatpush3.msra.mxu1 %v5399_v34  ;;  %4675 = vmatpush3.msra.mxu0 %v5153_v32 }
0x102f   :  { %4676 = vmatprep.subr.mxu0 %v5164_v26  ;;  %4678 = vmatprep.mubr.msk.f32.mxu0 %vm5165_vm2, %v5164_v26 }
0x1030   :  { %4677 = vmatpush3.msra.mxu0 %v5154_v33  ;;  %4704 = vmatprep.subr.bf16.mxu1 %v5164_v26 }
0x1031   :  { %4692 = vmatprep.subr.bf16.mxu0 %v5164_v26 }
0x10e7   :  { %v1841_v34 = vpop.f32.mrf.mxu1 }
0x10e8   :  { %v1855_v12 = vadd.f32 %v1841_v34, %v5424_v45  ;;  %v1846_v29 = vrot.slane %v1841_v34, 6 }
0x10e9   :  { %v1733_v27 = vpop.f32.mrf.mxu0  ;;  %v4669_v28 = vpop.f32.mrf.mxu1 }
0x10ea   :  { %v1857_v14 = vrot.slane %v1855_v12, 6  ;;  %v1747_v16 = vadd.f32 %v1733_v27, %v5432_v54  ;;  %v1738_v23 = vrot.slane %v1733_v27, 4  ;;  %v1848_v24 = vadd.f32 %v1846_v29, %v5422_v37 }
0x10eb   :  { %v4658_v18 = vpop.f32.mrf.mxu0 }
0x10ec   :  { %v1749_v22 = vrot.slane %v1747_v16, 4  ;;  %1858 = vrot.lane.b32.xlu0 %v1857_v14, %s5163_s18  ;;  %v1740_v30 = vadd.f32 %v1738_v23, %v5429_v48  ;;  %v4279_v25 = vmul.f32 -1.442695, %v1848_v24 }
0x10ee   :  { %1750 = vrot.lane.b32.xlu1 %v1749_v22, %s5163_s18  ;;  %v4277_v35 = vmul.f32 -1.442695, %v1740_v30  ;;  %5023 = vpow2.f32 %v4279_v25 }
0x10f0   :  { %5025 = vpow2.f32 %v4277_v35 }
0x10fb   :  { %v5024_v36 = vpop.eup %5023 }
0x10fc   :  { %v1852_v39 = vadd.f32 1.0, %v5024_v36 }
0x10fd   :  { %v5026_v38 = vpop.eup %5025 }
0x10fe   :  { %v1744_v40 = vadd.f32 1.0, %v5026_v38  ;;  %5027 = vrcp.f32 %v1852_v39 }
0x1100   :  { %5029 = vrcp.f32 %v1744_v40 }
0x110b   :  { %v5028_v41 = vpop.eup %5027 }
0x110c   :  { %v1868_v56 = vsub.f32 1.0, %v5028_v41  ;;  %v1876_v61 = vmul.f32 %v5028_v41, %v1874_v59 }
0x110d   :  { %v5030_v44 = vpop.eup %5029 }
0x110e   :  { %v1760_v63 = vsub.f32 1.0, %v5030_v44  ;;  %v1768_v3 = vmul.f32 %v5030_v44, %v1766_v0 }
0x115e   :  { %v1859_v42 = vpop.permute.xlu0 %1858 }
0x115f   :  { %v1861_v43 = vmul.f32 %v5028_v41, %v1859_v42 }
0x1160   :  { %v1751_v46 = vpop.permute.xlu1 %1750 }
0x1161   :  { %v1753_v47 = vmul.f32 %v5030_v44, %v1751_v46  ;;  %1863 = vrot.lane.b32.xlu0 %v1861_v43, %s5163_s18  ;;  %v4945_v46 = vld [vmem:[%s6348_s8 + $0x10] sm:$0xff]  }
0x1163   :  { %1755 = vrot.lane.b32.xlu1 %v1753_v47, %s5163_s18 }
0x11d3   :  { %v1864_v49 = vpop.permute.xlu0 %1863 }
0x11d4   :  { %v1866_v50 = vadd.f32 %v1864_v49, %v5422_v37 }
0x11d5   :  { %v1756_v51 = vpop.permute.xlu1 %1755 }
0x11d6   :  { %5031 = vtanh.f32 %v1866_v50  ;;  %v1758_v52 = vadd.f32 %v1756_v51, %v5429_v48  ;;  %v4946_v50 = vld [vmem:[%s6349_s7 + $0x10] sm:$0xff]  }
0x11d8   :  { %5033 = vtanh.f32 %v1758_v52 }
0x11e3   :  { %v5032_v53 = vpop.eup %5031 }
0x11e4   :  { %1870 = vrot.lane.b32.xlu0 %v5032_v53, %s5166_s3  ;;  %v4947_v53 = vld [vmem:[%s6348_s8 + $0x8] sm:$0xff]  }
0x11e5   :  { %v5034_v55 = vpop.eup %5033 }
0x11e6   :  { %1762 = vrot.lane.b32.xlu1 %v5034_v55, %s5166_s3 }
0x1256   :  { %v1871_v60 = vpop.permute.xlu0 %1870 }
0x1257   :  { %v1873_v62 = vmul.f32 %v1871_v60, %v1868_v56  ;;  %v4948_v60 = vld [vmem:[%s6349_s7 + $0x8] sm:$0xff]  }
0x1258   :  { %v1763_v1 = vpop.permute.xlu1 %1762 }
0x1259   :  { %v5730_v2 = vadd.f32 %v1876_v61, %v1873_v62  ;;  %v1765_v5 = vmul.f32 %v1763_v1, %v1760_v63  ;;  %v4949_v1 = vld [vmem:[%s6348_s8] sm:$0xff]  }
0x125b   :  { %v5732_v7 = vadd.f32 %v1768_v3, %v1765_v5  ;;  %v1996_v57 = vrot.slane %v5730_v2, 2 }
0x125d   :  { %1997 = vrot.lane.b32.xlu0 %v1996_v57, %s5166_s3  ;;  %v1888_v10 = vrot.slane %v5732_v7, 4  ;;  %v1992_v52 = vrot.slane %v5732_v7, 6 }
0x125f   :  { %1889 = vrot.lane.b32.xlu1 %v1888_v10, %s5166_s3 }
0x12cf   :  { %v1998_v11 = vpop.permute.xlu0 %1997 }
0x12d0   :  { %4690 = vmatmul.mubr.msk.f32.vlgmr.msra.gmra.mxu1 %vm329_vm3, %v1998_v11 }
0x12d1   :  { %v1890_v58 = vpop.permute.xlu1 %1889  ;;  %4712 = vmatprep.mubr.msk.bf16.mxu1 %vm5165_vm2, %v5164_v26 }
0x12d2   :  { %4679 = vmatmul.mubr.msk.f32.vlgmr.msra.gmra.mxu0 %vm329_vm3, %v1890_v58 }
0x12d3   :  { %4700 = vmatprep.mubr.msk.bf16.mxu0 %vm5165_vm2, %v5164_v26 }
0x1390   :  { %v2067_v9 = vpop.f32.mrf.mxu1 }
0x1391   :  { %v2078_v31 = vadd.f32 %v2067_v9, %v5424_v45  ;;  %v2071_v28 = vadd.f32 %v2067_v9, %v5422_v37  ;;  %v4302_v9 = vld [vmem:[%s6350_s12 + $0x1] ss:$0 sm:$0xff] }
0x1392   :  { %v1959_v32 = vpop.f32.mrf.mxu0  ;;  %v4691_v33 = vpop.f32.mrf.mxu1 }
0x1393   :  { %v1973_v34 = vadd.f32 %v1959_v32, %v5432_v54  ;;  %2080 = vrot.lane.b32.xlu0 %v2078_v31, %s5163_s18  ;;  %v1964_v14 = vrot.slane %v1959_v32, 2  ;;  %v4283_v16 = vmul.f32 -1.442695, %v2071_v28  ;;  %v4300_v31 = vld [vmem:[%s6350_s12] ss:$0 sm:$0xff] }
0x1394   :  { %v4680_v12 = vpop.f32.mrf.mxu0 }
0x1395   :  { %v1975_v27 = vrot.slane %v1973_v34, 2  ;;  %v1966_v18 = vadd.f32 %v1964_v14, %v5429_v48  ;;  %5035 = vpow2.f32 %v4283_v16 }
0x1397   :  { %1976 = vrot.lane.b32.xlu1 %v1975_v27, %s5163_s18  ;;  %v4281_v22 = vmul.f32 -1.442695, %v1966_v18  ;;  %v5840_v18 = vld [vmem:[%s6351_s11 + $0x38] sm:$0xff] }
0x1399   :  { %5037 = vpow2.f32 %v4281_v22  ;;  %v5845_v22 = vld [vmem:[%s6351_s11 + $0x18] sm:$0xff] }
0x13a2   :  { %v5036_v45 = vpop.eup %5035 }
0x13a3   :  { %v2075_v29 = vadd.f32 1.0, %v5036_v45  ;;  %v5852_v45 = vld [vmem:[%s6351_s11 + $0x30] sm:$0xff] }
0x13a5   :  { %5039 = vrcp.f32 %v2075_v29  ;;  %v5857_v29 = vld [vmem:[%s6351_s11 + $0x10] sm:$0xff] }
0x13a6   :  { %v5038_v23 = vpop.eup %5037 }
0x13a7   :  { %v1970_v54 = vadd.f32 1.0, %v5038_v23  ;;  %v5866_v23 = vld [vmem:[%s6351_s11 + $0x28] sm:$0xff] }
0x13a9   :  { %5041 = vrcp.f32 %v1970_v54  ;;  %v5871_v54 = vld [vmem:[%s6351_s11 + $0x8] sm:$0xff] }
0x13b2   :  { %v5040_v24 = vpop.eup %5039 }
0x13b6   :  { %v5042_v35 = vpop.eup %5041 }
0x13b7   :  { %v1986_v51 = vsub.f32 1.0, %v5042_v35 }
0x1405   :  { %v2081_v30 = vpop.permute.xlu0 %2080 }
0x1406   :  { %v2083_v25 = vmul.f32 %v5040_v24, %v2081_v30  ;;  %v5885_v30 = vld [vmem:[%s6351_s11] sm:$0xff] }
0x1408   :  { %2085 = vrot.lane.b32.xlu0 %v2083_v25, %s5163_s18  ;;  %v4290_v25 = vld [vmem:[%s6352_s10] ss:$0 sm:$0xff] }
0x1409   :  { %v1977_v36 = vpop.permute.xlu1 %1976 }
0x140a   :  { %v1979_v38 = vmul.f32 %v5042_v35, %v1977_v36 }
0x140c   :  { %1981 = vrot.lane.b32.xlu1 %v1979_v38, %s5163_s18 }
0x147a   :  { %v2086_v39 = vpop.permute.xlu0 %2085 }
0x147b   :  { %v2088_v40 = vadd.f32 %v2086_v39, %v5422_v37  ;;  %v2090_v37 = vsub.f32 1.0, %v5040_v24 }
0x147d   :  { %5043 = vtanh.f32 %v2088_v40 }
0x147e   :  { %v1982_v41 = vpop.permute.xlu1 %1981 }
0x147f   :  { %v1984_v42 = vadd.f32 %v1982_v41, %v5429_v48  ;;  %v4284_v41 = vld [vmem:[%s6353_s9] ss:$0 sm:$0xff] }
0x1481   :  { %5045 = vtanh.f32 %v1984_v42 }
0x148a   :  { %v5044_v43 = vpop.eup %5043 }
0x148b   :  { %2092 = vrot.lane.b32.xlu0 %v5044_v43, %s5166_s3 }
0x148e   :  { %v5046_v44 = vpop.eup %5045 }
0x148f   :  { %544 = vrot.lane.b32.xlu0 %v5449_v19, %s5166_s3  ;;  %1988 = vrot.lane.b32.xlu1 %v5046_v44, %s5166_s3  ;;  %v2097_v19 = vmul.f32 %v5040_v24, %v1996_v57  ;;  %v5880_v24 = vld [vmem:[%s6351_s11 + $0x20] sm:$0xff] }
0x1493   :  { %996 = vrot.lane.b32.xlu0 %v5538_v15, %s5166_s3  ;;  %769 = vrot.lane.b32.xlu1 %v5494_v17, %s5166_s3 }
0x1497   :  { %1658 = vrot.lane.b32.xlu0 %v5678_v4, %s5166_s3  ;;  %1435 = vrot.lane.b32.xlu1 %v5631_v6, %s5166_s3 }
0x149b   :  { %1884 = vrot.lane.b32.xlu1 %v5730_v2, %s5166_s3  ;;  %v4950_v2 = vld [vmem:[%s6349_s7] sm:$0xff]  }
0x149f   :  { %763 = vrot.lane.b32.xlu1 %v5496_v21, %s5166_s3  ;;  %v4943_v21 = vld [vmem:[%s6348_s8 + $0x18] sm:$0xff]   ;;  %s5167_s8 = smov 32  }
0x14a0   :  { %4705 = vmatpush3.bf16.msra.mxu1 %v4943_v21 }
0x14a1   :  { %4706 = vmatprep.subr.bf16.mxu1 %v5164_v26 }
0x14a3   :  { %1212 = vrot.lane.b32.xlu1 %v5589_v13, %s5166_s3  ;;  %v4944_v13 = vld [vmem:[%s6349_s7 + $0x18] sm:$0xff]  }
0x14a4   :  { %4693 = vmatpush3.bf16.msra.mxu0 %v4944_v13  ;;  %4707 = vmatpush3.bf16.msra.mxu1 %v4945_v46 }
0x14a5   :  { %4694 = vmatprep.subr.bf16.mxu0 %v5164_v26  ;;  %4708 = vmatprep.subr.bf16.mxu1 %v5164_v26 }
0x14a7   :  { %1879 = vrot.lane.b32.xlu1 %v5732_v7, %s5166_s3 }
0x14a8   :  { %4695 = vmatpush3.bf16.msra.mxu0 %v4946_v50  ;;  %4709 = vmatpush3.bf16.msra.mxu1 %v4947_v53 }
0x14a9   :  { %4696 = vmatprep.subr.bf16.mxu0 %v5164_v26  ;;  %4710 = vmatprep.subr.bf16.mxu1 %v5164_v26 }
0x14ac   :  { %4697 = vmatpush3.bf16.msra.mxu0 %v4948_v60  ;;  %4711 = vmatpush3.bf16.msra.mxu1 %v4949_v1 }
0x14ad   :  { %4698 = vmatprep.subr.bf16.mxu0 %v5164_v26  ;;  %4727 = vmatprep.subr.mxu1 %v5164_v26 }
0x14b0   :  { %4699 = vmatpush3.bf16.msra.mxu0 %v4950_v2 }
0x14b1   :  { %4716 = vmatprep.subr.mxu0 %v5164_v26 }
0x14fd   :  { %v2093_v48 = vpop.permute.xlu0 %2092 }
0x14fe   :  { %v2095_v17 = vmul.f32 %v2093_v48, %v2090_v37 }
0x1500   :  { %v2098_v15 = vadd.f32 %v2097_v19, %v2095_v17 }
0x1501   :  { %v545_v4 = vpop.permute.xlu0 %544  ;;  %v1989_v6 = vpop.permute.xlu1 %1988 }
0x1502   :  { %548 = vst.msk [vmem:[#allocation3 + $0x8] sm:$0xc0] %vm547_vm5, %v545_v4  ;;  %2105 = vrot.lane.b32.xlu0 %v2098_v15, %s5166_s3  ;;  %v1991_v55 = vmul.f32 %v1989_v6, %v1986_v51 }
0x1505   :  { %v997_v47 = vpop.permute.xlu0 %996  ;;  %v770_v49 = vpop.permute.xlu1 %769 }
0x1506   :  { %999 = vst.msk [vmem:[#allocation3 + $0x8] sm:$0xc] %vm766_vm6, %v997_v47  ;;  %991 = vrot.lane.b32.xlu0 %v5540_v20, %s5166_s3  ;;  %v1994_v20 = vmul.f32 %v5042_v35, %v1992_v52 }
0x1507   :  { %773 = vst.msk [vmem:[#allocation3 + $0x8] sm:$0x30] %vm772_vm7, %v770_v49 }
0x1508   :  { %v1995_v61 = vadd.f32 %v1994_v20, %v1991_v55 }
0x1509   :  { %v1659_v56 = vpop.permute.xlu0 %1658  ;;  %v1436_v59 = vpop.permute.xlu1 %1435 }
0x150a   :  { %1661 = vst.msk [vmem:[#allocation3] sm:$0x30] %vm772_vm7, %v1659_v56  ;;  %1653 = vrot.lane.b32.xlu0 %v5680_v8, %s5166_s3 }
0x150b   :  { %1438 = vst.msk [vmem:[#allocation3] sm:$0xc0] %vm547_vm5, %v1436_v59 }
0x150d   :  { %v1885_v62 = vpop.permute.xlu1 %1884 }
0x150e   :  { %1887 = vst.msk [vmem:[#allocation3] sm:$0xc] %vm766_vm6, %v1885_v62  ;;  %2100 = vrot.lane.b32.xlu0 %v1995_v61, %s5166_s3  ;;  %v2112_v10 = vld [vmem:[#allocation3 + $0x8] sm:$0xff] }
0x1511   :  { %v764_v63 = vpop.permute.xlu1 %763 }
0x1512   :  { %767 = vst.msk [vmem:[#allocation2] sm:$0xc] %vm766_vm6, %v764_v63  ;;  %2490 = vrot.lane.b32.xlu0 %v4302_v9, %s5163_s18 }
0x1515   :  { %v1213_v0 = vpop.permute.xlu1 %1212 }
0x1516   :  { %1215 = vst.msk [vmem:[#allocation2] sm:$0xc0] %vm547_vm5, %v1213_v0 }
0x1519   :  { %v1880_v8 = vpop.permute.xlu1 %1879 }
0x151a   :  { %1882 = vst.msk [vmem:[#allocation2 + $0x8] sm:$0x30] %vm772_vm7, %v1880_v8 }
0x1574   :  { %v2106_v3 = vpop.permute.xlu0 %2105 }
0x1575   :  { %2108 = vst.msk [vmem:[#allocation3] sm:$0x3] %vm541_vm4, %v2106_v3 }
0x1578   :  { %v992_v5 = vpop.permute.xlu0 %991 }
0x1579   :  { %994 = vst.msk [vmem:[#allocation2] sm:$0x30] %vm772_vm7, %v992_v5 }
0x157c   :  { %v1654_v7 = vpop.permute.xlu0 %1653  ;;  %v2111_v57 = vld [vmem:[#allocation3] sm:$0xff] }
0x157d   :  { %1656 = vst.msk [vmem:[#allocation2 + $0x8] sm:$0xc] %vm766_vm6, %v1654_v7  ;;  %v4917_v11 = vpack.i.bf16 %v2112_v10, %v2111_v57 }
0x157f   :  { %4918 = vrot.lane.b32.xlu1 %v4917_v11, %s5167_s8 }
0x1580   :  { %v2101_v58 = vpop.permute.xlu0 %2100  ;;  %v2109_v12 = vld [vmem:[#allocation2] sm:$0xff] }
0x1581   :  { %2103 = vst.msk [vmem:[#allocation2 + $0x8] sm:$0xc0] %vm547_vm5, %v2101_v58 }
0x1583   :  { %2387 = vrot.lane.b32.xlu1 %v4300_v31, %s5163_s18 }
0x1584   :  { %v5931_v19 = vpop.permute.xlu0 %2490 }
0x1588   :  { %v2110_v27 = vld [vmem:[#allocation2 + $0x8] sm:$0xff] }
0x15f1   :  { %v4919_v32 = vpop.permute.xlu1 %4918 }
0x15f2   :  { %v4921_v33 = vunpack.i.h.bf16 %v4919_v32  ;;  %v4920_v34 = vunpack.i.l.bf16 %v4919_v32 }
0x15f4   :  { %v2122_v28 = vsel %vm329_vm3, %v2110_v27, %v4921_v33  ;;  %v2121_v14 = vsel %vm329_vm3, %v2109_v12, %v4920_v34 }
0x15f5   :  { %v2123_v16 = vpack.c.bf16 %v2122_v28, %v2121_v14  ;;  %v5933_v17 = vpop.permute.xlu1 %2387 }
0x15f7   :  { %4701 = vmatmul.mubr.msk.bf16.vlgmr.msra.gmra.mxu0 %vm2163_vm8, %v2123_v16  ;;  %4713 = vmatmul.mubr.msk.bf16.vlgmr.msra.gmra.mxu1 %vm2163_vm8, %v2123_v16 }
0x15f8   :  { %4728 = vmatpush3.msra.mxu1 %v5840_v18  ;;  %4717 = vmatpush3.msra.mxu0 %v5845_v22 }
0x15f9   :  { %4729 = vmatprep.subr.mxu1 %v5164_v26  ;;  %4718 = vmatprep.subr.mxu0 %v5164_v26 }
0x15fa   :  { %4730 = vmatpush3.msra.mxu1 %v5852_v45  ;;  %4719 = vmatpush3.msra.mxu0 %v5857_v29 }
0x15fb   :  { %4731 = vmatprep.subr.mxu1 %v5164_v26  ;;  %4720 = vmatprep.subr.mxu0 %v5164_v26 }
0x15fc   :  { %4732 = vmatpush3.msra.mxu1 %v5866_v23  ;;  %4721 = vmatpush3.msra.mxu0 %v5871_v54 }
0x15fd   :  { %4733 = vmatprep.subr.mxu1 %v5164_v26  ;;  %4722 = vmatprep.subr.mxu0 %v5164_v26 }
0x15fe   :  { %4734 = vmatpush3.msra.mxu1 %v5880_v24  ;;  %4723 = vmatpush3.msra.mxu0 %v5885_v30 }
0x15ff   :  { %4724 = vmatprep.mubr.msk.f32.mxu0 %vm5165_vm2, %v5164_v26  ;;  %4735 = vmatprep.mubr.msk.f32.mxu1 %vm5165_vm2, %v5164_v26 }
0x1600   :  { %4725 = vmatmul.mubr.f32.vlgmr.msra.gmra.mxu0 %v5164_v26  ;;  %4736 = vmatmul.mubr.f32.vlgmr.msra.gmra.mxu1 %v5164_v26 }
0x1601   :  { %4738 = vmatprep.subr.mxu0 %v5164_v26  ;;  %4749 = vmatprep.subr.mxu1 %v5164_v26 }
0x1602   :  { %4739 = vmatpush3.msra.mxu0 %v5845_v22  ;;  %4750 = vmatpush3.msra.mxu1 %v5840_v18 }
0x1603   :  { %4740 = vmatprep.subr.mxu0 %v5164_v26  ;;  %4751 = vmatprep.subr.mxu1 %v5164_v26 }
0x1604   :  { %4741 = vmatpush3.msra.mxu0 %v5857_v29  ;;  %4746 = vmatprep.mubr.msk.f32.mxu0 %vm5165_vm2, %v5164_v26 }
0x1605   :  { %4742 = vmatprep.subr.mxu0 %v5164_v26  ;;  %4752 = vmatpush3.msra.mxu1 %v5852_v45 }
0x1606   :  { %4743 = vmatpush3.msra.mxu0 %v5871_v54  ;;  %4753 = vmatprep.subr.mxu1 %v5164_v26 }
0x1607   :  { %4744 = vmatprep.subr.mxu0 %v5164_v26  ;;  %4754 = vmatpush3.msra.mxu1 %v5866_v23 }
0x1608   :  { %4745 = vmatpush3.msra.mxu0 %v5885_v30  ;;  %4755 = vmatprep.subr.mxu1 %v5164_v26 }
0x1609   :  { %4756 = vmatpush3.msra.mxu1 %v5880_v24  ;;  %4757 = vmatprep.mubr.msk.f32.mxu1 %vm5165_vm2, %v5164_v26 }
0x160a   :  { %4760 = vmatprep.subr.mxu0 %v5164_v26  ;;  %4771 = vmatprep.subr.mxu1 %v5164_v26 }
0x16b7   :  { %v2201_v35 = vpop.f32.mrf.mxu0  ;;  %v2281_v36 = vpop.f32.mrf.mxu1 }
0x16b8   :  { %v5924_v38 = vadd.f32 %v4290_v25, %v2281_v36  ;;  %v5939_v49 = vadd.f32 %v4284_v41, %v2201_v35 }
0x16b9   :  { %v4702_v39 = vpop.f32.mrf.mxu0  ;;  %v4714_v40 = vpop.f32.mrf.mxu1 }
0x16bb   :  { %v2204_v42 = vpop.f32.mrf.mxu0  ;;  %v2284_v43 = vpop.f32.mrf.mxu1 }
0x16bc   :  { %v5929_v44 = vadd.f32 %v4284_v41, %v2204_v42  ;;  %v5941_v51 = vadd.f32 %v4290_v25, %v2284_v43 }
0x16bd   :  { %v4703_v37 = vpop.f32.mrf.mxu0  ;;  %v4715_v48 = vpop.f32.mrf.mxu1 }
0x16c0   :  { %v2376_v15 = vpop.f32.mrf.mxu0  ;;  %v2476_v4 = vpop.f32.mrf.mxu1 }
0x16c1   :  { %v2390_v6 = vadd.f32 %v5933_v17, %v2376_v15  ;;  %v2493_v21 = vadd.f32 %v5931_v19, %v2476_v4  ;;  %v2481_v50 = vrot.slane %v2476_v4, 2  ;;  %v2380_v52 = vadd.f32 %v2376_v15, %v5939_v49 }
0x16c2   :  { %v4737_v13 = vpop.f32.mrf.mxu1  ;;  %v4726_v46 = vpop.f32.mrf.mxu0 }
0x16c3   :  { %v2495_v47 = vrot.slane %v2493_v21, 2  ;;  %2392 = vrot.lane.b32.xlu1 %v2390_v6, %s5163_s18  ;;  %v2483_v53 = vadd.f32 %v2481_v50, %v5941_v51  ;;  %v4303_v55 = vmul.f32 -1.442695, %v2380_v52 }
0x16c5   :  { %2496 = vrot.lane.b32.xlu0 %v2495_v47, %s5163_s18  ;;  %v4304_v56 = vmul.f32 -1.442695, %v2483_v53  ;;  %5047 = vpow2.f32 %v4303_v55 }
0x16c7   :  { %5049 = vpow2.f32 %v4304_v56 }
0x16d2   :  { %v5048_v59 = vpop.eup %5047 }
0x16d3   :  { %v2384_v20 = vadd.f32 1.0, %v5048_v59 }
0x16d4   :  { %v5050_v60 = vpop.eup %5049 }
0x16d5   :  { %v2487_v61 = vadd.f32 1.0, %v5050_v60  ;;  %5051 = vrcp.f32 %v2384_v20 }
0x16d7   :  { %5053 = vrcp.f32 %v2487_v61 }
0x16e2   :  { %v5052_v62 = vpop.eup %5051 }
0x16e3   :  { %v2402_v58 = vsub.f32 1.0, %v5052_v62  ;;  %v2408_v31 = vmul.f32 0.0, %v5052_v62 }
0x16e4   :  { %v5054_v8 = vpop.eup %5053 }
0x16e5   :  { %v2506_v33 = vsub.f32 1.0, %v5054_v8  ;;  %v2512_v27 = vmul.f32 0.0, %v5054_v8 }
0x1735   :  { %v2393_v63 = vpop.permute.xlu1 %2392 }
0x1736   :  { %v2395_v0 = vmul.f32 %v5052_v62, %v2393_v63 }
0x1737   :  { %v2497_v1 = vpop.permute.xlu0 %2496 }
0x1738   :  { %v2499_v2 = vmul.f32 %v5054_v8, %v2497_v1  ;;  %2397 = vrot.lane.b32.xlu1 %v2395_v0, %s5163_s18 }
0x173a   :  { %2501 = vrot.lane.b32.xlu0 %v2499_v2, %s5163_s18 }
0x17aa   :  { %v2398_v3 = vpop.permute.xlu1 %2397 }
0x17ab   :  { %v2400_v5 = vadd.f32 %v2398_v3, %v5939_v49 }
0x17ac   :  { %v2502_v7 = vpop.permute.xlu0 %2501 }
0x17ad   :  { %5055 = vtanh.f32 %v2400_v5  ;;  %v2504_v57 = vadd.f32 %v2502_v7, %v5941_v51 }
0x17af   :  { %5057 = vtanh.f32 %v2504_v57 }
0x17ba   :  { %v5056_v10 = vpop.eup %5055 }
0x17bb   :  { %2404 = vrot.lane.b32.xlu1 %v5056_v10, %s5166_s3 }
0x17bc   :  { %v5058_v11 = vpop.eup %5057 }
0x17bd   :  { %2508 = vrot.lane.b32.xlu0 %v5058_v11, %s5166_s3 }
0x182d   :  { %v2405_v9 = vpop.permute.xlu1 %2404 }
0x182e   :  { %v2407_v32 = vmul.f32 %v2405_v9, %v2402_v58 }
0x182f   :  { %v2509_v34 = vpop.permute.xlu0 %2508 }
0x1830   :  { %v5951_v12 = vadd.f32 %v2408_v31, %v2407_v32  ;;  %v2511_v28 = vmul.f32 %v2509_v34, %v2506_v33 }
0x1832   :  { %v5953_v14 = vadd.f32 %v2512_v27, %v2511_v28  ;;  %2515 = vrot.lane.b32.xlu1 %v5951_v12, %s5166_s3  ;;  %v2625_v3 = vrot.slane %v5951_v12, 6 }
0x1834   :  { %v2629_v16 = vrot.slane %v5953_v14, 6  ;;  %v2733_v9 = vrot.slane %v5953_v14, 2 }
0x1836   :  { %2630 = vrot.lane.b32.xlu0 %v2629_v16, %s5166_s3 }
0x18a4   :  { %v2516_v25 = vpop.permute.xlu1 %2515 }
0x18a5   :  { %2518 = vst.msk [vmem:[#allocation4] sm:$0x3] %vm541_vm4, %v2516_v25  ;;  %4747 = vmatmul.mubr.msk.f32.vlgmr.msra.gmra.mxu0 %vm329_vm3, %v2516_v25 }
0x18a6   :  { %4761 = vmatpush3.msra.mxu0 %v5845_v22  ;;  %4768 = vmatprep.mubr.msk.f32.mxu0 %vm5165_vm2, %v5164_v26 }
0x18a7   :  { %4762 = vmatprep.subr.mxu0 %v5164_v26 }
0x18a8   :  { %v2631_v35 = vpop.permute.xlu0 %2630  ;;  %4763 = vmatpush3.msra.mxu0 %v5857_v29 }
0x18a9   :  { %4758 = vmatmul.mubr.msk.f32.vlgmr.msra.gmra.mxu1 %vm329_vm3, %v2631_v35  ;;  %4764 = vmatprep.subr.mxu0 %v5164_v26 }
0x18aa   :  { %4765 = vmatpush3.msra.mxu0 %v5871_v54  ;;  %4772 = vmatpush3.msra.mxu1 %v5840_v18 }
0x18ab   :  { %4766 = vmatprep.subr.mxu0 %v5164_v26  ;;  %4773 = vmatprep.subr.mxu1 %v5164_v26 }
0x18ac   :  { %4767 = vmatpush3.msra.mxu0 %v5885_v30  ;;  %4774 = vmatpush3.msra.mxu1 %v5852_v45 }
0x18ad   :  { %4775 = vmatprep.subr.mxu1 %v5164_v26  ;;  %4779 = vmatprep.mubr.msk.f32.mxu1 %vm5165_vm2, %v5164_v26 }
0x18ae   :  { %4776 = vmatpush3.msra.mxu1 %v5866_v23  ;;  %4782 = vmatprep.subr.mxu0 %v5164_v26 }
0x18af   :  { %4777 = vmatprep.subr.mxu1 %v5164_v26 }
0x18b0   :  { %4778 = vmatpush3.msra.mxu1 %v5880_v24 }
0x18b1   :  { %4793 = vmatprep.subr.mxu1 %v5164_v26 }
0x1965   :  { %v2592_v36 = vpop.f32.mrf.mxu0 }
0x1966   :  { %v2606_v39 = vadd.f32 %v2592_v36, %v5933_v17  ;;  %v2597_v15 = vrot.slane %v2592_v36, 6 }
0x1967   :  { %v4748_v40 = vpop.f32.mrf.mxu0 }
0x1968   :  { %v2608_v41 = vrot.slane %v2606_v39, 6  ;;  %v2599_v4 = vadd.f32 %v2597_v15, %v5939_v49 }
0x1969   :  { %v2700_v42 = vpop.f32.mrf.mxu1 }
0x196a   :  { %v2714_v43 = vadd.f32 %v2700_v42, %v5931_v19  ;;  %2609 = vrot.lane.b32.xlu1 %v2608_v41, %s5163_s18  ;;  %v2705_v6 = vrot.slane %v2700_v42, 4  ;;  %v4306_v21 = vmul.f32 -1.442695, %v2599_v4 }
0x196b   :  { %v4759_v37 = vpop.f32.mrf.mxu1 }
0x196c   :  { %v2716_v48 = vrot.slane %v2714_v43, 4  ;;  %v2707_v13 = vadd.f32 %v2705_v6, %v5941_v51  ;;  %5059 = vpow2.f32 %v4306_v21 }
0x196e   :  { %2717 = vrot.lane.b32.xlu0 %v2716_v48, %s5163_s18  ;;  %v4308_v46 = vmul.f32 -1.442695, %v2707_v13 }
0x1970   :  { %5061 = vpow2.f32 %v4308_v46 }
0x1979   :  { %v5060_v47 = vpop.eup %5059 }
0x197a   :  { %v2603_v50 = vadd.f32 1.0, %v5060_v47 }
0x197c   :  { %5063 = vrcp.f32 %v2603_v50 }
0x197d   :  { %v5062_v52 = vpop.eup %5061 }
0x197e   :  { %v2711_v53 = vadd.f32 1.0, %v5062_v52 }
0x1980   :  { %5065 = vrcp.f32 %v2711_v53 }
0x1989   :  { %v5064_v55 = vpop.eup %5063 }
0x198a   :  { %v2619_v5 = vsub.f32 1.0, %v5064_v55  ;;  %v2627_v57 = vmul.f32 %v5064_v55, %v2625_v3 }
0x198d   :  { %v5066_v60 = vpop.eup %5065 }
0x198e   :  { %v2727_v58 = vsub.f32 1.0, %v5066_v60  ;;  %v2735_v32 = vmul.f32 %v5066_v60, %v2733_v9 }
0x19dc   :  { %v2610_v56 = vpop.permute.xlu1 %2609 }
0x19dd   :  { %v2612_v59 = vmul.f32 %v5064_v55, %v2610_v56 }
0x19df   :  { %2614 = vrot.lane.b32.xlu1 %v2612_v59, %s5163_s18 }
0x19e0   :  { %v2718_v20 = vpop.permute.xlu0 %2717 }
0x19e1   :  { %v2720_v61 = vmul.f32 %v5066_v60, %v2718_v20 }
0x19e3   :  { %2722 = vrot.lane.b32.xlu0 %v2720_v61, %s5163_s18 }
0x1a51   :  { %v2615_v62 = vpop.permute.xlu1 %2614 }
0x1a52   :  { %v2617_v63 = vadd.f32 %v2615_v62, %v5939_v49 }
0x1a54   :  { %5067 = vtanh.f32 %v2617_v63 }
0x1a55   :  { %v2723_v0 = vpop.permute.xlu0 %2722 }
0x1a56   :  { %v2725_v8 = vadd.f32 %v2723_v0, %v5941_v51 }
0x1a58   :  { %5069 = vtanh.f32 %v2725_v8 }
0x1a61   :  { %v5068_v1 = vpop.eup %5067 }
0x1a62   :  { %2621 = vrot.lane.b32.xlu1 %v5068_v1, %s5166_s3 }
0x1a65   :  { %v5070_v2 = vpop.eup %5069 }
0x1a66   :  { %2729 = vrot.lane.b32.xlu0 %v5070_v2, %s5166_s3 }
0x1ad4   :  { %v2622_v7 = vpop.permute.xlu1 %2621 }
0x1ad5   :  { %v2624_v10 = vmul.f32 %v2622_v7, %v2619_v5 }
0x1ad7   :  { %v5995_v11 = vadd.f32 %v2627_v57, %v2624_v10 }
0x1ad8   :  { %v2730_v31 = vpop.permute.xlu0 %2729 }
0x1ad9   :  { %v2732_v33 = vmul.f32 %v2730_v31, %v2727_v58  ;;  %v2747_v34 = vrot.slane %v5995_v11, 2  ;;  %v2851_v2 = vrot.slane %v5995_v11, 6 }
0x1adb   :  { %v5999_v27 = vadd.f32 %v2735_v32, %v2732_v33  ;;  %2748 = vrot.lane.b32.xlu1 %v2747_v34, %s5166_s3 }
0x1add   :  { %v2855_v12 = vrot.slane %v5999_v27, 4  ;;  %v2959_v58 = vrot.slane %v5999_v27, 2 }
0x1adf   :  { %2856 = vrot.lane.b32.xlu0 %v2855_v12, %s5166_s3 }
0x1b4d   :  { %v2749_v28 = vpop.permute.xlu1 %2748 }
0x1b4e   :  { %4769 = vmatmul.mubr.msk.f32.vlgmr.msra.gmra.mxu0 %vm329_vm3, %v2749_v28 }
0x1b4f   :  { %4783 = vmatpush3.msra.mxu0 %v5845_v22  ;;  %4790 = vmatprep.mubr.msk.f32.mxu0 %vm5165_vm2, %v5164_v26 }
0x1b50   :  { %4784 = vmatprep.subr.mxu0 %v5164_v26 }
0x1b51   :  { %v2857_v16 = vpop.permute.xlu0 %2856  ;;  %4785 = vmatpush3.msra.mxu0 %v5857_v29 }
0x1b52   :  { %4780 = vmatmul.mubr.msk.f32.vlgmr.msra.gmra.mxu1 %vm329_vm3, %v2857_v16  ;;  %4786 = vmatprep.subr.mxu0 %v5164_v26 }
0x1b53   :  { %4787 = vmatpush3.msra.mxu0 %v5871_v54  ;;  %4794 = vmatpush3.msra.mxu1 %v5840_v18 }
0x1b54   :  { %4788 = vmatprep.subr.mxu0 %v5164_v26  ;;  %4795 = vmatprep.subr.mxu1 %v5164_v26 }
0x1b55   :  { %4789 = vmatpush3.msra.mxu0 %v5885_v30  ;;  %4796 = vmatpush3.msra.mxu1 %v5852_v45 }
0x1b56   :  { %4797 = vmatprep.subr.mxu1 %v5164_v26  ;;  %4801 = vmatprep.mubr.msk.f32.mxu1 %vm5165_vm2, %v5164_v26 }
0x1b57   :  { %4798 = vmatpush3.msra.mxu1 %v5866_v23  ;;  %4804 = vmatprep.subr.mxu0 %v5164_v26 }
0x1b58   :  { %4799 = vmatprep.subr.mxu1 %v5164_v26 }
0x1b59   :  { %4800 = vmatpush3.msra.mxu1 %v5880_v24 }
0x1b5a   :  { %4815 = vmatprep.subr.mxu1 %v5164_v26 }
0x1c0e   :  { %v2818_v25 = vpop.f32.mrf.mxu0 }
0x1c0f   :  { %v2832_v35 = vadd.f32 %v2818_v25, %v5933_v17  ;;  %v2823_v37 = vrot.slane %v2818_v25, 4 }
0x1c10   :  { %v4770_v36 = vpop.f32.mrf.mxu0 }
0x1c11   :  { %v2834_v39 = vrot.slane %v2832_v35, 4  ;;  %v2825_v48 = vadd.f32 %v2823_v37, %v5939_v49 }
0x1c12   :  { %v2926_v40 = vpop.f32.mrf.mxu1 }
0x1c13   :  { %v2940_v41 = vadd.f32 %v2926_v40, %v5931_v19  ;;  %2835 = vrot.lane.b32.xlu1 %v2834_v39, %s5163_s18  ;;  %v2931_v15 = vrot.slane %v2926_v40, 6  ;;  %v4310_v4 = vmul.f32 -1.442695, %v2825_v48 }
0x1c14   :  { %v4781_v42 = vpop.f32.mrf.mxu1 }
0x1c15   :  { %v2942_v43 = vrot.slane %v2940_v41, 6  ;;  %v2933_v6 = vadd.f32 %v2931_v15, %v5941_v51  ;;  %5071 = vpow2.f32 %v4310_v4 }
0x1c17   :  { %2943 = vrot.lane.b32.xlu0 %v2942_v43, %s5163_s18  ;;  %v4312_v21 = vmul.f32 -1.442695, %v2933_v6 }
0x1c19   :  { %5073 = vpow2.f32 %v4312_v21 }
0x1c22   :  { %v5072_v13 = vpop.eup %5071 }
0x1c23   :  { %v2829_v46 = vadd.f32 1.0, %v5072_v13 }
0x1c25   :  { %5075 = vrcp.f32 %v2829_v46 }
0x1c26   :  { %v5074_v47 = vpop.eup %5073 }
0x1c27   :  { %v2937_v50 = vadd.f32 1.0, %v5074_v47 }
0x1c29   :  { %5077 = vrcp.f32 %v2937_v50 }
0x1c32   :  { %v5076_v52 = vpop.eup %5075 }
0x1c33   :  { %v2845_v1 = vsub.f32 1.0, %v5076_v52  ;;  %v2853_v5 = vmul.f32 %v5076_v52, %v2851_v2 }
0x1c36   :  { %v5078_v56 = vpop.eup %5077 }
0x1c37   :  { %v2953_v10 = vsub.f32 1.0, %v5078_v56  ;;  %v2961_v32 = vmul.f32 %v5078_v56, %v2959_v58 }
0x1c85   :  { %v2836_v53 = vpop.permute.xlu1 %2835 }
0x1c86   :  { %v2838_v55 = vmul.f32 %v5076_v52, %v2836_v53 }
0x1c88   :  { %2840 = vrot.lane.b32.xlu1 %v2838_v55, %s5163_s18 }
0x1c89   :  { %v2944_v59 = vpop.permute.xlu0 %2943 }
0x1c8a   :  { %v2946_v60 = vmul.f32 %v5078_v56, %v2944_v59 }
0x1c8c   :  { %2948 = vrot.lane.b32.xlu0 %v2946_v60, %s5163_s18 }
0x1cfa   :  { %v2841_v20 = vpop.permute.xlu1 %2840 }
0x1cfb   :  { %v2843_v61 = vadd.f32 %v2841_v20, %v5939_v49 }
0x1cfd   :  { %5079 = vtanh.f32 %v2843_v61 }
0x1cfe   :  { %v2949_v62 = vpop.permute.xlu0 %2948 }
0x1cff   :  { %v2951_v63 = vadd.f32 %v2949_v62, %v5941_v51 }
0x1d01   :  { %5081 = vtanh.f32 %v2951_v63 }
0x1d0a   :  { %v5080_v0 = vpop.eup %5079 }
0x1d0b   :  { %2847 = vrot.lane.b32.xlu1 %v5080_v0, %s5166_s3 }
0x1d0e   :  { %v5082_v8 = vpop.eup %5081 }
0x1d0f   :  { %2955 = vrot.lane.b32.xlu0 %v5082_v8, %s5166_s3 }
0x1d7d   :  { %v2848_v3 = vpop.permute.xlu1 %2847 }
0x1d7e   :  { %v2850_v7 = vmul.f32 %v2848_v3, %v2845_v1 }
0x1d80   :  { %v6039_v57 = vadd.f32 %v2853_v5, %v2850_v7 }
0x1d81   :  { %v2956_v9 = vpop.permute.xlu0 %2955 }
0x1d82   :  { %v2973_v31 = vrot.slane %v6039_v57, 4  ;;  %v2958_v33 = vmul.f32 %v2956_v9, %v2953_v10  ;;  %v3077_v8 = vrot.slane %v6039_v57, 6 }
0x1d84   :  { %v6043_v34 = vadd.f32 %v2961_v32, %v2958_v33  ;;  %2974 = vrot.lane.b32.xlu1 %v2973_v31, %s5166_s3 }
0x1d86   :  { %v3081_v12 = vrot.slane %v6043_v34, 2 }
0x1d88   :  { %3082 = vrot.lane.b32.xlu0 %v3081_v12, %s5166_s3 }
0x1df6   :  { %v2975_v28 = vpop.permute.xlu1 %2974 }
0x1df7   :  { %4791 = vmatmul.mubr.msk.f32.vlgmr.msra.gmra.mxu0 %vm329_vm3, %v2975_v28 }
0x1df8   :  { %4805 = vmatpush3.msra.mxu0 %v5845_v22  ;;  %4812 = vmatprep.mubr.msk.f32.mxu0 %vm5165_vm2, %v5164_v26 }
0x1df9   :  { %4806 = vmatprep.subr.mxu0 %v5164_v26 }
0x1dfa   :  { %v3083_v16 = vpop.permute.xlu0 %3082  ;;  %4807 = vmatpush3.msra.mxu0 %v5857_v29 }
0x1dfb   :  { %4802 = vmatmul.mubr.msk.f32.vlgmr.msra.gmra.mxu1 %vm329_vm3, %v3083_v16  ;;  %4808 = vmatprep.subr.mxu0 %v5164_v26 }
0x1dfc   :  { %4816 = vmatpush3.msra.mxu1 %v5840_v18  ;;  %4809 = vmatpush3.msra.mxu0 %v5871_v54 }
0x1dfd   :  { %4817 = vmatprep.subr.mxu1 %v5164_v26  ;;  %4810 = vmatprep.subr.mxu0 %v5164_v26 }
0x1dfe   :  { %4818 = vmatpush3.msra.mxu1 %v5852_v45  ;;  %4823 = vmatprep.mubr.msk.f32.mxu1 %vm5165_vm2, %v5164_v26 }
0x1dff   :  { %4819 = vmatprep.subr.mxu1 %v5164_v26  ;;  %4811 = vmatpush3.msra.mxu0 %v5885_v30 }
0x1e00   :  { %4820 = vmatpush3.msra.mxu1 %v5866_v23  ;;  %4826 = vmatprep.subr.mxu0 %v5164_v26 }
0x1e01   :  { %4821 = vmatprep.subr.mxu1 %v5164_v26 }
0x1e02   :  { %4822 = vmatpush3.msra.mxu1 %v5880_v24 }
0x1e03   :  { %4837 = vmatprep.subr.mxu1 %v5164_v26 }
0x1eb7   :  { %v3044_v25 = vpop.f32.mrf.mxu0 }
0x1eb8   :  { %v3058_v35 = vadd.f32 %v3044_v25, %v5933_v17  ;;  %v3049_v43 = vrot.slane %v3044_v25, 2 }
0x1eb9   :  { %v4792_v36 = vpop.f32.mrf.mxu0 }
0x1eba   :  { %v3060_v39 = vrot.slane %v3058_v35, 2  ;;  %v3051_v37 = vadd.f32 %v3049_v43, %v5939_v49 }
0x1ebb   :  { %v3152_v40 = vpop.f32.mrf.mxu1 }
0x1ebc   :  { %v3163_v41 = vadd.f32 %v3152_v40, %v5931_v19  ;;  %3061 = vrot.lane.b32.xlu1 %v3060_v39, %s5163_s18  ;;  %v3156_v48 = vadd.f32 %v3152_v40, %v5941_v51  ;;  %v4314_v15 = vmul.f32 -1.442695, %v3051_v37 }
0x1ebd   :  { %v4803_v42 = vpop.f32.mrf.mxu1 }
0x1ebe   :  { %3165 = vrot.lane.b32.xlu0 %v3163_v41, %s5163_s18  ;;  %v4316_v4 = vmul.f32 -1.442695, %v3156_v48  ;;  %5083 = vpow2.f32 %v4314_v15 }
0x1ec0   :  { %5085 = vpow2.f32 %v4316_v4 }
0x1ecb   :  { %v5084_v6 = vpop.eup %5083 }
0x1ecc   :  { %v3055_v13 = vadd.f32 1.0, %v5084_v6 }
0x1ecd   :  { %v5086_v21 = vpop.eup %5085 }
0x1ece   :  { %v3160_v46 = vadd.f32 1.0, %v5086_v21  ;;  %5087 = vrcp.f32 %v3055_v13 }
0x1ed0   :  { %5089 = vrcp.f32 %v3160_v46 }
0x1edb   :  { %v5088_v47 = vpop.eup %5087 }
0x1edc   :  { %v3071_v0 = vsub.f32 1.0, %v5088_v47  ;;  %v3079_v2 = vmul.f32 %v5088_v47, %v3077_v8 }
0x1edd   :  { %v5090_v53 = vpop.eup %5089 }
0x1ede   :  { %v3175_v5 = vsub.f32 1.0, %v5090_v53 }
0x1f2e   :  { %v3062_v50 = vpop.permute.xlu1 %3061 }
0x1f2f   :  { %v3064_v52 = vmul.f32 %v5088_v47, %v3062_v50 }
0x1f30   :  { %v3166_v55 = vpop.permute.xlu0 %3165 }
0x1f31   :  { %v3168_v56 = vmul.f32 %v5090_v53, %v3166_v55  ;;  %3066 = vrot.lane.b32.xlu1 %v3064_v52, %s5163_s18 }
0x1f33   :  { %3170 = vrot.lane.b32.xlu0 %v3168_v56, %s5163_s18 }
0x1fa3   :  { %v3067_v59 = vpop.permute.xlu1 %3066 }
0x1fa4   :  { %v3069_v60 = vadd.f32 %v3067_v59, %v5939_v49 }
0x1fa5   :  { %v3171_v20 = vpop.permute.xlu0 %3170 }
0x1fa6   :  { %5091 = vtanh.f32 %v3069_v60  ;;  %v3173_v61 = vadd.f32 %v3171_v20, %v5941_v51  ;;  %v3182_v51 = vmul.f32 %v5090_v53, %v3081_v12 }
0x1fa8   :  { %5093 = vtanh.f32 %v3173_v61 }
0x1fb3   :  { %v5092_v62 = vpop.eup %5091 }
0x1fb4   :  { %3073 = vrot.lane.b32.xlu1 %v5092_v62, %s5166_s3 }
0x1fb5   :  { %v5094_v63 = vpop.eup %5093 }
0x1fb6   :  { %3177 = vrot.lane.b32.xlu0 %v5094_v63, %s5166_s3 }
0x2026   :  { %v3074_v1 = vpop.permute.xlu1 %3073 }
0x2027   :  { %v3076_v3 = vmul.f32 %v3074_v1, %v3071_v0 }
0x2028   :  { %v3178_v7 = vpop.permute.xlu0 %3177 }
0x2029   :  { %v6085_v49 = vadd.f32 %v3079_v2, %v3076_v3  ;;  %v3180_v10 = vmul.f32 %v3178_v7, %v3175_v5 }
0x202b   :  { %v3194_v58 = vrot.slane %v6085_v49, 6  ;;  %v6090_v9 = vadd.f32 %v3182_v51, %v3180_v10 }
0x202d   :  { %3190 = vrot.lane.b32.xlu0 %v6090_v9, %s5166_s3  ;;  %3195 = vrot.lane.b32.xlu1 %v3194_v58, %s5166_s3  ;;  %v3398_v62 = vrot.slane %v6090_v9, 2 }
0x209f   :  { %v3191_v31 = vpop.permute.xlu0 %3190  ;;  %v3196_v32 = vpop.permute.xlu1 %3195 }
0x20a0   :  { %3193 = vst.msk [vmem:[#allocation5 + $0x8] sm:$0x3] %vm541_vm4, %v3191_v31  ;;  %4813 = vmatmul.mubr.msk.f32.vlgmr.msra.gmra.mxu0 %vm329_vm3, %v3196_v32  ;;  %4824 = vmatmul.mubr.msk.f32.vlgmr.msra.gmra.mxu1 %vm329_vm3, %v3191_v31 }
0x20a1   :  { %4827 = vmatpush3.msra.mxu0 %v5845_v22  ;;  %4838 = vmatpush3.msra.mxu1 %v5840_v18 }
0x20a2   :  { %4828 = vmatprep.subr.mxu0 %v5164_v26  ;;  %4839 = vmatprep.subr.mxu1 %v5164_v26 }
0x20a3   :  { %4829 = vmatpush3.msra.mxu0 %v5857_v29  ;;  %4834 = vmatprep.mubr.msk.f32.mxu0 %vm5165_vm2, %v5164_v26 }
0x20a4   :  { %4830 = vmatprep.subr.mxu0 %v5164_v26  ;;  %4840 = vmatpush3.msra.mxu1 %v5852_v45 }
0x20a5   :  { %4831 = vmatpush3.msra.mxu0 %v5871_v54  ;;  %4841 = vmatprep.subr.mxu1 %v5164_v26 }
0x20a6   :  { %4832 = vmatprep.subr.mxu0 %v5164_v26  ;;  %4842 = vmatpush3.msra.mxu1 %v5866_v23 }
0x20a7   :  { %4833 = vmatpush3.msra.mxu0 %v5885_v30  ;;  %4843 = vmatprep.subr.mxu1 %v5164_v26 }
0x20a8   :  { %4844 = vmatpush3.msra.mxu1 %v5880_v24  ;;  %4845 = vmatprep.mubr.msk.f32.mxu1 %vm5165_vm2, %v5164_v26 }
0x20a9   :  { %4848 = vmatprep.subr.mxu0 %v5164_v26  ;;  %4859 = vmatprep.subr.mxu1 %v5164_v26 }
0x2160   :  { %v3265_v33 = vpop.f32.mrf.mxu0  ;;  %v3365_v12 = vpop.f32.mrf.mxu1 }
0x2161   :  { %v3276_v28 = vadd.f32 %v3265_v33, %v5933_v17  ;;  %v3379_v16 = vadd.f32 %v3365_v12, %v5931_v19  ;;  %v3370_v39 = vrot.slane %v3365_v12, 2  ;;  %v3269_v40 = vadd.f32 %v3265_v33, %v5929_v44 }
0x2162   :  { %v4814_v25 = vpop.f32.mrf.mxu0  ;;  %v4825_v35 = vpop.f32.mrf.mxu1 }
0x2163   :  { %v3381_v36 = vrot.slane %v3379_v16, 2  ;;  %3278 = vrot.lane.b32.xlu1 %v3276_v28, %s5163_s18  ;;  %v3372_v41 = vadd.f32 %v3370_v39, %v5924_v38  ;;  %v4318_v42 = vmul.f32 -1.442695, %v3269_v40 }
0x2165   :  { %3382 = vrot.lane.b32.xlu0 %v3381_v36, %s5163_s18  ;;  %v4320_v43 = vmul.f32 -1.442695, %v3372_v41  ;;  %5095 = vpow2.f32 %v4318_v42 }
0x2167   :  { %5097 = vpow2.f32 %v4320_v43 }
0x2172   :  { %v5096_v37 = vpop.eup %5095 }
0x2173   :  { %v3273_v15 = vadd.f32 1.0, %v5096_v37 }
0x2174   :  { %v5098_v48 = vpop.eup %5097 }
0x2175   :  { %v3376_v4 = vadd.f32 1.0, %v5098_v48  ;;  %5099 = vrcp.f32 %v3273_v15 }
0x2177   :  { %5101 = vrcp.f32 %v3376_v4 }
0x2182   :  { %v5100_v6 = vpop.eup %5099 }
0x2183   :  { %v3288_v20 = vsub.f32 1.0, %v5100_v6  ;;  %v3295_v63 = vmul.f32 %v5100_v6, %v3194_v58 }
0x2184   :  { %v5102_v46 = vpop.eup %5101 }
0x2185   :  { %v3392_v8 = vsub.f32 1.0, %v5102_v46  ;;  %v3400_v3 = vmul.f32 %v5102_v46, %v3398_v62 }
0x21d5   :  { %v3279_v21 = vpop.permute.xlu1 %3278 }
0x21d6   :  { %v3281_v13 = vmul.f32 %v5100_v6, %v3279_v21 }
0x21d7   :  { %v3383_v47 = vpop.permute.xlu0 %3382 }
0x21d8   :  { %v3385_v50 = vmul.f32 %v5102_v46, %v3383_v47  ;;  %3283 = vrot.lane.b32.xlu1 %v3281_v13, %s5163_s18 }
0x21da   :  { %3387 = vrot.lane.b32.xlu0 %v3385_v50, %s5163_s18 }
0x224a   :  { %v3284_v52 = vpop.permute.xlu1 %3283 }
0x224b   :  { %v3286_v53 = vadd.f32 %v3284_v52, %v5929_v44 }
0x224c   :  { %v3388_v55 = vpop.permute.xlu0 %3387 }
0x224d   :  { %5103 = vtanh.f32 %v3286_v53  ;;  %v3390_v56 = vadd.f32 %v3388_v55, %v5924_v38 }
0x224f   :  { %5105 = vtanh.f32 %v3390_v56 }
0x225a   :  { %v5104_v59 = vpop.eup %5103 }
0x225b   :  { %3290 = vrot.lane.b32.xlu1 %v5104_v59, %s5166_s3 }
0x225c   :  { %v5106_v60 = vpop.eup %5105 }
0x225d   :  { %3394 = vrot.lane.b32.xlu0 %v5106_v60, %s5166_s3 }
0x22cd   :  { %v3291_v61 = vpop.permute.xlu1 %3290 }
0x22ce   :  { %v3293_v0 = vmul.f32 %v3291_v61, %v3288_v20 }
0x22cf   :  { %v3395_v1 = vpop.permute.xlu0 %3394 }
0x22d0   :  { %v6135_v2 = vadd.f32 %v3295_v63, %v3293_v0  ;;  %v3397_v5 = vmul.f32 %v3395_v1, %v3392_v8 }
0x22d2   :  { %v6137_v7 = vadd.f32 %v3400_v3, %v3397_v5  ;;  %3403 = vrot.lane.b32.xlu1 %v6135_v2, %s5166_s3  ;;  %v3513_v47 = vrot.slane %v6135_v2, 6  ;;  %v5155_v2 = vld [vmem:[%s6351_s11 + $0x18] sm:$0xff]  ;;  %v5156_v5 = vld [vmem:[%s6351_s11 + $0x10] sm:$0xff] }
0x22d4   :  { %v3517_v51 = vrot.slane %v6137_v7, 6  ;;  %v3621_v60 = vrot.slane %v6137_v7, 2 }
0x22d6   :  { %3518 = vrot.lane.b32.xlu0 %v3517_v51, %s5166_s3  ;;  %v5157_v51 = vld [vmem:[%s6351_s11 + $0x8] sm:$0xff] }
0x2344   :  { %v3404_v10 = vpop.permute.xlu1 %3403 }
0x2345   :  { %3406 = vst.msk [vmem:[#allocation4 + $0x8] sm:$0x3] %vm541_vm4, %v3404_v10  ;;  %4835 = vmatmul.mubr.msk.f32.vlgmr.msra.gmra.mxu0 %vm329_vm3, %v3404_v10  ;;  %v5158_v10 = vld [vmem:[%s6351_s11 + $0x38] sm:$0xff] }
0x2346   :  { %4849 = vmatpush3.msra.mxu0 %v5845_v22  ;;  %4856 = vmatprep.mubr.msk.f32.mxu0 %vm5165_vm2, %v5164_v26 }
0x2347   :  { %4850 = vmatprep.subr.mxu0 %v5164_v26 }
0x2348   :  { %v3519_v58 = vpop.permute.xlu0 %3518  ;;  %4851 = vmatpush3.msra.mxu0 %v5857_v29 }
0x2349   :  { %4846 = vmatmul.mubr.msk.f32.vlgmr.msra.gmra.mxu1 %vm329_vm3, %v3519_v58  ;;  %4852 = vmatprep.subr.mxu0 %v5164_v26  ;;  %v5159_v58 = vld [vmem:[%s6351_s11 + $0x30] sm:$0xff] }
0x234a   :  { %4853 = vmatpush3.msra.mxu0 %v5871_v54  ;;  %4860 = vmatpush3.msra.mxu1 %v5840_v18 }
0x234b   :  { %4854 = vmatprep.subr.mxu0 %v5164_v26  ;;  %4861 = vmatprep.subr.mxu1 %v5164_v26 }
0x234c   :  { %4855 = vmatpush3.msra.mxu0 %v5885_v30  ;;  %4862 = vmatpush3.msra.mxu1 %v5852_v45 }
0x234d   :  { %4863 = vmatprep.subr.mxu1 %v5164_v26  ;;  %4867 = vmatprep.mubr.msk.f32.mxu1 %vm5165_vm2, %v5164_v26 }
0x234e   :  { %4864 = vmatpush3.msra.mxu1 %v5866_v23  ;;  %4870 = vmatprep.subr.mxu0 %v5164_v26 }
0x234f   :  { %4865 = vmatprep.subr.mxu1 %v5164_v26 }
0x2350   :  { %4866 = vmatpush3.msra.mxu1 %v5880_v24 }
0x2351   :  { %4881 = vmatprep.subr.mxu1 %v5164_v26 }
0x2405   :  { %v3480_v18 = vpop.f32.mrf.mxu0 }
0x2406   :  { %v3494_v22 = vadd.f32 %v3480_v18, %v5933_v17  ;;  %v3485_v32 = vrot.slane %v3480_v18, 6  ;;  %v5160_v18 = vld [vmem:[%s6351_s11 + $0x28] sm:$0xff] }
0x2407   :  { %v4836_v29 = vpop.f32.mrf.mxu0 }
0x2408   :  { %v3496_v45 = vrot.slane %v3494_v22, 6  ;;  %v3487_v33 = vadd.f32 %v3485_v32, %v5929_v44 }
0x2409   :  { %v3588_v54 = vpop.f32.mrf.mxu1 }
0x240a   :  { %v3602_v9 = vadd.f32 %v3588_v54, %v5931_v19  ;;  %3497 = vrot.lane.b32.xlu1 %v3496_v45, %s5163_s18  ;;  %v3593_v24 = vrot.slane %v3588_v54, 4  ;;  %v4322_v12 = vmul.f32 -1.442695, %v3487_v33 }
0x240b   :  { %v4847_v31 = vpop.f32.mrf.mxu1 }
0x240c   :  { %v3604_v23 = vrot.slane %v3602_v9, 4  ;;  %v3595_v28 = vadd.f32 %v3593_v24, %v5924_v38  ;;  %5107 = vpow2.f32 %v4322_v12 }
0x240e   :  { %3605 = vrot.lane.b32.xlu0 %v3604_v23, %s5163_s18  ;;  %v4324_v16 = vmul.f32 -1.442695, %v3595_v28 }
0x2410   :  { %5109 = vpow2.f32 %v4324_v16 }
0x2419   :  { %v5108_v25 = vpop.eup %5107 }
0x241a   :  { %v3491_v35 = vadd.f32 1.0, %v5108_v25 }
0x241c   :  { %5111 = vrcp.f32 %v3491_v35 }
0x241d   :  { %v5110_v36 = vpop.eup %5109 }
0x241e   :  { %v3599_v39 = vadd.f32 1.0, %v5110_v36 }
0x2420   :  { %5113 = vrcp.f32 %v3599_v39 }
0x2429   :  { %v5112_v40 = vpop.eup %5111 }
0x242a   :  { %v3507_v50 = vsub.f32 1.0, %v5112_v40  ;;  %v3515_v53 = vmul.f32 %v5112_v40, %v3513_v47 }
0x242d   :  { %v5114_v43 = vpop.eup %5113 }
0x242e   :  { %v3615_v59 = vsub.f32 1.0, %v5114_v43  ;;  %v3623_v62 = vmul.f32 %v5114_v43, %v3621_v60 }
0x247c   :  { %v3498_v41 = vpop.permute.xlu1 %3497 }
0x247d   :  { %v3500_v42 = vmul.f32 %v5112_v40, %v3498_v41 }
0x247f   :  { %3502 = vrot.lane.b32.xlu1 %v3500_v42, %s5163_s18 }
0x2480   :  { %v3606_v37 = vpop.permute.xlu0 %3605 }
0x2481   :  { %v3608_v48 = vmul.f32 %v5114_v43, %v3606_v37 }
0x2483   :  { %3610 = vrot.lane.b32.xlu0 %v3608_v48, %s5163_s18 }
0x24f1   :  { %v3503_v15 = vpop.permute.xlu1 %3502 }
0x24f2   :  { %v3505_v4 = vadd.f32 %v3503_v15, %v5929_v44 }
0x24f4   :  { %5115 = vtanh.f32 %v3505_v4 }
0x24f5   :  { %v3611_v6 = vpop.permute.xlu0 %3610 }
0x24f6   :  { %v3613_v21 = vadd.f32 %v3611_v6, %v5924_v38 }
0x24f8   :  { %5117 = vtanh.f32 %v3613_v21 }
0x2501   :  { %v5116_v13 = vpop.eup %5115 }
0x2502   :  { %3509 = vrot.lane.b32.xlu1 %v5116_v13, %s5166_s3 }
0x2505   :  { %v5118_v46 = vpop.eup %5117 }
0x2506   :  { %3617 = vrot.lane.b32.xlu0 %v5118_v46, %s5166_s3 }
0x2574   :  { %v3510_v52 = vpop.permute.xlu1 %3509 }
0x2575   :  { %v3512_v55 = vmul.f32 %v3510_v52, %v3507_v50 }
0x2577   :  { %v6179_v56 = vadd.f32 %v3515_v53, %v3512_v55 }
0x2578   :  { %v3618_v20 = vpop.permute.xlu0 %3617 }
0x2579   :  { %v3635_v61 = vrot.slane %v6179_v56, 2  ;;  %v3620_v63 = vmul.f32 %v3618_v20, %v3615_v59  ;;  %v3739_v50 = vrot.slane %v6179_v56, 6 }
0x257b   :  { %v6183_v0 = vadd.f32 %v3623_v62, %v3620_v63  ;;  %3636 = vrot.lane.b32.xlu1 %v3635_v61, %s5166_s3 }
0x257d   :  { %v3743_v8 = vrot.slane %v6183_v0, 4  ;;  %v3847_v20 = vrot.slane %v6183_v0, 2 }
0x257f   :  { %3744 = vrot.lane.b32.xlu0 %v3743_v8, %s5166_s3 }
0x25ed   :  { %v3637_v1 = vpop.permute.xlu1 %3636 }
0x25ee   :  { %4857 = vmatmul.mubr.msk.f32.vlgmr.msra.gmra.mxu0 %vm329_vm3, %v3637_v1 }
0x25ef   :  { %4871 = vmatpush3.msra.mxu0 %v5155_v2  ;;  %4878 = vmatprep.mubr.msk.f32.mxu0 %vm5165_vm2, %v5164_v26 }
0x25f0   :  { %4872 = vmatprep.subr.mxu0 %v5164_v26 }
0x25f1   :  { %v3745_v3 = vpop.permute.xlu0 %3744  ;;  %4873 = vmatpush3.msra.mxu0 %v5156_v5 }
0x25f2   :  { %4868 = vmatmul.mubr.msk.f32.vlgmr.msra.gmra.mxu1 %vm329_vm3, %v3745_v3  ;;  %4874 = vmatprep.subr.mxu0 %v5164_v26 }
0x25f3   :  { %4875 = vmatpush3.msra.mxu0 %v5157_v51  ;;  %4882 = vmatpush3.msra.mxu1 %v5158_v10 }
0x25f4   :  { %4876 = vmatprep.subr.mxu0 %v5164_v26  ;;  %4883 = vmatprep.subr.mxu1 %v5164_v26 }
0x25f5   :  { %4877 = vmatpush3.msra.mxu0 %v5885_v30  ;;  %4884 = vmatpush3.msra.mxu1 %v5159_v58  ;;  %v5161_v30 = vld [vmem:[%s6351_s11 + $0x20] sm:$0xff] }
0x25f6   :  { %4885 = vmatprep.subr.mxu1 %v5164_v26  ;;  %4889 = vmatprep.mubr.msk.f32.mxu1 %vm5165_vm2, %v5164_v26 }
0x25f7   :  { %4886 = vmatpush3.msra.mxu1 %v5160_v18 }
0x25f8   :  { %4887 = vmatprep.subr.mxu1 %v5164_v26 }
0x25f9   :  { %4888 = vmatpush3.msra.mxu1 %v5161_v30 }
0x26ae   :  { %v3706_v22 = vpop.f32.mrf.mxu0 }
0x26af   :  { %v3720_v29 = vadd.f32 %v3706_v22, %v5933_v17  ;;  %v3711_v26 = vrot.slane %v3706_v22, 4 }
0x26b0   :  { %v4858_v45 = vpop.f32.mrf.mxu0 }
0x26b1   :  { %v3722_v54 = vrot.slane %v3720_v29, 4  ;;  %v3713_v33 = vadd.f32 %v3711_v26, %v5929_v44 }
0x26b2   :  { %v3814_v9 = vpop.f32.mrf.mxu1 }
0x26b3   :  { %v3828_v31 = vadd.f32 %v3814_v9, %v5931_v19  ;;  %3723 = vrot.lane.b32.xlu1 %v3722_v54, %s5163_s18  ;;  %v3819_v24 = vrot.slane %v3814_v9, 6  ;;  %v4326_v12 = vmul.f32 -1.442695, %v3713_v33 }
0x26b4   :  { %v4869_v23 = vpop.f32.mrf.mxu1 }
0x26b5   :  { %v3830_v32 = vrot.slane %v3828_v31, 6  ;;  %v3821_v28 = vadd.f32 %v3819_v24, %v5924_v38  ;;  %5119 = vpow2.f32 %v4326_v12 }
0x26b7   :  { %3831 = vrot.lane.b32.xlu0 %v3830_v32, %s5163_s18  ;;  %v4328_v16 = vmul.f32 -1.442695, %v3821_v28 }
0x26b9   :  { %5121 = vpow2.f32 %v4328_v16 }
0x26c2   :  { %v5120_v25 = vpop.eup %5119 }
0x26c3   :  { %v3717_v35 = vadd.f32 1.0, %v5120_v25 }
0x26c5   :  { %5123 = vrcp.f32 %v3717_v35 }
0x26c6   :  { %v5122_v36 = vpop.eup %5121 }
0x26c7   :  { %v3825_v39 = vadd.f32 1.0, %v5122_v36 }
0x26c9   :  { %5125 = vrcp.f32 %v3825_v39 }
0x26d2   :  { %v5124_v40 = vpop.eup %5123 }
0x26d3   :  { %v3733_v47 = vsub.f32 1.0, %v5124_v40  ;;  %v3741_v53 = vmul.f32 %v5124_v40, %v3739_v50  ;;  %v4099_v50 = vld [vmem:[%s6354_s13 + $0x18] sm:$0xff] }
0x26d6   :  { %v5126_v43 = vpop.eup %5125 }
0x26d7   :  { %v3841_v60 = vsub.f32 1.0, %v5126_v43  ;;  %v3849_v63 = vmul.f32 %v5126_v43, %v3847_v20 }
0x2725   :  { %v3724_v41 = vpop.permute.xlu1 %3723 }
0x2726   :  { %v3726_v42 = vmul.f32 %v5124_v40, %v3724_v41 }
0x2728   :  { %3728 = vrot.lane.b32.xlu1 %v3726_v42, %s5163_s18 }
0x2729   :  { %v3832_v37 = vpop.permute.xlu0 %3831 }
0x272a   :  { %v3834_v48 = vmul.f32 %v5126_v43, %v3832_v37 }
0x272c   :  { %3836 = vrot.lane.b32.xlu0 %v3834_v48, %s5163_s18 }
0x279a   :  { %v3729_v15 = vpop.permute.xlu1 %3728 }
0x279b   :  { %v3731_v4 = vadd.f32 %v3729_v15, %v5929_v44 }
0x279d   :  { %5127 = vtanh.f32 %v3731_v4 }
0x279e   :  { %v3837_v6 = vpop.permute.xlu0 %3836 }
0x279f   :  { %v3839_v21 = vadd.f32 %v3837_v6, %v5924_v38 }
0x27a1   :  { %5129 = vtanh.f32 %v3839_v21 }
0x27aa   :  { %v5128_v13 = vpop.eup %5127 }
0x27ab   :  { %3735 = vrot.lane.b32.xlu1 %v5128_v13, %s5166_s3  ;;  %v4102_v13 = vld [vmem:[%s6354_s13 + $0x30] sm:$0xff] }
0x27ae   :  { %v5130_v46 = vpop.eup %5129 }
0x27af   :  { %3843 = vrot.lane.b32.xlu0 %v5130_v46, %s5166_s3  ;;  %v4101_v46 = vld [vmem:[%s6354_s13 + $0x28] sm:$0xff] }
0x281d   :  { %v3736_v52 = vpop.permute.xlu1 %3735 }
0x281e   :  { %v3738_v55 = vmul.f32 %v3736_v52, %v3733_v47 }
0x2820   :  { %v6235_v59 = vadd.f32 %v3741_v53, %v3738_v55 }
0x2821   :  { %v3844_v61 = vpop.permute.xlu0 %3843 }
0x2822   :  { %v3861_v62 = vrot.slane %v6235_v59, 4  ;;  %v3846_v8 = vmul.f32 %v3844_v61, %v3841_v60  ;;  %v4096_v60 = vld [vmem:[%s6354_s13] sm:$0xff] }
0x2824   :  { %v6239_v1 = vadd.f32 %v3849_v63, %v3846_v8  ;;  %3862 = vrot.lane.b32.xlu1 %v3861_v62, %s5166_s3 }
0x2826   :  { %v3969_v2 = vrot.slane %v6239_v1, 2 }
0x2828   :  { %3970 = vrot.lane.b32.xlu0 %v3969_v2, %s5166_s3 }
0x2896   :  { %v3863_v3 = vpop.permute.xlu1 %3862 }
0x2897   :  { %4879 = vmatmul.mubr.msk.f32.vlgmr.msra.gmra.mxu0 %vm329_vm3, %v3863_v3 }
0x289a   :  { %v3971_v5 = vpop.permute.xlu0 %3970 }
0x289b   :  { %4890 = vmatmul.mubr.msk.f32.vlgmr.msra.gmra.mxu1 %vm329_vm3, %v3971_v5 }
0x2957   :  { %v3932_v51 = vpop.f32.mrf.mxu0 }
0x2958   :  { %v3946_v10 = vadd.f32 %v3932_v51, %v5933_v17  ;;  %v3937_v45 = vrot.slane %v3932_v51, 2 }
0x2959   :  { %v4880_v58 = vpop.f32.mrf.mxu0 }
0x295a   :  { %v3948_v18 = vrot.slane %v3946_v10, 2  ;;  %v3939_v54 = vadd.f32 %v3937_v45, %v5929_v44 }
0x295b   :  { %v4040_v30 = vpop.f32.mrf.mxu1 }
0x295c   :  { %v4051_v22 = vadd.f32 %v4040_v30, %v5931_v19  ;;  %3949 = vrot.lane.b32.xlu1 %v3948_v18, %s5163_s18  ;;  %v4044_v9 = vadd.f32 %v4040_v30, %v5924_v38  ;;  %v4330_v31 = vmul.f32 -1.442695, %v3939_v54  ;;  %v4333_v30 = vld [vmem:[%s6355_s14] ss:$0 sm:$0xff] }
0x295d   :  { %v4891_v29 = vpop.f32.mrf.mxu1 }
0x295e   :  { %4053 = vrot.lane.b32.xlu0 %v4051_v22, %s5163_s18  ;;  %v4332_v23 = vmul.f32 -1.442695, %v4044_v9  ;;  %5131 = vpow2.f32 %v4330_v31 }
0x2960   :  { %5133 = vpow2.f32 %v4332_v23 }
0x296b   :  { %v5132_v17 = vpop.eup %5131 }
0x296c   :  { %v3943_v26 = vadd.f32 1.0, %v5132_v17 }
0x296d   :  { %v5134_v32 = vpop.eup %5133 }
0x296e   :  { %v4048_v33 = vadd.f32 1.0, %v5134_v32  ;;  %5135 = vrcp.f32 %v3943_v26 }
0x2970   :  { %5137 = vrcp.f32 %v4048_v33 }
0x297b   :  { %v5136_v19 = vpop.eup %5135 }
0x297d   :  { %v5138_v28 = vpop.eup %5137 }
0x297e   :  { %v4063_v37 = vsub.f32 1.0, %v5138_v28  ;;  %v4070_v4 = vmul.f32 %v5138_v28, %v3969_v2 }
0x29ce   :  { %v3950_v24 = vpop.permute.xlu1 %3949 }
0x29cf   :  { %v3952_v12 = vmul.f32 %v5136_v19, %v3950_v24 }
0x29d0   :  { %v4054_v16 = vpop.permute.xlu0 %4053 }
0x29d1   :  { %v4056_v25 = vmul.f32 %v5138_v28, %v4054_v16  ;;  %3954 = vrot.lane.b32.xlu1 %v3952_v12, %s5163_s18 }
0x29d3   :  { %4058 = vrot.lane.b32.xlu0 %v4056_v25, %s5163_s18 }
0x2a43   :  { %v3955_v35 = vpop.permute.xlu1 %3954 }
0x2a44   :  { %v3957_v36 = vadd.f32 %v3955_v35, %v5929_v44  ;;  %v3965_v44 = vrot.slane %v6235_v59, 6 }
0x2a45   :  { %v4059_v39 = vpop.permute.xlu0 %4058 }
0x2a46   :  { %5139 = vtanh.f32 %v3957_v36  ;;  %v4061_v40 = vadd.f32 %v4059_v39, %v5924_v38  ;;  %v3959_v38 = vsub.f32 1.0, %v5136_v19 }
0x2a48   :  { %5141 = vtanh.f32 %v4061_v40 }
0x2a53   :  { %v5140_v41 = vpop.eup %5139 }
0x2a54   :  { %3961 = vrot.lane.b32.xlu1 %v5140_v41, %s5166_s3 }
0x2a55   :  { %v5142_v42 = vpop.eup %5141 }
0x2a56   :  { %4065 = vrot.lane.b32.xlu0 %v5142_v42, %s5166_s3 }
0x2a58   :  { %3631 = vrot.lane.b32.xlu1 %v6183_v0, %s5166_s3 }
0x2a5a   :  { %3408 = vrot.lane.b32.xlu0 %v6137_v7, %s5166_s3  ;;  %v3967_v7 = vmul.f32 %v5136_v19, %v3965_v44 }
0x2a5e   :  { %3857 = vrot.lane.b32.xlu0 %v6239_v1, %s5166_s3 }
0x2a62   :  { %2520 = vrot.lane.b32.xlu0 %v5953_v14, %s5166_s3 }
0x2a66   :  { %2969 = vrot.lane.b32.xlu0 %v6043_v34, %s5166_s3 }
0x2a6a   :  { %2964 = vrot.lane.b32.xlu0 %v6039_v57, %s5166_s3 }
0x2a6e   :  { %3626 = vrot.lane.b32.xlu0 %v6179_v56, %s5166_s3  ;;  %v4103_v56 = vld [vmem:[%s6354_s13 + $0x38] sm:$0xff] }
0x2a6f   :  { %4892 = vmatprep.subr.mxu0 %v4103_v56 }
0x2a70   :  { %4893 = vmatpush3.msra.mxu0 %v4103_v56 }
0x2a71   :  { %4894 = vmatprep.subr.mxu0 %v4102_v13 }
0x2a72   :  { %4895 = vmatpush3.msra.mxu0 %v4102_v13 }
0x2a73   :  { %4896 = vmatprep.subr.mxu0 %v4101_v46 }
0x2a74   :  { %4897 = vmatpush3.msra.mxu0 %v4101_v46 }
0x2ac6   :  { %v3962_v0 = vpop.permute.xlu1 %3961 }
0x2ac7   :  { %v3964_v43 = vmul.f32 %v3962_v0, %v3959_v38 }
0x2ac8   :  { %v4066_v48 = vpop.permute.xlu0 %4065 }
0x2ac9   :  { %v3968_v15 = vadd.f32 %v3967_v7, %v3964_v43  ;;  %v4068_v14 = vmul.f32 %v4066_v48, %v4063_v37 }
0x2aca   :  { %v3632_v6 = vpop.permute.xlu1 %3631 }
0x2acb   :  { %v4071_v21 = vadd.f32 %v4070_v4, %v4068_v14  ;;  %3634 = vst.msk [vmem:[#allocation5] sm:$0x30] %vm772_vm7, %v3632_v6  ;;  %4073 = vrot.lane.b32.xlu0 %v3968_v15, %s5166_s3 }
0x2acc   :  { %v3409_v57 = vpop.permute.xlu0 %3408 }
0x2acd   :  { %3411 = vst.msk [vmem:[#allocation5] sm:$0xc0] %vm547_vm5, %v3409_v57  ;;  %4078 = vrot.lane.b32.xlu1 %v4071_v21, %s5166_s3 }
0x2ad0   :  { %v3858_v34 = vpop.permute.xlu0 %3857 }
0x2ad1   :  { %3860 = vst.msk [vmem:[#allocation5] sm:$0xc] %vm766_vm6, %v3858_v34  ;;  %2743 = vrot.lane.b32.xlu1 %v5999_v27, %s5166_s3  ;;  %v4100_v27 = vld [vmem:[%s6354_s13 + $0x20] sm:$0xff] }
0x2ad2   :  { %4898 = vmatprep.subr.mxu0 %v4100_v27 }
0x2ad3   :  { %4899 = vmatpush3.msra.mxu0 %v4100_v27 }
0x2ad4   :  { %v2521_v47 = vpop.permute.xlu0 %2520  ;;  %4900 = vmatprep.subr.mxu0 %v4099_v50 }
0x2ad5   :  { %2523 = vst.msk [vmem:[#allocation5 + $0x8] sm:$0xc0] %vm547_vm5, %v2521_v47  ;;  %2738 = vrot.lane.b32.xlu1 %v5995_v11, %s5166_s3  ;;  %v4098_v11 = vld [vmem:[%s6354_s13 + $0x10] sm:$0xff]  ;;  %4901 = vmatpush3.msra.mxu0 %v4099_v50 }
0x2ad6   :  { %4902 = vmatprep.subr.mxu0 %v4098_v11 }
0x2ad7   :  { %4903 = vmatpush3.msra.mxu0 %v4098_v11 }
0x2ad8   :  { %v2970_v52 = vpop.permute.xlu0 %2969 }
0x2ad9   :  { %2972 = vst.msk [vmem:[#allocation5 + $0x8] sm:$0xc] %vm766_vm6, %v2970_v52  ;;  %3185 = vrot.lane.b32.xlu1 %v6085_v49, %s5166_s3  ;;  %v4097_v49 = vld [vmem:[%s6354_s13 + $0x8] sm:$0xff] }
0x2ada   :  { %4904 = vmatprep.subr.mxu0 %v4097_v49 }
0x2adb   :  { %4905 = vmatpush3.msra.mxu0 %v4097_v49 }
0x2adc   :  { %v2965_v53 = vpop.permute.xlu0 %2964  ;;  %4906 = vmatprep.subr.mxu0 %v4096_v60 }
0x2add   :  { %2967 = vst.msk [vmem:[#allocation4] sm:$0x30] %vm772_vm7, %v2965_v53  ;;  %3852 = vrot.lane.b32.xlu1 %v6235_v59, %s5166_s3  ;;  %4907 = vmatpush3.msra.mxu0 %v4096_v60 }
0x2ae0   :  { %v3627_v55 = vpop.permute.xlu0 %3626 }
0x2ae1   :  { %3629 = vst.msk [vmem:[#allocation4 + $0x8] sm:$0xc] %vm766_vm6, %v3627_v55 }
0x2b3d   :  { %v4074_v20 = vpop.permute.xlu0 %4073 }
0x2b3e   :  { %4076 = vst.msk [vmem:[#allocation4 + $0x8] sm:$0xc0] %vm547_vm5, %v4074_v20 }
0x2b3f   :  { %v4079_v61 = vpop.permute.xlu1 %4078 }
0x2b40   :  { %4081 = vst.msk [vmem:[#allocation5] sm:$0x3] %vm541_vm4, %v4079_v61 }
0x2b43   :  { %v2744_v59 = vpop.permute.xlu1 %2743 }
0x2b44   :  { %2746 = vst.msk [vmem:[#allocation5 + $0x8] sm:$0x30] %vm772_vm7, %v2744_v59 }
0x2b47   :  { %v2739_v62 = vpop.permute.xlu1 %2738  ;;  %v4084_v63 = vld [vmem:[#allocation5] sm:$0xff] }
0x2b48   :  { %2741 = vst.msk [vmem:[#allocation4] sm:$0xc] %vm766_vm6, %v2739_v62  ;;  %4088 = vrot.lane.b32.xlu1 %v4084_v63, %s5167_s8 }
0x2b4b   :  { %v3186_v8 = vpop.permute.xlu1 %3185  ;;  %v4085_v1 = vld [vmem:[#allocation5 + $0x8] sm:$0xff] }
0x2b4c   :  { %3188 = vst.msk [vmem:[#allocation4] sm:$0xc0] %vm547_vm5, %v3186_v8  ;;  %4090 = vrot.lane.b32.xlu0 %v4085_v1, %s5167_s8 }
0x2b4f   :  { %v3853_v2 = vpop.permute.xlu1 %3852 }
0x2b50   :  { %3855 = vst.msk [vmem:[#allocation4 + $0x8] sm:$0x30] %vm772_vm7, %v3853_v2 }
0x2b53   :  { %v4082_v3 = vld [vmem:[#allocation4] sm:$0xff] }
0x2b57   :  { %v4083_v58 = vld [vmem:[#allocation4 + $0x8] sm:$0xff] }
0x2bba   :  { %v4089_v5 = vpop.permute.xlu1 %4088 }
0x2bbb   :  { %v4094_v51 = vsel %vm329_vm3, %v4082_v3, %v4089_v5 }
0x2bbc   :  { %4908 = vmatprep.mubr.msk.f32.mxu0 %vm2163_vm8, %v4094_v51 }
0x2bbe   :  { %v4091_v10 = vpop.permute.xlu0 %4090 }
0x2bbf   :  { %v4095_v18 = vsel %vm329_vm3, %v4083_v58, %v4091_v10 }
0x2bc0   :  { %4909 = vmatmul.mubr.msk.f32.vlgmr.msra.gmra.mxu0 %vm2163_vm8, %v4095_v18 }
0x2c80   :  { %v4910_v22 = vpop.f32.mrf.mxu0 }
0x2c81   :  { %v4189_v29 = vadd.f32 %v4910_v22, %v4333_v30 }
0x2c82   :  { %v4183_v45 = vpop.f32.mrf.mxu0 }
0x2c83   :  { %v4184_v54 = vadd.f32 %v4333_v30, %v4183_v45  ;;  %v4196_v9 = vsel %vm4192_vm9, %v4189_v29, -inf }
0x2c84   :  { %4197 = vmax.xlane.f32.xlu0 %v4196_v9 }
0x2c85   :  { %v4193_v31 = vsel %vm4192_vm9, %v4184_v54, -inf }
0x2c86   :  { %4194 = vmax.xlane.f32.xlu1 %v4193_v31 }
0x2d0d   :  { %v4198_v23 = vpop.xlane.xlu0 %4197 }
0x2d0e   :  { %v4200_v17 = vsub.f32 %v4189_v29, %v4198_v23 }
0x2d0f   :  { %v4195_v32 = vpop.xlane.xlu1 %4194 }
0x2d10   :  { %v4203_v26 = vmul.f32 1.442695, %v4200_v17  ;;  %v4199_v33 = vsub.f32 %v4184_v54, %v4195_v32 }
0x2d12   :  { %5143 = vpow2.f32 %v4203_v26  ;;  %v4201_v19 = vmul.f32 1.442695, %v4199_v33 }
0x2d14   :  { %5145 = vpow2.f32 %v4201_v19 }
0x2d1f   :  { %v5144_v24 = vpop.eup %5143 }
0x2d20   :  { %v4208_v12 = vsel %vm4192_vm9, %v5144_v24, 0.0 }
0x2d21   :  { %v5146_v28 = vpop.eup %5145  ;;  %4209 = vadd.xlane.f32.xlu1 %v4208_v12 }
0x2d22   :  { %v4205_v16 = vsel %vm4192_vm9, %v5146_v28, 0.0 }
0x2d23   :  { %4206 = vadd.xlane.f32.xlu0 %v4205_v16 }
0x2daa   :  { %v4210_v25 = vpop.xlane.xlu1 %4209 }
0x2dab   :  { %5147 = vlog2.f32 %v4210_v25 }
0x2dac   :  { %v4207_v35 = vpop.xlane.xlu0 %4206 }
0x2dad   :  { %5149 = vlog2.f32 %v4207_v35 }
0x2db8   :  { %v5148_v36 = vpop.eup %5147 }
0x2db9   :  { %v4214_v39 = vmul.f32 0.6931472, %v5148_v36 }
0x2dba   :  { %v5150_v40 = vpop.eup %5149 }
0x2dbb   :  { %v4216_v41 = vsub.f32 %v4200_v17, %v4214_v39  ;;  %v4212_v42 = vmul.f32 0.6931472, %v5150_v40 }
0x2dbd   :  { %4218 = vst.msk [vmem:[%s6356_s15 + $0x8] sm:$0xff] %vm4192_vm9, %v4216_v41  ;;  %v4215_v38 = vsub.f32 %v4199_v33, %v4212_v42 }
0x2dbf   :  { %4217 = vst.msk [vmem:[%s6356_s15] sm:$0xff] %vm4192_vm9, %v4215_v38 }

</bundles_post_ra>
